<compile_context>
chip_gen: v7x
topology: tpu7x:2x2x1
jax: 0.10.0
libtpu: 0.0.40
codegen_flags: <defaults>
</compile_context>

<pallas_src>
import math

import numpy as np
import jax
import jax.numpy as jnp
from jax.experimental import pallas as pl
from jax.experimental.pallas import tpu as pltpu

# ---------------- configuration (small, consistent with the module) ----------
NUM_LAYERS = 2
HIDDEN = 128
NUM_HEADS = 4
HEAD_DIM = HIDDEN // NUM_HEADS
MLP_RATIO = 4
FFN = HIDDEN * MLP_RATIO
VOCAB = 256
BATCH = 2
SEQ = 16
LN_EPS = 1e-5
EMBED_GRAD_SCALE = 0.1

_BF16 = jnp.bfloat16
_F32 = jnp.float32
# dot_general numbers for "A @ B^T" (contract last dim of both operands)
_TRANS_B = (((1,), (1,)), ((), ()))


def _layernorm(h, w, b):
    mu = jnp.mean(h, axis=-1, keepdims=True)
    var = jnp.mean(jnp.square(h - mu), axis=-1, keepdims=True)
    return (h - mu) * jax.lax.rsqrt(var + LN_EPS) * w + b


# ---------------- fused forward kernel (whole batch in one block) ------------
def fused_gpt_kernel(x_ref, maskw_ref, kvmask_ref, seg_ref,
                     ln1w_ref, ln1b_ref, wqkv_ref, bqkv_ref, wo_ref, bo_ref,
                     ln2w_ref, ln2b_ref, w1_ref, b1_ref, w2_ref, b2_ref,
                     lnfw_ref, lnfb_ref, headw_ref,
                     o_ref):
    h = x_ref[...]                 # (B*S, H)  f32 hidden states, batch folded into rows
    seg = seg_ref[...]             # (NH*S, NH*S) f32 block-diagonal ones (softmax segment sums)

    # TODO(synk): convert to lax.fori_loop with dynamic layer reads if NUM_LAYERS grows.
    for l in range(NUM_LAYERS):
        # -------- attention sub-block (pre-LN) --------
        h_ln = _layernorm(h, ln1w_ref[l], ln1b_ref[l])
        qkv = jnp.dot(h_ln.astype(_BF16), wqkv_ref[l],
                      preferred_element_type=_F32) + bqkv_ref[l]        # (B*S, 3H) f32
        q = qkv[:, :HIDDEN]                    # 1/sqrt(head_dim) pre-folded into wqkv/bqkv
        kv = qkv[:, HIDDEN:3 * HIDDEN]         # (B*S, 2H)  [K | V]

        ctx_rows = []
        for b in range(BATCH):     # attention never mixes batch elements
            q_b = q[b * SEQ:(b + 1) * SEQ, :]                           # (S, H)
            kv_b = kv[b * SEQ:(b + 1) * SEQ, :]                         # (S, 2H)
            # Head-masked K/V stacks: row (hd*S + k) holds K/V of key k with only
            # head hd's lanes live.  Masking K makes scores come out per-head;
            # masking V makes context contributions land on the right lanes.
            kv_stack = jnp.concatenate(
                [kv_b * kvmask_ref[hd] for hd in range(NUM_HEADS)], axis=0)  # (NH*S, 2H)
            k_stack = kv_stack[:, :HIDDEN]                              # (NH*S, H)
            v_stack = kv_stack[:, HIDDEN:]                              # (NH*S, H)

            # scores in wide layout: column (hd*S + k) = head-hd score vs key k
            s_b = jax.lax.dot_general(q_b.astype(_BF16), k_stack.astype(_BF16),
                                      dimension_numbers=_TRANS_B,
                                      preferred_element_type=_F32)      # (S, NH*S)
            s_b = s_b + maskw_ref[b]                                    # causal+pad, f32

            # Segmented softmax: shared row max (valid per-segment shift; every head
            # segment contains its un-masked diagonal entry so denom > 0), per-head
            # sums via one block-diagonal-ones matmul, divide via EUP reciprocal.
            m = jnp.max(s_b, axis=-1, keepdims=True)
            e = jnp.exp(s_b - m)                                        # f32
            denom = jnp.dot(e, seg, preferred_element_type=_F32)        # (S, NH*S)
            p = e * pl.reciprocal(denom, approx=True)

            # Single context matmul: head structure is carried by v_stack's lane masks.
            ctx_rows.append(jnp.dot(p.astype(_BF16), v_stack.astype(_BF16),
                                    preferred_element_type=_F32))       # (S, H)
        ctx = jnp.concatenate(ctx_rows, axis=0)                         # (B*S, H)

        attn = jnp.dot(ctx.astype(_BF16), wo_ref[l],
                       preferred_element_type=_F32) + bo_ref[l]
        h = h + attn

        # -------- MLP sub-block (pre-LN) --------
        h_ln2 = _layernorm(h, ln2w_ref[l], ln2b_ref[l])
        m1 = jnp.dot(h_ln2.astype(_BF16), w1_ref[l],
                     preferred_element_type=_F32) + b1_ref[l]
        # tanh-approximate GELU (reference uses erf GELU; ~1e-3 difference)
        # TODO(synk): switch to exact erf GELU if bit-exactness is required.
        m1 = jax.nn.gelu(m1, approximate=True)                          # f32 VPU/EUP
        h = h + jnp.dot(m1.astype(_BF16), w2_ref[l],
                        preferred_element_type=_F32) + b2_ref[l]

    # -------- final LayerNorm + bias-free vocab head (last=True) --------
    h_f = _layernorm(h, lnfw_ref[...], lnfb_ref[...])
    o_ref[...] = jnp.dot(h_f.astype(_BF16), headw_ref[...],
                         preferred_element_type=_F32)                   # (B*S, V)


def fused_forward_pallas(h0, mask_wide, prep):
    BS, H = h0.shape
    V = prep["head_w"].shape[1]
    L = NUM_LAYERS

    def full(shape):
        nd = len(shape)
        return pl.BlockSpec(shape, lambda i, _nd=nd: (0,) * _nd)

    # TODO(synk): at production sizes (H >= 2048, large V) block the FFN / vocab
    # dimensions with extra grid axes (lane-dense N tiles, vmem_limit_bytes set
    # explicitly) instead of keeping all weights resident; v7x has only 64 MiB
    # physical VMEM and v5e's scoped default is 16 MiB.
    in_specs = [
        full((BS, H)),                                   # hidden states (batch folded)
        full((BATCH, SEQ, NUM_HEADS * SEQ)),             # additive mask, head-tiled keys
        full((NUM_HEADS, 1, 2 * H)),                     # per-head K/V lane masks
        full((NUM_HEADS * SEQ, NUM_HEADS * SEQ)),        # block-diag ones (seg. softmax)
        full((L, 1, H)), full((L, 1, H)),                # ln1 w, b
        full((L, H, 3 * H)), full((L, 1, 3 * H)),        # qkv w (bf16, Q pre-scaled), b
        full((L, H, H)), full((L, 1, H)),                # attn out w (bf16), b
        full((L, 1, H)), full((L, 1, H)),                # ln2 w, b
        full((L, H, FFN)), full((L, 1, FFN)),            # mlp fc1 w (bf16), b
        full((L, FFN, H)), full((L, 1, H)),              # mlp fc2 w (bf16), b
        full((1, H)), full((1, H)),                      # final LN w, b
        full((H, V)),                                    # head w (bf16)
    ]
    return pl.pallas_call(
        fused_gpt_kernel,
        out_shape=jax.ShapeDtypeStruct((BS, V), jnp.float32),
        grid=(1,),
        in_specs=in_specs,
        out_specs=full((BS, V)),
        compiler_params=pltpu.CompilerParams(
            dimension_semantics=("arbitrary",)),
    )(h0, mask_wide, prep["kvmask"], prep["seg"],
      prep["ln1_w"], prep["ln1_b"], prep["wqkv"], prep["bqkv"],
      prep["wo"], prep["bo"], prep["ln2_w"], prep["ln2_b"],
      prep["w1"], prep["b1"], prep["w2"], prep["b2"],
      prep["ln_f_w"], prep["ln_f_b"], prep["head_w"])


# ---------------- parameter construction (deterministic, synthetic) ----------
def init_params(key):
    keys = jax.random.split(key, 6)
    L = NUM_LAYERS
    return {
        "emb": 0.006 * jax.random.normal(keys[0], (VOCAB, HIDDEN), _F32),
        "head_w": 0.006 * jax.random.normal(keys[1], (HIDDEN, VOCAB), _F32),
        "ln_f_w": jnp.ones((1, HIDDEN), _F32),
        "ln_f_b": jnp.zeros((1, HIDDEN), _F32),
        "ln1_w": jnp.ones((L, 1, HIDDEN), _F32),
        "ln1_b": jnp.zeros((L, 1, HIDDEN), _F32),
        "wqkv": 0.02 * jax.random.normal(keys[2], (L, HIDDEN, 3 * HIDDEN), _F32),
        "bqkv": jnp.zeros((L, 1, 3 * HIDDEN), _F32),
        "wo": 0.02 * jax.random.normal(keys[3], (L, HIDDEN, HIDDEN), _F32),
        "bo": jnp.zeros((L, 1, HIDDEN), _F32),
        "ln2_w": jnp.ones((L, 1, HIDDEN), _F32),
        "ln2_b": jnp.zeros((L, 1, HIDDEN), _F32),
        "w1": 0.02 * jax.random.normal(keys[4], (L, HIDDEN, FFN), _F32),
        "b1": jnp.zeros((L, 1, FFN), _F32),
        "w2": 0.02 * jax.random.normal(keys[5], (L, FFN, HIDDEN), _F32),
        "b2": jnp.zeros((L, 1, HIDDEN), _F32),
    }


def prepare_weights(params):
    """One-time weight preparation (outside jit): fold the 1/sqrt(head_dim)
    attention scale into the Q columns of wqkv/bqkv, cast MXU weights to bf16,
    and build the constant head-mask / segment-sum matrices."""
    scale = 1.0 / math.sqrt(HEAD_DIM)
    q_scale = jnp.concatenate(
        [jnp.full((1, 1, HIDDEN), scale, _F32),
         jnp.ones((1, 1, 2 * HIDDEN), _F32)], axis=-1)                 # (1, 1, 3H)
    wqkv = params["wqkv"] * q_scale
    bqkv = params["bqkv"] * q_scale

    # Per-head lane masks for the concatenated [K | V] slab: (NH, 1, 2H).
    hm = (np.arange(HIDDEN)[None, :] // HEAD_DIM ==
          np.arange(NUM_HEADS)[:, None]).astype(np.float32)            # (NH, H)
    kvmask = np.concatenate([hm, hm], axis=1)[:, None, :]              # (NH, 1, 2H)
    # Block-diagonal ones for per-head softmax denominators: (NH*S, NH*S).
    seg = np.kron(np.eye(NUM_HEADS, dtype=np.float32),
                  np.ones((SEQ, SEQ), np.float32))

    return {
        "emb": params["emb"],
        "kvmask": jnp.asarray(kvmask),
        "seg": jnp.asarray(seg),
        "ln1_w": params["ln1_w"], "ln1_b": params["ln1_b"],
        "wqkv": wqkv.astype(_BF16), "bqkv": bqkv,
        "wo": params["wo"].astype(_BF16), "bo": params["bo"],
        "ln2_w": params["ln2_w"], "ln2_b": params["ln2_b"],
        "w1": params["w1"].astype(_BF16), "b1": params["b1"],
        "w2": params["w2"].astype(_BF16), "b2": params["b2"],
        "ln_f_w": params["ln_f_w"], "ln_f_b": params["ln_f_b"],
        "head_w": params["head_w"].astype(_BF16),
    }


# ---------------- full forward (mirrors FusedPipelineGPT1D.forward) ----------
@jax.jit
def fused_pipeline_gpt1d_forward(prep, input_ids, attention_mask):
    # embedding (first=True) -- gather kept in plain JAX glue
    h = jnp.take(prep["emb"], input_ids, axis=0)                       # (B, S, H)
    # embed_grad_scale mixing (forward value is unchanged)
    h = EMBED_GRAD_SCALE * h + (1.0 - EMBED_GRAD_SCALE) * jax.lax.stop_gradient(h)

    B, S, H = h.shape
    # Combined additive mask (built once per call, already tiled across heads):
    #   padding: HF/Colossal-style (1 - mask) * -10000 over key positions
    #   causal:  -1e30 where key index > query index  (kept in f32 end-to-end)
    pad = ((1.0 - attention_mask.astype(_F32)) * -10000.0)[:, None, :]  # (B, 1, S)
    row = jax.lax.broadcasted_iota(jnp.int32, (S, S), 0)
    col = jax.lax.broadcasted_iota(jnp.int32, (S, S), 1)
    causal = (col <= row)[None, :, :]
    base = jnp.where(causal, jnp.broadcast_to(pad, (B, S, S)), -1e30)   # (B, S, S)
    mask_wide = jnp.tile(base, (1, 1, NUM_HEADS))                       # (B, S, NH*S)

    logits = fused_forward_pallas(h.reshape(B * S, H), mask_wide, prep)
    return logits.reshape(B, S, VOCAB)                                  # (B, S, V)


if __name__ == "__main__":
    key = jax.random.PRNGKey(0)
    pkey, ikey = jax.random.split(key)
    params = init_params(pkey)
    prep = prepare_weights(params)
    input_ids = jax.random.randint(ikey, (BATCH, SEQ), 0, VOCAB, dtype=jnp.int32)
    attention_mask = jnp.ones((BATCH, SEQ), jnp.float32)

    out = fused_pipeline_gpt1d_forward(prep, input_ids, attention_mask)
    out = jax.block_until_ready(out)
    assert out.shape == (BATCH, SEQ, VOCAB) and out.dtype == jnp.float32
    assert bool(jnp.all(jnp.isfinite(out)))
    print("KERNEL_OK")
</pallas_src>

<mosaic_0001>
module attributes {stable_mosaic.version = 11 : i64} {
  func.func @fused_gpt_kernel(%arg0: i32, %arg1: memref<32x128xf32, #tpu.memory_space<vmem>>, %arg2: memref<2x16x64xf32, #tpu.memory_space<vmem>>, %arg3: memref<4x1x256xf32, #tpu.memory_space<vmem>>, %arg4: memref<64x64xf32, #tpu.memory_space<vmem>>, %arg5: memref<2x1x128xf32, #tpu.memory_space<vmem>>, %arg6: memref<2x1x128xf32, #tpu.memory_space<vmem>>, %arg7: memref<2x128x384xbf16, #tpu.memory_space<vmem>>, %arg8: memref<2x1x384xf32, #tpu.memory_space<vmem>>, %arg9: memref<2x128x128xbf16, #tpu.memory_space<vmem>>, %arg10: memref<2x1x128xf32, #tpu.memory_space<vmem>>, %arg11: memref<2x1x128xf32, #tpu.memory_space<vmem>>, %arg12: memref<2x1x128xf32, #tpu.memory_space<vmem>>, %arg13: memref<2x128x512xbf16, #tpu.memory_space<vmem>>, %arg14: memref<2x1x512xf32, #tpu.memory_space<vmem>>, %arg15: memref<2x512x128xbf16, #tpu.memory_space<vmem>>, %arg16: memref<2x1x128xf32, #tpu.memory_space<vmem>>, %arg17: memref<1x128xf32, #tpu.memory_space<vmem>>, %arg18: memref<1x128xf32, #tpu.memory_space<vmem>>, %arg19: memref<128x256xbf16, #tpu.memory_space<vmem>>, %arg20: memref<32x256xf32, #tpu.memory_space<vmem>>) attributes {dimension_semantics = [#tpu.dimension_semantics<arbitrary>], iteration_bounds = array<i64: 1>, scalar_prefetch = 0 : i64, scratch_operands = 0 : i64, tpu.core_type = #tpu.core_type<tc>, window_params = [{pipeline_mode = #tpu.pipeline_mode<synchronous>, transform_indices = @transform_0, window_bounds = array<i64: 32, 128>}, {pipeline_mode = #tpu.pipeline_mode<synchronous>, transform_indices = @transform_1, window_bounds = array<i64: 2, 16, 64>}, {pipeline_mode = #tpu.pipeline_mode<synchronous>, transform_indices = @transform_2, window_bounds = array<i64: 4, 1, 256>}, {pipeline_mode = #tpu.pipeline_mode<synchronous>, transform_indices = @transform_3, window_bounds = array<i64: 64, 64>}, {pipeline_mode = #tpu.pipeline_mode<synchronous>, transform_indices = @transform_4, window_bounds = array<i64: 2, 1, 128>}, {pipeline_mode = #tpu.pipeline_mode<synchronous>, transform_indices = @transform_5, window_bounds = array<i64: 2, 1, 128>}, {pipeline_mode = #tpu.pipeline_mode<synchronous>, transform_indices = @transform_6, window_bounds = array<i64: 2, 128, 384>}, {pipeline_mode = #tpu.pipeline_mode<synchronous>, transform_indices = @transform_7, window_bounds = array<i64: 2, 1, 384>}, {pipeline_mode = #tpu.pipeline_mode<synchronous>, transform_indices = @transform_8, window_bounds = array<i64: 2, 128, 128>}, {pipeline_mode = #tpu.pipeline_mode<synchronous>, transform_indices = @transform_9, window_bounds = array<i64: 2, 1, 128>}, {pipeline_mode = #tpu.pipeline_mode<synchronous>, transform_indices = @transform_10, window_bounds = array<i64: 2, 1, 128>}, {pipeline_mode = #tpu.pipeline_mode<synchronous>, transform_indices = @transform_11, window_bounds = array<i64: 2, 1, 128>}, {pipeline_mode = #tpu.pipeline_mode<synchronous>, transform_indices = @transform_12, window_bounds = array<i64: 2, 128, 512>}, {pipeline_mode = #tpu.pipeline_mode<synchronous>, transform_indices = @transform_13, window_bounds = array<i64: 2, 1, 512>}, {pipeline_mode = #tpu.pipeline_mode<synchronous>, transform_indices = @transform_14, window_bounds = array<i64: 2, 512, 128>}, {pipeline_mode = #tpu.pipeline_mode<synchronous>, transform_indices = @transform_15, window_bounds = array<i64: 2, 1, 128>}, {pipeline_mode = #tpu.pipeline_mode<synchronous>, transform_indices = @transform_16, window_bounds = array<i64: 1, 128>}, {pipeline_mode = #tpu.pipeline_mode<synchronous>, transform_indices = @transform_17, window_bounds = array<i64: 1, 128>}, {pipeline_mode = #tpu.pipeline_mode<synchronous>, transform_indices = @transform_18, window_bounds = array<i64: 128, 256>}, {pipeline_mode = #tpu.pipeline_mode<synchronous>, transform_indices = @transform_19, window_bounds = array<i64: 32, 256>}]} {
    %c0 = arith.constant 0 : index
    %c0_0 = arith.constant 0 : index
    %0 = vector.load %arg1[%c0, %c0_0] : memref<32x128xf32, #tpu.memory_space<vmem>>, vector<32x128xf32>
    %c0_1 = arith.constant 0 : index
    %c0_2 = arith.constant 0 : index
    %1 = vector.load %arg4[%c0_1, %c0_2] : memref<64x64xf32, #tpu.memory_space<vmem>>, vector<64x64xf32>
    %c0_3 = arith.constant 0 : index
    %c0_4 = arith.constant 0 : index
    %c0_5 = arith.constant 0 : index
    %2 = vector.load %arg5[%c0_3, %c0_4, %c0_5] : memref<2x1x128xf32, #tpu.memory_space<vmem>>, vector<1x1x128xf32>
    %3 = vector.shape_cast %2 : vector<1x1x128xf32> to vector<1x128xf32>
    %c0_6 = arith.constant 0 : index
    %c0_7 = arith.constant 0 : index
    %c0_8 = arith.constant 0 : index
    %4 = vector.load %arg6[%c0_6, %c0_7, %c0_8] : memref<2x1x128xf32, #tpu.memory_space<vmem>>, vector<1x1x128xf32>
    %5 = vector.shape_cast %4 : vector<1x1x128xf32> to vector<1x128xf32>
    %cst = arith.constant dense<0.000000e+00> : vector<32xf32>
    %6 = vector.multi_reduction <add>, %0, %cst [1] : vector<32x128xf32> to vector<32xf32>
    %7 = vector.shape_cast %6 : vector<32xf32> to vector<32x1xf32>
    %cst_9 = arith.constant 1.280000e+02 : f32
    %8 = vector.broadcast %cst_9 : f32 to vector<32x1xf32>
    %9 = arith.divf %7, %8 : vector<32x1xf32>
    %10 = vector.broadcast %9 : vector<32x1xf32> to vector<32x128xf32>
    %11 = arith.subf %0, %10 : vector<32x128xf32>
    %12 = arith.mulf %11, %11 : vector<32x128xf32>
    %cst_10 = arith.constant dense<0.000000e+00> : vector<32xf32>
    %13 = vector.multi_reduction <add>, %12, %cst_10 [1] : vector<32x128xf32> to vector<32xf32>
    %14 = vector.shape_cast %13 : vector<32xf32> to vector<32x1xf32>
    %cst_11 = arith.constant 1.280000e+02 : f32
    %15 = vector.broadcast %cst_11 : f32 to vector<32x1xf32>
    %16 = arith.divf %14, %15 : vector<32x1xf32>
    %17 = vector.broadcast %9 : vector<32x1xf32> to vector<32x128xf32>
    %18 = arith.subf %0, %17 : vector<32x128xf32>
    %cst_12 = arith.constant 9.99999974E-6 : f32
    %19 = vector.broadcast %cst_12 : f32 to vector<32x1xf32>
    %20 = arith.addf %16, %19 : vector<32x1xf32>
    %21 = math.rsqrt %20 : vector<32x1xf32>
    %22 = vector.broadcast %21 : vector<32x1xf32> to vector<32x128xf32>
    %23 = arith.mulf %18, %22 : vector<32x128xf32>
    %24 = vector.broadcast %3 : vector<1x128xf32> to vector<32x128xf32>
    %25 = arith.mulf %23, %24 : vector<32x128xf32>
    %26 = vector.broadcast %5 : vector<1x128xf32> to vector<32x128xf32>
    %27 = arith.addf %25, %26 : vector<32x128xf32>
    %28 = arith.truncf %27 : vector<32x128xf32> to vector<32x128xbf16>
    %c0_13 = arith.constant 0 : index
    %c0_14 = arith.constant 0 : index
    %c0_15 = arith.constant 0 : index
    %29 = vector.load %arg7[%c0_13, %c0_14, %c0_15] : memref<2x128x384xbf16, #tpu.memory_space<vmem>>, vector<1x128x384xbf16>
    %30 = vector.shape_cast %29 : vector<1x128x384xbf16> to vector<128x384xbf16>
    %cst_16 = arith.constant dense<0.000000e+00> : vector<32x384xf32>
    %31 = tpu.matmul %28, %30, %cst_16 {dimension_numbers = #tpu.dot_dimension_numbers<[1], [0], [0], [1], [0, 0, 1, 1], [], []>} : vector<32x128xbf16>, vector<128x384xbf16>, vector<32x384xf32> -> vector<32x384xf32>
    %c0_17 = arith.constant 0 : index
    %c0_18 = arith.constant 0 : index
    %c0_19 = arith.constant 0 : index
    %32 = vector.load %arg8[%c0_17, %c0_18, %c0_19] : memref<2x1x384xf32, #tpu.memory_space<vmem>>, vector<1x1x384xf32>
    %33 = vector.shape_cast %32 : vector<1x1x384xf32> to vector<1x384xf32>
    %34 = vector.broadcast %33 : vector<1x384xf32> to vector<32x384xf32>
    %35 = arith.addf %31, %34 : vector<32x384xf32>
    %36 = vector.extract_strided_slice %35 {offsets = [0, 0], sizes = [32, 128], strides = [1, 1]} : vector<32x384xf32> to vector<32x128xf32>
    %37 = vector.extract_strided_slice %35 {offsets = [0, 128], sizes = [32, 256], strides = [1, 1]} : vector<32x384xf32> to vector<32x256xf32>
    %38 = vector.extract_strided_slice %36 {offsets = [0, 0], sizes = [16, 128], strides = [1, 1]} : vector<32x128xf32> to vector<16x128xf32>
    %39 = vector.extract_strided_slice %37 {offsets = [0, 0], sizes = [16, 256], strides = [1, 1]} : vector<32x256xf32> to vector<16x256xf32>
    %c0_20 = arith.constant 0 : index
    %c0_21 = arith.constant 0 : index
    %c0_22 = arith.constant 0 : index
    %40 = vector.load %arg3[%c0_20, %c0_21, %c0_22] : memref<4x1x256xf32, #tpu.memory_space<vmem>>, vector<1x1x256xf32>
    %41 = vector.shape_cast %40 : vector<1x1x256xf32> to vector<1x256xf32>
    %42 = vector.broadcast %41 : vector<1x256xf32> to vector<16x256xf32>
    %43 = arith.mulf %39, %42 : vector<16x256xf32>
    %c1 = arith.constant 1 : index
    %c0_23 = arith.constant 0 : index
    %c0_24 = arith.constant 0 : index
    %44 = vector.load %arg3[%c1, %c0_23, %c0_24] : memref<4x1x256xf32, #tpu.memory_space<vmem>>, vector<1x1x256xf32>
    %45 = vector.shape_cast %44 : vector<1x1x256xf32> to vector<1x256xf32>
    %46 = vector.broadcast %45 : vector<1x256xf32> to vector<16x256xf32>
    %47 = arith.mulf %39, %46 : vector<16x256xf32>
    %c2 = arith.constant 2 : index
    %c0_25 = arith.constant 0 : index
    %c0_26 = arith.constant 0 : index
    %48 = vector.load %arg3[%c2, %c0_25, %c0_26] : memref<4x1x256xf32, #tpu.memory_space<vmem>>, vector<1x1x256xf32>
    %49 = vector.shape_cast %48 : vector<1x1x256xf32> to vector<1x256xf32>
    %50 = vector.broadcast %49 : vector<1x256xf32> to vector<16x256xf32>
    %51 = arith.mulf %39, %50 : vector<16x256xf32>
    %c3 = arith.constant 3 : index
    %c0_27 = arith.constant 0 : index
    %c0_28 = arith.constant 0 : index
    %52 = vector.load %arg3[%c3, %c0_27, %c0_28] : memref<4x1x256xf32, #tpu.memory_space<vmem>>, vector<1x1x256xf32>
    %53 = vector.shape_cast %52 : vector<1x1x256xf32> to vector<1x256xf32>
    %54 = vector.broadcast %53 : vector<1x256xf32> to vector<16x256xf32>
    %55 = arith.mulf %39, %54 : vector<16x256xf32>
    %56 = tpu.concatenate %43, %47, %51, %55 in 0 : vector<16x256xf32>, vector<16x256xf32>, vector<16x256xf32>, vector<16x256xf32> -> vector<64x256xf32>
    %57 = vector.extract_strided_slice %56 {offsets = [0, 0], sizes = [64, 128], strides = [1, 1]} : vector<64x256xf32> to vector<64x128xf32>
    %58 = vector.extract_strided_slice %56 {offsets = [0, 128], sizes = [64, 128], strides = [1, 1]} : vector<64x256xf32> to vector<64x128xf32>
    %59 = arith.truncf %38 : vector<16x128xf32> to vector<16x128xbf16>
    %60 = arith.truncf %57 : vector<64x128xf32> to vector<64x128xbf16>
    %cst_29 = arith.constant dense<0.000000e+00> : vector<16x64xf32>
    %61 = tpu.matmul %59, %60, %cst_29 {dimension_numbers = #tpu.dot_dimension_numbers<[1], [1], [0], [0], [0, 0, 1, 0], [], []>} : vector<16x128xbf16>, vector<64x128xbf16>, vector<16x64xf32> -> vector<16x64xf32>
    %c0_30 = arith.constant 0 : index
    %c0_31 = arith.constant 0 : index
    %c0_32 = arith.constant 0 : index
    %62 = vector.load %arg2[%c0_30, %c0_31, %c0_32] : memref<2x16x64xf32, #tpu.memory_space<vmem>>, vector<1x16x64xf32>
    %63 = vector.shape_cast %62 : vector<1x16x64xf32> to vector<16x64xf32>
    %64 = arith.addf %61, %63 : vector<16x64xf32>
    %cst_33 = arith.constant dense<0xFF800000> : vector<16xf32>
    %65 = vector.multi_reduction <maximumf>, %64, %cst_33 [1] : vector<16x64xf32> to vector<16xf32>
    %66 = vector.shape_cast %65 : vector<16xf32> to vector<16x1xf32>
    %67 = vector.broadcast %66 : vector<16x1xf32> to vector<16x64xf32>
    %68 = arith.subf %64, %67 : vector<16x64xf32>
    %69 = math.exp %68 : vector<16x64xf32>
    %cst_34 = arith.constant dense<0.000000e+00> : vector<16x64xf32>
    %70 = tpu.matmul %69, %1, %cst_34 {dimension_numbers = #tpu.dot_dimension_numbers<[1], [0], [0], [1], [0, 0, 1, 1], [], []>} : vector<16x64xf32>, vector<64x64xf32>, vector<16x64xf32> -> vector<16x64xf32>
    %71 = tpu.reciprocal %70 {approx = true} : vector<16x64xf32> -> vector<16x64xf32>
    %72 = arith.mulf %69, %71 : vector<16x64xf32>
    %73 = arith.truncf %72 : vector<16x64xf32> to vector<16x64xbf16>
    %74 = arith.truncf %58 : vector<64x128xf32> to vector<64x128xbf16>
    %cst_35 = arith.constant dense<0.000000e+00> : vector<16x128xf32>
    %75 = tpu.matmul %73, %74, %cst_35 {dimension_numbers = #tpu.dot_dimension_numbers<[1], [0], [0], [1], [0, 0, 1, 1], [], []>} : vector<16x64xbf16>, vector<64x128xbf16>, vector<16x128xf32> -> vector<16x128xf32>
    %76 = vector.extract_strided_slice %36 {offsets = [16, 0], sizes = [16, 128], strides = [1, 1]} : vector<32x128xf32> to vector<16x128xf32>
    %77 = vector.extract_strided_slice %37 {offsets = [16, 0], sizes = [16, 256], strides = [1, 1]} : vector<32x256xf32> to vector<16x256xf32>
    %c0_36 = arith.constant 0 : index
    %c0_37 = arith.constant 0 : index
    %c0_38 = arith.constant 0 : index
    %78 = vector.load %arg3[%c0_36, %c0_37, %c0_38] : memref<4x1x256xf32, #tpu.memory_space<vmem>>, vector<1x1x256xf32>
    %79 = vector.shape_cast %78 : vector<1x1x256xf32> to vector<1x256xf32>
    %80 = vector.broadcast %79 : vector<1x256xf32> to vector<16x256xf32>
    %81 = arith.mulf %77, %80 : vector<16x256xf32>
    %c1_39 = arith.constant 1 : index
    %c0_40 = arith.constant 0 : index
    %c0_41 = arith.constant 0 : index
    %82 = vector.load %arg3[%c1_39, %c0_40, %c0_41] : memref<4x1x256xf32, #tpu.memory_space<vmem>>, vector<1x1x256xf32>
    %83 = vector.shape_cast %82 : vector<1x1x256xf32> to vector<1x256xf32>
    %84 = vector.broadcast %83 : vector<1x256xf32> to vector<16x256xf32>
    %85 = arith.mulf %77, %84 : vector<16x256xf32>
    %c2_42 = arith.constant 2 : index
    %c0_43 = arith.constant 0 : index
    %c0_44 = arith.constant 0 : index
    %86 = vector.load %arg3[%c2_42, %c0_43, %c0_44] : memref<4x1x256xf32, #tpu.memory_space<vmem>>, vector<1x1x256xf32>
    %87 = vector.shape_cast %86 : vector<1x1x256xf32> to vector<1x256xf32>
    %88 = vector.broadcast %87 : vector<1x256xf32> to vector<16x256xf32>
    %89 = arith.mulf %77, %88 : vector<16x256xf32>
    %c3_45 = arith.constant 3 : index
    %c0_46 = arith.constant 0 : index
    %c0_47 = arith.constant 0 : index
    %90 = vector.load %arg3[%c3_45, %c0_46, %c0_47] : memref<4x1x256xf32, #tpu.memory_space<vmem>>, vector<1x1x256xf32>
    %91 = vector.shape_cast %90 : vector<1x1x256xf32> to vector<1x256xf32>
    %92 = vector.broadcast %91 : vector<1x256xf32> to vector<16x256xf32>
    %93 = arith.mulf %77, %92 : vector<16x256xf32>
    %94 = tpu.concatenate %81, %85, %89, %93 in 0 : vector<16x256xf32>, vector<16x256xf32>, vector<16x256xf32>, vector<16x256xf32> -> vector<64x256xf32>
    %95 = vector.extract_strided_slice %94 {offsets = [0, 0], sizes = [64, 128], strides = [1, 1]} : vector<64x256xf32> to vector<64x128xf32>
    %96 = vector.extract_strided_slice %94 {offsets = [0, 128], sizes = [64, 128], strides = [1, 1]} : vector<64x256xf32> to vector<64x128xf32>
    %97 = arith.truncf %76 : vector<16x128xf32> to vector<16x128xbf16>
    %98 = arith.truncf %95 : vector<64x128xf32> to vector<64x128xbf16>
    %cst_48 = arith.constant dense<0.000000e+00> : vector<16x64xf32>
    %99 = tpu.matmul %97, %98, %cst_48 {dimension_numbers = #tpu.dot_dimension_numbers<[1], [1], [0], [0], [0, 0, 1, 0], [], []>} : vector<16x128xbf16>, vector<64x128xbf16>, vector<16x64xf32> -> vector<16x64xf32>
    %c1_49 = arith.constant 1 : index
    %c0_50 = arith.constant 0 : index
    %c0_51 = arith.constant 0 : index
    %100 = vector.load %arg2[%c1_49, %c0_50, %c0_51] : memref<2x16x64xf32, #tpu.memory_space<vmem>>, vector<1x16x64xf32>
    %101 = vector.shape_cast %100 : vector<1x16x64xf32> to vector<16x64xf32>
    %102 = arith.addf %99, %101 : vector<16x64xf32>
    %cst_52 = arith.constant dense<0xFF800000> : vector<16xf32>
    %103 = vector.multi_reduction <maximumf>, %102, %cst_52 [1] : vector<16x64xf32> to vector<16xf32>
    %104 = vector.shape_cast %103 : vector<16xf32> to vector<16x1xf32>
    %105 = vector.broadcast %104 : vector<16x1xf32> to vector<16x64xf32>
    %106 = arith.subf %102, %105 : vector<16x64xf32>
    %107 = math.exp %106 : vector<16x64xf32>
    %cst_53 = arith.constant dense<0.000000e+00> : vector<16x64xf32>
    %108 = tpu.matmul %107, %1, %cst_53 {dimension_numbers = #tpu.dot_dimension_numbers<[1], [0], [0], [1], [0, 0, 1, 1], [], []>} : vector<16x64xf32>, vector<64x64xf32>, vector<16x64xf32> -> vector<16x64xf32>
    %109 = tpu.reciprocal %108 {approx = true} : vector<16x64xf32> -> vector<16x64xf32>
    %110 = arith.mulf %107, %109 : vector<16x64xf32>
    %111 = arith.truncf %110 : vector<16x64xf32> to vector<16x64xbf16>
    %112 = arith.truncf %96 : vector<64x128xf32> to vector<64x128xbf16>
    %cst_54 = arith.constant dense<0.000000e+00> : vector<16x128xf32>
    %113 = tpu.matmul %111, %112, %cst_54 {dimension_numbers = #tpu.dot_dimension_numbers<[1], [0], [0], [1], [0, 0, 1, 1], [], []>} : vector<16x64xbf16>, vector<64x128xbf16>, vector<16x128xf32> -> vector<16x128xf32>
    %114 = tpu.concatenate %75, %113 in 0 : vector<16x128xf32>, vector<16x128xf32> -> vector<32x128xf32>
    %115 = arith.truncf %114 : vector<32x128xf32> to vector<32x128xbf16>
    %c0_55 = arith.constant 0 : index
    %c0_56 = arith.constant 0 : index
    %c0_57 = arith.constant 0 : index
    %116 = vector.load %arg9[%c0_55, %c0_56, %c0_57] : memref<2x128x128xbf16, #tpu.memory_space<vmem>>, vector<1x128x128xbf16>
    %117 = vector.shape_cast %116 : vector<1x128x128xbf16> to vector<128x128xbf16>
    %cst_58 = arith.constant dense<0.000000e+00> : vector<32x128xf32>
    %118 = tpu.matmul %115, %117, %cst_58 {dimension_numbers = #tpu.dot_dimension_numbers<[1], [0], [0], [1], [0, 0, 1, 1], [], []>} : vector<32x128xbf16>, vector<128x128xbf16>, vector<32x128xf32> -> vector<32x128xf32>
    %c0_59 = arith.constant 0 : index
    %c0_60 = arith.constant 0 : index
    %c0_61 = arith.constant 0 : index
    %119 = vector.load %arg10[%c0_59, %c0_60, %c0_61] : memref<2x1x128xf32, #tpu.memory_space<vmem>>, vector<1x1x128xf32>
    %120 = vector.shape_cast %119 : vector<1x1x128xf32> to vector<1x128xf32>
    %121 = vector.broadcast %120 : vector<1x128xf32> to vector<32x128xf32>
    %122 = arith.addf %118, %121 : vector<32x128xf32>
    %123 = arith.addf %0, %122 : vector<32x128xf32>
    %c0_62 = arith.constant 0 : index
    %c0_63 = arith.constant 0 : index
    %c0_64 = arith.constant 0 : index
    %124 = vector.load %arg11[%c0_62, %c0_63, %c0_64] : memref<2x1x128xf32, #tpu.memory_space<vmem>>, vector<1x1x128xf32>
    %125 = vector.shape_cast %124 : vector<1x1x128xf32> to vector<1x128xf32>
    %c0_65 = arith.constant 0 : index
    %c0_66 = arith.constant 0 : index
    %c0_67 = arith.constant 0 : index
    %126 = vector.load %arg12[%c0_65, %c0_66, %c0_67] : memref<2x1x128xf32, #tpu.memory_space<vmem>>, vector<1x1x128xf32>
    %127 = vector.shape_cast %126 : vector<1x1x128xf32> to vector<1x128xf32>
    %cst_68 = arith.constant dense<0.000000e+00> : vector<32xf32>
    %128 = vector.multi_reduction <add>, %123, %cst_68 [1] : vector<32x128xf32> to vector<32xf32>
    %129 = vector.shape_cast %128 : vector<32xf32> to vector<32x1xf32>
    %cst_69 = arith.constant 1.280000e+02 : f32
    %130 = vector.broadcast %cst_69 : f32 to vector<32x1xf32>
    %131 = arith.divf %129, %130 : vector<32x1xf32>
    %132 = vector.broadcast %131 : vector<32x1xf32> to vector<32x128xf32>
    %133 = arith.subf %123, %132 : vector<32x128xf32>
    %134 = arith.mulf %133, %133 : vector<32x128xf32>
    %cst_70 = arith.constant dense<0.000000e+00> : vector<32xf32>
    %135 = vector.multi_reduction <add>, %134, %cst_70 [1] : vector<32x128xf32> to vector<32xf32>
    %136 = vector.shape_cast %135 : vector<32xf32> to vector<32x1xf32>
    %cst_71 = arith.constant 1.280000e+02 : f32
    %137 = vector.broadcast %cst_71 : f32 to vector<32x1xf32>
    %138 = arith.divf %136, %137 : vector<32x1xf32>
    %139 = vector.broadcast %131 : vector<32x1xf32> to vector<32x128xf32>
    %140 = arith.subf %123, %139 : vector<32x128xf32>
    %cst_72 = arith.constant 9.99999974E-6 : f32
    %141 = vector.broadcast %cst_72 : f32 to vector<32x1xf32>
    %142 = arith.addf %138, %141 : vector<32x1xf32>
    %143 = math.rsqrt %142 : vector<32x1xf32>
    %144 = vector.broadcast %143 : vector<32x1xf32> to vector<32x128xf32>
    %145 = arith.mulf %140, %144 : vector<32x128xf32>
    %146 = vector.broadcast %125 : vector<1x128xf32> to vector<32x128xf32>
    %147 = arith.mulf %145, %146 : vector<32x128xf32>
    %148 = vector.broadcast %127 : vector<1x128xf32> to vector<32x128xf32>
    %149 = arith.addf %147, %148 : vector<32x128xf32>
    %150 = arith.truncf %149 : vector<32x128xf32> to vector<32x128xbf16>
    %c0_73 = arith.constant 0 : index
    %c0_74 = arith.constant 0 : index
    %c0_75 = arith.constant 0 : index
    %151 = vector.load %arg13[%c0_73, %c0_74, %c0_75] : memref<2x128x512xbf16, #tpu.memory_space<vmem>>, vector<1x128x512xbf16>
    %152 = vector.shape_cast %151 : vector<1x128x512xbf16> to vector<128x512xbf16>
    %cst_76 = arith.constant dense<0.000000e+00> : vector<32x512xf32>
    %153 = tpu.matmul %150, %152, %cst_76 {dimension_numbers = #tpu.dot_dimension_numbers<[1], [0], [0], [1], [0, 0, 1, 1], [], []>} : vector<32x128xbf16>, vector<128x512xbf16>, vector<32x512xf32> -> vector<32x512xf32>
    %c0_77 = arith.constant 0 : index
    %c0_78 = arith.constant 0 : index
    %c0_79 = arith.constant 0 : index
    %154 = vector.load %arg14[%c0_77, %c0_78, %c0_79] : memref<2x1x512xf32, #tpu.memory_space<vmem>>, vector<1x1x512xf32>
    %155 = vector.shape_cast %154 : vector<1x1x512xf32> to vector<1x512xf32>
    %156 = vector.broadcast %155 : vector<1x512xf32> to vector<32x512xf32>
    %157 = arith.addf %153, %156 : vector<32x512xf32>
    %158 = arith.mulf %157, %157 : vector<32x512xf32>
    %159 = arith.mulf %157, %158 : vector<32x512xf32>
    %cst_80 = arith.constant 4.471500e-02 : f32
    %160 = vector.broadcast %cst_80 : f32 to vector<32x512xf32>
    %161 = arith.mulf %160, %159 : vector<32x512xf32>
    %162 = arith.addf %157, %161 : vector<32x512xf32>
    %cst_81 = arith.constant 0.797884583 : f32
    %163 = vector.broadcast %cst_81 : f32 to vector<32x512xf32>
    %164 = arith.mulf %163, %162 : vector<32x512xf32>
    %165 = math.tanh %164 : vector<32x512xf32>
    %cst_82 = arith.constant 1.000000e+00 : f32
    %166 = vector.broadcast %cst_82 : f32 to vector<32x512xf32>
    %167 = arith.addf %166, %165 : vector<32x512xf32>
    %cst_83 = arith.constant 5.000000e-01 : f32
    %168 = vector.broadcast %cst_83 : f32 to vector<32x512xf32>
    %169 = arith.mulf %168, %167 : vector<32x512xf32>
    %170 = arith.mulf %157, %169 : vector<32x512xf32>
    %171 = arith.truncf %170 : vector<32x512xf32> to vector<32x512xbf16>
    %c0_84 = arith.constant 0 : index
    %c0_85 = arith.constant 0 : index
    %c0_86 = arith.constant 0 : index
    %172 = vector.load %arg15[%c0_84, %c0_85, %c0_86] : memref<2x512x128xbf16, #tpu.memory_space<vmem>>, vector<1x512x128xbf16>
    %173 = vector.shape_cast %172 : vector<1x512x128xbf16> to vector<512x128xbf16>
    %cst_87 = arith.constant dense<0.000000e+00> : vector<32x128xf32>
    %174 = tpu.matmul %171, %173, %cst_87 {dimension_numbers = #tpu.dot_dimension_numbers<[1], [0], [0], [1], [0, 0, 1, 1], [], []>} : vector<32x512xbf16>, vector<512x128xbf16>, vector<32x128xf32> -> vector<32x128xf32>
    %175 = arith.addf %123, %174 : vector<32x128xf32>
    %c0_88 = arith.constant 0 : index
    %c0_89 = arith.constant 0 : index
    %c0_90 = arith.constant 0 : index
    %176 = vector.load %arg16[%c0_88, %c0_89, %c0_90] : memref<2x1x128xf32, #tpu.memory_space<vmem>>, vector<1x1x128xf32>
    %177 = vector.shape_cast %176 : vector<1x1x128xf32> to vector<1x128xf32>
    %178 = vector.broadcast %177 : vector<1x128xf32> to vector<32x128xf32>
    %179 = arith.addf %175, %178 : vector<32x128xf32>
    %c1_91 = arith.constant 1 : index
    %c0_92 = arith.constant 0 : index
    %c0_93 = arith.constant 0 : index
    %180 = vector.load %arg5[%c1_91, %c0_92, %c0_93] : memref<2x1x128xf32, #tpu.memory_space<vmem>>, vector<1x1x128xf32>
    %181 = vector.shape_cast %180 : vector<1x1x128xf32> to vector<1x128xf32>
    %c1_94 = arith.constant 1 : index
    %c0_95 = arith.constant 0 : index
    %c0_96 = arith.constant 0 : index
    %182 = vector.load %arg6[%c1_94, %c0_95, %c0_96] : memref<2x1x128xf32, #tpu.memory_space<vmem>>, vector<1x1x128xf32>
    %183 = vector.shape_cast %182 : vector<1x1x128xf32> to vector<1x128xf32>
    %cst_97 = arith.constant dense<0.000000e+00> : vector<32xf32>
    %184 = vector.multi_reduction <add>, %179, %cst_97 [1] : vector<32x128xf32> to vector<32xf32>
    %185 = vector.shape_cast %184 : vector<32xf32> to vector<32x1xf32>
    %cst_98 = arith.constant 1.280000e+02 : f32
    %186 = vector.broadcast %cst_98 : f32 to vector<32x1xf32>
    %187 = arith.divf %185, %186 : vector<32x1xf32>
    %188 = vector.broadcast %187 : vector<32x1xf32> to vector<32x128xf32>
    %189 = arith.subf %179, %188 : vector<32x128xf32>
    %190 = arith.mulf %189, %189 : vector<32x128xf32>
    %cst_99 = arith.constant dense<0.000000e+00> : vector<32xf32>
    %191 = vector.multi_reduction <add>, %190, %cst_99 [1] : vector<32x128xf32> to vector<32xf32>
    %192 = vector.shape_cast %191 : vector<32xf32> to vector<32x1xf32>
    %cst_100 = arith.constant 1.280000e+02 : f32
    %193 = vector.broadcast %cst_100 : f32 to vector<32x1xf32>
    %194 = arith.divf %192, %193 : vector<32x1xf32>
    %195 = vector.broadcast %187 : vector<32x1xf32> to vector<32x128xf32>
    %196 = arith.subf %179, %195 : vector<32x128xf32>
    %cst_101 = arith.constant 9.99999974E-6 : f32
    %197 = vector.broadcast %cst_101 : f32 to vector<32x1xf32>
    %198 = arith.addf %194, %197 : vector<32x1xf32>
    %199 = math.rsqrt %198 : vector<32x1xf32>
    %200 = vector.broadcast %199 : vector<32x1xf32> to vector<32x128xf32>
    %201 = arith.mulf %196, %200 : vector<32x128xf32>
    %202 = vector.broadcast %181 : vector<1x128xf32> to vector<32x128xf32>
    %203 = arith.mulf %201, %202 : vector<32x128xf32>
    %204 = vector.broadcast %183 : vector<1x128xf32> to vector<32x128xf32>
    %205 = arith.addf %203, %204 : vector<32x128xf32>
    %206 = arith.truncf %205 : vector<32x128xf32> to vector<32x128xbf16>
    %c1_102 = arith.constant 1 : index
    %c0_103 = arith.constant 0 : index
    %c0_104 = arith.constant 0 : index
    %207 = vector.load %arg7[%c1_102, %c0_103, %c0_104] : memref<2x128x384xbf16, #tpu.memory_space<vmem>>, vector<1x128x384xbf16>
    %208 = vector.shape_cast %207 : vector<1x128x384xbf16> to vector<128x384xbf16>
    %cst_105 = arith.constant dense<0.000000e+00> : vector<32x384xf32>
    %209 = tpu.matmul %206, %208, %cst_105 {dimension_numbers = #tpu.dot_dimension_numbers<[1], [0], [0], [1], [0, 0, 1, 1], [], []>} : vector<32x128xbf16>, vector<128x384xbf16>, vector<32x384xf32> -> vector<32x384xf32>
    %c1_106 = arith.constant 1 : index
    %c0_107 = arith.constant 0 : index
    %c0_108 = arith.constant 0 : index
    %210 = vector.load %arg8[%c1_106, %c0_107, %c0_108] : memref<2x1x384xf32, #tpu.memory_space<vmem>>, vector<1x1x384xf32>
    %211 = vector.shape_cast %210 : vector<1x1x384xf32> to vector<1x384xf32>
    %212 = vector.broadcast %211 : vector<1x384xf32> to vector<32x384xf32>
    %213 = arith.addf %209, %212 : vector<32x384xf32>
    %214 = vector.extract_strided_slice %213 {offsets = [0, 0], sizes = [32, 128], strides = [1, 1]} : vector<32x384xf32> to vector<32x128xf32>
    %215 = vector.extract_strided_slice %213 {offsets = [0, 128], sizes = [32, 256], strides = [1, 1]} : vector<32x384xf32> to vector<32x256xf32>
    %216 = vector.extract_strided_slice %214 {offsets = [0, 0], sizes = [16, 128], strides = [1, 1]} : vector<32x128xf32> to vector<16x128xf32>
    %217 = vector.extract_strided_slice %215 {offsets = [0, 0], sizes = [16, 256], strides = [1, 1]} : vector<32x256xf32> to vector<16x256xf32>
    %c0_109 = arith.constant 0 : index
    %c0_110 = arith.constant 0 : index
    %c0_111 = arith.constant 0 : index
    %218 = vector.load %arg3[%c0_109, %c0_110, %c0_111] : memref<4x1x256xf32, #tpu.memory_space<vmem>>, vector<1x1x256xf32>
    %219 = vector.shape_cast %218 : vector<1x1x256xf32> to vector<1x256xf32>
    %220 = vector.broadcast %219 : vector<1x256xf32> to vector<16x256xf32>
    %221 = arith.mulf %217, %220 : vector<16x256xf32>
    %c1_112 = arith.constant 1 : index
    %c0_113 = arith.constant 0 : index
    %c0_114 = arith.constant 0 : index
    %222 = vector.load %arg3[%c1_112, %c0_113, %c0_114] : memref<4x1x256xf32, #tpu.memory_space<vmem>>, vector<1x1x256xf32>
    %223 = vector.shape_cast %222 : vector<1x1x256xf32> to vector<1x256xf32>
    %224 = vector.broadcast %223 : vector<1x256xf32> to vector<16x256xf32>
    %225 = arith.mulf %217, %224 : vector<16x256xf32>
    %c2_115 = arith.constant 2 : index
    %c0_116 = arith.constant 0 : index
    %c0_117 = arith.constant 0 : index
    %226 = vector.load %arg3[%c2_115, %c0_116, %c0_117] : memref<4x1x256xf32, #tpu.memory_space<vmem>>, vector<1x1x256xf32>
    %227 = vector.shape_cast %226 : vector<1x1x256xf32> to vector<1x256xf32>
    %228 = vector.broadcast %227 : vector<1x256xf32> to vector<16x256xf32>
    %229 = arith.mulf %217, %228 : vector<16x256xf32>
    %c3_118 = arith.constant 3 : index
    %c0_119 = arith.constant 0 : index
    %c0_120 = arith.constant 0 : index
    %230 = vector.load %arg3[%c3_118, %c0_119, %c0_120] : memref<4x1x256xf32, #tpu.memory_space<vmem>>, vector<1x1x256xf32>
    %231 = vector.shape_cast %230 : vector<1x1x256xf32> to vector<1x256xf32>
    %232 = vector.broadcast %231 : vector<1x256xf32> to vector<16x256xf32>
    %233 = arith.mulf %217, %232 : vector<16x256xf32>
    %234 = tpu.concatenate %221, %225, %229, %233 in 0 : vector<16x256xf32>, vector<16x256xf32>, vector<16x256xf32>, vector<16x256xf32> -> vector<64x256xf32>
    %235 = vector.extract_strided_slice %234 {offsets = [0, 0], sizes = [64, 128], strides = [1, 1]} : vector<64x256xf32> to vector<64x128xf32>
    %236 = vector.extract_strided_slice %234 {offsets = [0, 128], sizes = [64, 128], strides = [1, 1]} : vector<64x256xf32> to vector<64x128xf32>
    %237 = arith.truncf %216 : vector<16x128xf32> to vector<16x128xbf16>
    %238 = arith.truncf %235 : vector<64x128xf32> to vector<64x128xbf16>
    %cst_121 = arith.constant dense<0.000000e+00> : vector<16x64xf32>
    %239 = tpu.matmul %237, %238, %cst_121 {dimension_numbers = #tpu.dot_dimension_numbers<[1], [1], [0], [0], [0, 0, 1, 0], [], []>} : vector<16x128xbf16>, vector<64x128xbf16>, vector<16x64xf32> -> vector<16x64xf32>
    %c0_122 = arith.constant 0 : index
    %c0_123 = arith.constant 0 : index
    %c0_124 = arith.constant 0 : index
    %240 = vector.load %arg2[%c0_122, %c0_123, %c0_124] : memref<2x16x64xf32, #tpu.memory_space<vmem>>, vector<1x16x64xf32>
    %241 = vector.shape_cast %240 : vector<1x16x64xf32> to vector<16x64xf32>
    %242 = arith.addf %239, %241 : vector<16x64xf32>
    %cst_125 = arith.constant dense<0xFF800000> : vector<16xf32>
    %243 = vector.multi_reduction <maximumf>, %242, %cst_125 [1] : vector<16x64xf32> to vector<16xf32>
    %244 = vector.shape_cast %243 : vector<16xf32> to vector<16x1xf32>
    %245 = vector.broadcast %244 : vector<16x1xf32> to vector<16x64xf32>
    %246 = arith.subf %242, %245 : vector<16x64xf32>
    %247 = math.exp %246 : vector<16x64xf32>
    %cst_126 = arith.constant dense<0.000000e+00> : vector<16x64xf32>
    %248 = tpu.matmul %247, %1, %cst_126 {dimension_numbers = #tpu.dot_dimension_numbers<[1], [0], [0], [1], [0, 0, 1, 1], [], []>} : vector<16x64xf32>, vector<64x64xf32>, vector<16x64xf32> -> vector<16x64xf32>
    %249 = tpu.reciprocal %248 {approx = true} : vector<16x64xf32> -> vector<16x64xf32>
    %250 = arith.mulf %247, %249 : vector<16x64xf32>
    %251 = arith.truncf %250 : vector<16x64xf32> to vector<16x64xbf16>
    %252 = arith.truncf %236 : vector<64x128xf32> to vector<64x128xbf16>
    %cst_127 = arith.constant dense<0.000000e+00> : vector<16x128xf32>
    %253 = tpu.matmul %251, %252, %cst_127 {dimension_numbers = #tpu.dot_dimension_numbers<[1], [0], [0], [1], [0, 0, 1, 1], [], []>} : vector<16x64xbf16>, vector<64x128xbf16>, vector<16x128xf32> -> vector<16x128xf32>
    %254 = vector.extract_strided_slice %214 {offsets = [16, 0], sizes = [16, 128], strides = [1, 1]} : vector<32x128xf32> to vector<16x128xf32>
    %255 = vector.extract_strided_slice %215 {offsets = [16, 0], sizes = [16, 256], strides = [1, 1]} : vector<32x256xf32> to vector<16x256xf32>
    %c0_128 = arith.constant 0 : index
    %c0_129 = arith.constant 0 : index
    %c0_130 = arith.constant 0 : index
    %256 = vector.load %arg3[%c0_128, %c0_129, %c0_130] : memref<4x1x256xf32, #tpu.memory_space<vmem>>, vector<1x1x256xf32>
    %257 = vector.shape_cast %256 : vector<1x1x256xf32> to vector<1x256xf32>
    %258 = vector.broadcast %257 : vector<1x256xf32> to vector<16x256xf32>
    %259 = arith.mulf %255, %258 : vector<16x256xf32>
    %c1_131 = arith.constant 1 : index
    %c0_132 = arith.constant 0 : index
    %c0_133 = arith.constant 0 : index
    %260 = vector.load %arg3[%c1_131, %c0_132, %c0_133] : memref<4x1x256xf32, #tpu.memory_space<vmem>>, vector<1x1x256xf32>
    %261 = vector.shape_cast %260 : vector<1x1x256xf32> to vector<1x256xf32>
    %262 = vector.broadcast %261 : vector<1x256xf32> to vector<16x256xf32>
    %263 = arith.mulf %255, %262 : vector<16x256xf32>
    %c2_134 = arith.constant 2 : index
    %c0_135 = arith.constant 0 : index
    %c0_136 = arith.constant 0 : index
    %264 = vector.load %arg3[%c2_134, %c0_135, %c0_136] : memref<4x1x256xf32, #tpu.memory_space<vmem>>, vector<1x1x256xf32>
    %265 = vector.shape_cast %264 : vector<1x1x256xf32> to vector<1x256xf32>
    %266 = vector.broadcast %265 : vector<1x256xf32> to vector<16x256xf32>
    %267 = arith.mulf %255, %266 : vector<16x256xf32>
    %c3_137 = arith.constant 3 : index
    %c0_138 = arith.constant 0 : index
    %c0_139 = arith.constant 0 : index
    %268 = vector.load %arg3[%c3_137, %c0_138, %c0_139] : memref<4x1x256xf32, #tpu.memory_space<vmem>>, vector<1x1x256xf32>
    %269 = vector.shape_cast %268 : vector<1x1x256xf32> to vector<1x256xf32>
    %270 = vector.broadcast %269 : vector<1x256xf32> to vector<16x256xf32>
    %271 = arith.mulf %255, %270 : vector<16x256xf32>
    %272 = tpu.concatenate %259, %263, %267, %271 in 0 : vector<16x256xf32>, vector<16x256xf32>, vector<16x256xf32>, vector<16x256xf32> -> vector<64x256xf32>
    %273 = vector.extract_strided_slice %272 {offsets = [0, 0], sizes = [64, 128], strides = [1, 1]} : vector<64x256xf32> to vector<64x128xf32>
    %274 = vector.extract_strided_slice %272 {offsets = [0, 128], sizes = [64, 128], strides = [1, 1]} : vector<64x256xf32> to vector<64x128xf32>
    %275 = arith.truncf %254 : vector<16x128xf32> to vector<16x128xbf16>
    %276 = arith.truncf %273 : vector<64x128xf32> to vector<64x128xbf16>
    %cst_140 = arith.constant dense<0.000000e+00> : vector<16x64xf32>
    %277 = tpu.matmul %275, %276, %cst_140 {dimension_numbers = #tpu.dot_dimension_numbers<[1], [1], [0], [0], [0, 0, 1, 0], [], []>} : vector<16x128xbf16>, vector<64x128xbf16>, vector<16x64xf32> -> vector<16x64xf32>
    %c1_141 = arith.constant 1 : index
    %c0_142 = arith.constant 0 : index
    %c0_143 = arith.constant 0 : index
    %278 = vector.load %arg2[%c1_141, %c0_142, %c0_143] : memref<2x16x64xf32, #tpu.memory_space<vmem>>, vector<1x16x64xf32>
    %279 = vector.shape_cast %278 : vector<1x16x64xf32> to vector<16x64xf32>
    %280 = arith.addf %277, %279 : vector<16x64xf32>
    %cst_144 = arith.constant dense<0xFF800000> : vector<16xf32>
    %281 = vector.multi_reduction <maximumf>, %280, %cst_144 [1] : vector<16x64xf32> to vector<16xf32>
    %282 = vector.shape_cast %281 : vector<16xf32> to vector<16x1xf32>
    %283 = vector.broadcast %282 : vector<16x1xf32> to vector<16x64xf32>
    %284 = arith.subf %280, %283 : vector<16x64xf32>
    %285 = math.exp %284 : vector<16x64xf32>
    %cst_145 = arith.constant dense<0.000000e+00> : vector<16x64xf32>
    %286 = tpu.matmul %285, %1, %cst_145 {dimension_numbers = #tpu.dot_dimension_numbers<[1], [0], [0], [1], [0, 0, 1, 1], [], []>} : vector<16x64xf32>, vector<64x64xf32>, vector<16x64xf32> -> vector<16x64xf32>
    %287 = tpu.reciprocal %286 {approx = true} : vector<16x64xf32> -> vector<16x64xf32>
    %288 = arith.mulf %285, %287 : vector<16x64xf32>
    %289 = arith.truncf %288 : vector<16x64xf32> to vector<16x64xbf16>
    %290 = arith.truncf %274 : vector<64x128xf32> to vector<64x128xbf16>
    %cst_146 = arith.constant dense<0.000000e+00> : vector<16x128xf32>
    %291 = tpu.matmul %289, %290, %cst_146 {dimension_numbers = #tpu.dot_dimension_numbers<[1], [0], [0], [1], [0, 0, 1, 1], [], []>} : vector<16x64xbf16>, vector<64x128xbf16>, vector<16x128xf32> -> vector<16x128xf32>
    %292 = tpu.concatenate %253, %291 in 0 : vector<16x128xf32>, vector<16x128xf32> -> vector<32x128xf32>
    %293 = arith.truncf %292 : vector<32x128xf32> to vector<32x128xbf16>
    %c1_147 = arith.constant 1 : index
    %c0_148 = arith.constant 0 : index
    %c0_149 = arith.constant 0 : index
    %294 = vector.load %arg9[%c1_147, %c0_148, %c0_149] : memref<2x128x128xbf16, #tpu.memory_space<vmem>>, vector<1x128x128xbf16>
    %295 = vector.shape_cast %294 : vector<1x128x128xbf16> to vector<128x128xbf16>
    %cst_150 = arith.constant dense<0.000000e+00> : vector<32x128xf32>
    %296 = tpu.matmul %293, %295, %cst_150 {dimension_numbers = #tpu.dot_dimension_numbers<[1], [0], [0], [1], [0, 0, 1, 1], [], []>} : vector<32x128xbf16>, vector<128x128xbf16>, vector<32x128xf32> -> vector<32x128xf32>
    %c1_151 = arith.constant 1 : index
    %c0_152 = arith.constant 0 : index
    %c0_153 = arith.constant 0 : index
    %297 = vector.load %arg10[%c1_151, %c0_152, %c0_153] : memref<2x1x128xf32, #tpu.memory_space<vmem>>, vector<1x1x128xf32>
    %298 = vector.shape_cast %297 : vector<1x1x128xf32> to vector<1x128xf32>
    %299 = vector.broadcast %298 : vector<1x128xf32> to vector<32x128xf32>
    %300 = arith.addf %296, %299 : vector<32x128xf32>
    %301 = arith.addf %179, %300 : vector<32x128xf32>
    %c1_154 = arith.constant 1 : index
    %c0_155 = arith.constant 0 : index
    %c0_156 = arith.constant 0 : index
    %302 = vector.load %arg11[%c1_154, %c0_155, %c0_156] : memref<2x1x128xf32, #tpu.memory_space<vmem>>, vector<1x1x128xf32>
    %303 = vector.shape_cast %302 : vector<1x1x128xf32> to vector<1x128xf32>
    %c1_157 = arith.constant 1 : index
    %c0_158 = arith.constant 0 : index
    %c0_159 = arith.constant 0 : index
    %304 = vector.load %arg12[%c1_157, %c0_158, %c0_159] : memref<2x1x128xf32, #tpu.memory_space<vmem>>, vector<1x1x128xf32>
    %305 = vector.shape_cast %304 : vector<1x1x128xf32> to vector<1x128xf32>
    %cst_160 = arith.constant dense<0.000000e+00> : vector<32xf32>
    %306 = vector.multi_reduction <add>, %301, %cst_160 [1] : vector<32x128xf32> to vector<32xf32>
    %307 = vector.shape_cast %306 : vector<32xf32> to vector<32x1xf32>
    %cst_161 = arith.constant 1.280000e+02 : f32
    %308 = vector.broadcast %cst_161 : f32 to vector<32x1xf32>
    %309 = arith.divf %307, %308 : vector<32x1xf32>
    %310 = vector.broadcast %309 : vector<32x1xf32> to vector<32x128xf32>
    %311 = arith.subf %301, %310 : vector<32x128xf32>
    %312 = arith.mulf %311, %311 : vector<32x128xf32>
    %cst_162 = arith.constant dense<0.000000e+00> : vector<32xf32>
    %313 = vector.multi_reduction <add>, %312, %cst_162 [1] : vector<32x128xf32> to vector<32xf32>
    %314 = vector.shape_cast %313 : vector<32xf32> to vector<32x1xf32>
    %cst_163 = arith.constant 1.280000e+02 : f32
    %315 = vector.broadcast %cst_163 : f32 to vector<32x1xf32>
    %316 = arith.divf %314, %315 : vector<32x1xf32>
    %317 = vector.broadcast %309 : vector<32x1xf32> to vector<32x128xf32>
    %318 = arith.subf %301, %317 : vector<32x128xf32>
    %cst_164 = arith.constant 9.99999974E-6 : f32
    %319 = vector.broadcast %cst_164 : f32 to vector<32x1xf32>
    %320 = arith.addf %316, %319 : vector<32x1xf32>
    %321 = math.rsqrt %320 : vector<32x1xf32>
    %322 = vector.broadcast %321 : vector<32x1xf32> to vector<32x128xf32>
    %323 = arith.mulf %318, %322 : vector<32x128xf32>
    %324 = vector.broadcast %303 : vector<1x128xf32> to vector<32x128xf32>
    %325 = arith.mulf %323, %324 : vector<32x128xf32>
    %326 = vector.broadcast %305 : vector<1x128xf32> to vector<32x128xf32>
    %327 = arith.addf %325, %326 : vector<32x128xf32>
    %328 = arith.truncf %327 : vector<32x128xf32> to vector<32x128xbf16>
    %c1_165 = arith.constant 1 : index
    %c0_166 = arith.constant 0 : index
    %c0_167 = arith.constant 0 : index
    %329 = vector.load %arg13[%c1_165, %c0_166, %c0_167] : memref<2x128x512xbf16, #tpu.memory_space<vmem>>, vector<1x128x512xbf16>
    %330 = vector.shape_cast %329 : vector<1x128x512xbf16> to vector<128x512xbf16>
    %cst_168 = arith.constant dense<0.000000e+00> : vector<32x512xf32>
    %331 = tpu.matmul %328, %330, %cst_168 {dimension_numbers = #tpu.dot_dimension_numbers<[1], [0], [0], [1], [0, 0, 1, 1], [], []>} : vector<32x128xbf16>, vector<128x512xbf16>, vector<32x512xf32> -> vector<32x512xf32>
    %c1_169 = arith.constant 1 : index
    %c0_170 = arith.constant 0 : index
    %c0_171 = arith.constant 0 : index
    %332 = vector.load %arg14[%c1_169, %c0_170, %c0_171] : memref<2x1x512xf32, #tpu.memory_space<vmem>>, vector<1x1x512xf32>
    %333 = vector.shape_cast %332 : vector<1x1x512xf32> to vector<1x512xf32>
    %334 = vector.broadcast %333 : vector<1x512xf32> to vector<32x512xf32>
    %335 = arith.addf %331, %334 : vector<32x512xf32>
    %336 = arith.mulf %335, %335 : vector<32x512xf32>
    %337 = arith.mulf %335, %336 : vector<32x512xf32>
    %cst_172 = arith.constant 4.471500e-02 : f32
    %338 = vector.broadcast %cst_172 : f32 to vector<32x512xf32>
    %339 = arith.mulf %338, %337 : vector<32x512xf32>
    %340 = arith.addf %335, %339 : vector<32x512xf32>
    %cst_173 = arith.constant 0.797884583 : f32
    %341 = vector.broadcast %cst_173 : f32 to vector<32x512xf32>
    %342 = arith.mulf %341, %340 : vector<32x512xf32>
    %343 = math.tanh %342 : vector<32x512xf32>
    %cst_174 = arith.constant 1.000000e+00 : f32
    %344 = vector.broadcast %cst_174 : f32 to vector<32x512xf32>
    %345 = arith.addf %344, %343 : vector<32x512xf32>
    %cst_175 = arith.constant 5.000000e-01 : f32
    %346 = vector.broadcast %cst_175 : f32 to vector<32x512xf32>
    %347 = arith.mulf %346, %345 : vector<32x512xf32>
    %348 = arith.mulf %335, %347 : vector<32x512xf32>
    %349 = arith.truncf %348 : vector<32x512xf32> to vector<32x512xbf16>
    %c1_176 = arith.constant 1 : index
    %c0_177 = arith.constant 0 : index
    %c0_178 = arith.constant 0 : index
    %350 = vector.load %arg15[%c1_176, %c0_177, %c0_178] : memref<2x512x128xbf16, #tpu.memory_space<vmem>>, vector<1x512x128xbf16>
    %351 = vector.shape_cast %350 : vector<1x512x128xbf16> to vector<512x128xbf16>
    %cst_179 = arith.constant dense<0.000000e+00> : vector<32x128xf32>
    %352 = tpu.matmul %349, %351, %cst_179 {dimension_numbers = #tpu.dot_dimension_numbers<[1], [0], [0], [1], [0, 0, 1, 1], [], []>} : vector<32x512xbf16>, vector<512x128xbf16>, vector<32x128xf32> -> vector<32x128xf32>
    %353 = arith.addf %301, %352 : vector<32x128xf32>
    %c1_180 = arith.constant 1 : index
    %c0_181 = arith.constant 0 : index
    %c0_182 = arith.constant 0 : index
    %354 = vector.load %arg16[%c1_180, %c0_181, %c0_182] : memref<2x1x128xf32, #tpu.memory_space<vmem>>, vector<1x1x128xf32>
    %355 = vector.shape_cast %354 : vector<1x1x128xf32> to vector<1x128xf32>
    %356 = vector.broadcast %355 : vector<1x128xf32> to vector<32x128xf32>
    %357 = arith.addf %353, %356 : vector<32x128xf32>
    %c0_183 = arith.constant 0 : index
    %c0_184 = arith.constant 0 : index
    %358 = vector.load %arg17[%c0_183, %c0_184] : memref<1x128xf32, #tpu.memory_space<vmem>>, vector<1x128xf32>
    %c0_185 = arith.constant 0 : index
    %c0_186 = arith.constant 0 : index
    %359 = vector.load %arg18[%c0_185, %c0_186] : memref<1x128xf32, #tpu.memory_space<vmem>>, vector<1x128xf32>
    %cst_187 = arith.constant dense<0.000000e+00> : vector<32xf32>
    %360 = vector.multi_reduction <add>, %357, %cst_187 [1] : vector<32x128xf32> to vector<32xf32>
    %361 = vector.shape_cast %360 : vector<32xf32> to vector<32x1xf32>
    %cst_188 = arith.constant 1.280000e+02 : f32
    %362 = vector.broadcast %cst_188 : f32 to vector<32x1xf32>
    %363 = arith.divf %361, %362 : vector<32x1xf32>
    %364 = vector.broadcast %363 : vector<32x1xf32> to vector<32x128xf32>
    %365 = arith.subf %357, %364 : vector<32x128xf32>
    %366 = arith.mulf %365, %365 : vector<32x128xf32>
    %cst_189 = arith.constant dense<0.000000e+00> : vector<32xf32>
    %367 = vector.multi_reduction <add>, %366, %cst_189 [1] : vector<32x128xf32> to vector<32xf32>
    %368 = vector.shape_cast %367 : vector<32xf32> to vector<32x1xf32>
    %cst_190 = arith.constant 1.280000e+02 : f32
    %369 = vector.broadcast %cst_190 : f32 to vector<32x1xf32>
    %370 = arith.divf %368, %369 : vector<32x1xf32>
    %371 = vector.broadcast %363 : vector<32x1xf32> to vector<32x128xf32>
    %372 = arith.subf %357, %371 : vector<32x128xf32>
    %cst_191 = arith.constant 9.99999974E-6 : f32
    %373 = vector.broadcast %cst_191 : f32 to vector<32x1xf32>
    %374 = arith.addf %370, %373 : vector<32x1xf32>
    %375 = math.rsqrt %374 : vector<32x1xf32>
    %376 = vector.broadcast %375 : vector<32x1xf32> to vector<32x128xf32>
    %377 = arith.mulf %372, %376 : vector<32x128xf32>
    %378 = vector.broadcast %358 : vector<1x128xf32> to vector<32x128xf32>
    %379 = arith.mulf %377, %378 : vector<32x128xf32>
    %380 = vector.broadcast %359 : vector<1x128xf32> to vector<32x128xf32>
    %381 = arith.addf %379, %380 : vector<32x128xf32>
    %382 = arith.truncf %381 : vector<32x128xf32> to vector<32x128xbf16>
    %c0_192 = arith.constant 0 : index
    %c0_193 = arith.constant 0 : index
    %383 = vector.load %arg19[%c0_192, %c0_193] : memref<128x256xbf16, #tpu.memory_space<vmem>>, vector<128x256xbf16>
    %cst_194 = arith.constant dense<0.000000e+00> : vector<32x256xf32>
    %384 = tpu.matmul %382, %383, %cst_194 {dimension_numbers = #tpu.dot_dimension_numbers<[1], [0], [0], [1], [0, 0, 1, 1], [], []>} : vector<32x128xbf16>, vector<128x256xbf16>, vector<32x256xf32> -> vector<32x256xf32>
    %c0_195 = arith.constant 0 : index
    %c0_196 = arith.constant 0 : index
    %385 = vector.load %arg20[%c0_195, %c0_196] : memref<32x256xf32, #tpu.memory_space<vmem>>, vector<32x256xf32>
    tpu.vector_store %arg20[%c0_195, %c0_196], %384 {strides = array<i32>} : memref<32x256xf32, #tpu.memory_space<vmem>>, vector<32x256xf32>,
    return
  }
  func.func @transform_0(%arg0: i32) -> (i32, i32) {
    %c0_i32 = arith.constant 0 : i32
    %c0_i32_0 = arith.constant 0 : i32
    %c0_i32_1 = arith.constant 0 : i32
    return %c0_i32, %c0_i32_0 : i32, i32
  }
  func.func @transform_1(%arg0: i32) -> (i32, i32, i32) {
    %c0_i32 = arith.constant 0 : i32
    %c0_i32_0 = arith.constant 0 : i32
    %c0_i32_1 = arith.constant 0 : i32
    %c0_i32_2 = arith.constant 0 : i32
    return %c0_i32, %c0_i32_0, %c0_i32_1 : i32, i32, i32
  }
  func.func @transform_2(%arg0: i32) -> (i32, i32, i32) {
    %c0_i32 = arith.constant 0 : i32
    %c0_i32_0 = arith.constant 0 : i32
    %c0_i32_1 = arith.constant 0 : i32
    %c0_i32_2 = arith.constant 0 : i32
    return %c0_i32, %c0_i32_0, %c0_i32_1 : i32, i32, i32
  }
  func.func @transform_3(%arg0: i32) -> (i32, i32) {
    %c0_i32 = arith.constant 0 : i32
    %c0_i32_0 = arith.constant 0 : i32
    %c0_i32_1 = arith.constant 0 : i32
    return %c0_i32, %c0_i32_0 : i32, i32
  }
  func.func @transform_4(%arg0: i32) -> (i32, i32, i32) {
    %c0_i32 = arith.constant 0 : i32
    %c0_i32_0 = arith.constant 0 : i32
    %c0_i32_1 = arith.constant 0 : i32
    %c0_i32_2 = arith.constant 0 : i32
    return %c0_i32, %c0_i32_0, %c0_i32_1 : i32, i32, i32
  }
  func.func @transform_5(%arg0: i32) -> (i32, i32, i32) {
    %c0_i32 = arith.constant 0 : i32
    %c0_i32_0 = arith.constant 0 : i32
    %c0_i32_1 = arith.constant 0 : i32
    %c0_i32_2 = arith.constant 0 : i32
    return %c0_i32, %c0_i32_0, %c0_i32_1 : i32, i32, i32
  }
  func.func @transform_6(%arg0: i32) -> (i32, i32, i32) {
    %c0_i32 = arith.constant 0 : i32
    %c0_i32_0 = arith.constant 0 : i32
    %c0_i32_1 = arith.constant 0 : i32
    %c0_i32_2 = arith.constant 0 : i32
    return %c0_i32, %c0_i32_0, %c0_i32_1 : i32, i32, i32
  }
  func.func @transform_7(%arg0: i32) -> (i32, i32, i32) {
    %c0_i32 = arith.constant 0 : i32
    %c0_i32_0 = arith.constant 0 : i32
    %c0_i32_1 = arith.constant 0 : i32
    %c0_i32_2 = arith.constant 0 : i32
    return %c0_i32, %c0_i32_0, %c0_i32_1 : i32, i32, i32
  }
  func.func @transform_8(%arg0: i32) -> (i32, i32, i32) {
    %c0_i32 = arith.constant 0 : i32
    %c0_i32_0 = arith.constant 0 : i32
    %c0_i32_1 = arith.constant 0 : i32
    %c0_i32_2 = arith.constant 0 : i32
    return %c0_i32, %c0_i32_0, %c0_i32_1 : i32, i32, i32
  }
  func.func @transform_9(%arg0: i32) -> (i32, i32, i32) {
    %c0_i32 = arith.constant 0 : i32
    %c0_i32_0 = arith.constant 0 : i32
    %c0_i32_1 = arith.constant 0 : i32
    %c0_i32_2 = arith.constant 0 : i32
    return %c0_i32, %c0_i32_0, %c0_i32_1 : i32, i32, i32
  }
  func.func @transform_10(%arg0: i32) -> (i32, i32, i32) {
    %c0_i32 = arith.constant 0 : i32
    %c0_i32_0 = arith.constant 0 : i32
    %c0_i32_1 = arith.constant 0 : i32
    %c0_i32_2 = arith.constant 0 : i32
    return %c0_i32, %c0_i32_0, %c0_i32_1 : i32, i32, i32
  }
  func.func @transform_11(%arg0: i32) -> (i32, i32, i32) {
    %c0_i32 = arith.constant 0 : i32
    %c0_i32_0 = arith.constant 0 : i32
    %c0_i32_1 = arith.constant 0 : i32
    %c0_i32_2 = arith.constant 0 : i32
    return %c0_i32, %c0_i32_0, %c0_i32_1 : i32, i32, i32
  }
  func.func @transform_12(%arg0: i32) -> (i32, i32, i32) {
    %c0_i32 = arith.constant 0 : i32
    %c0_i32_0 = arith.constant 0 : i32
    %c0_i32_1 = arith.constant 0 : i32
    %c0_i32_2 = arith.constant 0 : i32
    return %c0_i32, %c0_i32_0, %c0_i32_1 : i32, i32, i32
  }
  func.func @transform_13(%arg0: i32) -> (i32, i32, i32) {
    %c0_i32 = arith.constant 0 : i32
    %c0_i32_0 = arith.constant 0 : i32
    %c0_i32_1 = arith.constant 0 : i32
    %c0_i32_2 = arith.constant 0 : i32
    return %c0_i32, %c0_i32_0, %c0_i32_1 : i32, i32, i32
  }
  func.func @transform_14(%arg0: i32) -> (i32, i32, i32) {
    %c0_i32 = arith.constant 0 : i32
    %c0_i32_0 = arith.constant 0 : i32
    %c0_i32_1 = arith.constant 0 : i32
    %c0_i32_2 = arith.constant 0 : i32
    return %c0_i32, %c0_i32_0, %c0_i32_1 : i32, i32, i32
  }
  func.func @transform_15(%arg0: i32) -> (i32, i32, i32) {
    %c0_i32 = arith.constant 0 : i32
    %c0_i32_0 = arith.constant 0 : i32
    %c0_i32_1 = arith.constant 0 : i32
    %c0_i32_2 = arith.constant 0 : i32
    return %c0_i32, %c0_i32_0, %c0_i32_1 : i32, i32, i32
  }
  func.func @transform_16(%arg0: i32) -> (i32, i32) {
    %c0_i32 = arith.constant 0 : i32
    %c0_i32_0 = arith.constant 0 : i32
    %c0_i32_1 = arith.constant 0 : i32
    return %c0_i32, %c0_i32_0 : i32, i32
  }
  func.func @transform_17(%arg0: i32) -> (i32, i32) {
    %c0_i32 = arith.constant 0 : i32
    %c0_i32_0 = arith.constant 0 : i32
    %c0_i32_1 = arith.constant 0 : i32
    return %c0_i32, %c0_i32_0 : i32, i32
  }
  func.func @transform_18(%arg0: i32) -> (i32, i32) {
    %c0_i32 = arith.constant 0 : i32
    %c0_i32_0 = arith.constant 0 : i32
    %c0_i32_1 = arith.constant 0 : i32
    return %c0_i32, %c0_i32_0 : i32, i32
  }
  func.func @transform_19(%arg0: i32) -> (i32, i32) {
    %c0_i32 = arith.constant 0 : i32
    %c0_i32_0 = arith.constant 0 : i32
    %c0_i32_1 = arith.constant 0 : i32
    return %c0_i32, %c0_i32_0 : i32, i32
  }
}

</mosaic_0001>

<bundles_post_ra>
// kernel: tile.9
= control target key start
LH: loop header
LB: loop body
LE: loop exit
PB: predicated region body
PF: predicated region fallthrough
CT: control target
= control target key end

     0   :  { %vm162_vm0 = vcmask 1047556   ;;  %s398_s10 = smov 48   ;;  %vm164_vm1 = vcmask 130048   ;;  %s400_s21 = smov 16   ;;  %vm201_vm2 = vcmask 523648   ;;  %vm244_vm3 = vcmask 392448   ;;  %s579_s0 = inlined_call_operand.vmem [shape: f32[2,16,4,16], index: 0, kind: input, shape index: {}]   ;;  %s580_s1 = inlined_call_operand.vmem [shape: f32[2,16,64], index: 1, kind: output, shape index: {}]  }
   0x1   :  { %v376_v0 = vld [vmem:[%s579_s0 + $0x1c] sm:$0xf]  ;;  %v377_v1 = vld [vmem:[%s579_s0 + $0x18] sm:$0xf]  ;;  %v378_v2 = vld [vmem:[%s579_s0 + $0x14] sm:$0xf] }
   0x2   :  { %128 = vst [vmem:[#allocation0 + $0x38] sm:$0xf] %v376_v0  ;;  %133 = vst [vmem:[#allocation0 + $0x30] sm:$0xf] %v377_v1  ;;  %v379_v3 = vld [vmem:[%s579_s0 + $0x10] sm:$0xf] }
   0x3   :  { %138 = vst [vmem:[#allocation0 + $0x28] sm:$0xf] %v378_v2  ;;  %v380_v4 = vld [vmem:[%s579_s0 + $0xc] sm:$0xf]  ;;  %v381_v5 = vld [vmem:[%s579_s0 + $0x8] sm:$0xf] }
   0x4   :  { %143 = vst [vmem:[#allocation0 + $0x20] sm:$0xf] %v379_v3  ;;  %148 = vst [vmem:[#allocation0 + $0x18] sm:$0xf] %v380_v4  ;;  %v382_v6 = vld [vmem:[%s579_s0 + $0x4] sm:$0xf] }
   0x5   :  { %153 = vst [vmem:[#allocation0 + $0x10] sm:$0xf] %v381_v5  ;;  %v158_v7 = vld [vmem:[%s579_s0] sm:$0xf]  ;;  %157 = vst [vmem:[#allocation0 + $0x8] sm:$0xf] %v382_v6 }
   0x6   :  { %159 = vst [vmem:[#allocation0] sm:$0xf] %v158_v7  ;;  %v360_v8 = vld [vmem:[%s579_s0 + $0x5c] sm:$0xf]  ;;  %v361_v9 = vld [vmem:[%s579_s0 + $0x58] sm:$0xf] }
   0x7   :  { %v362_v10 = vld [vmem:[%s579_s0 + $0x54] sm:$0xf]  ;;  %48 = vst [vmem:[#allocation0 + $0xb8] sm:$0xf] %v360_v8  ;;  %53 = vst [vmem:[#allocation0 + $0xb0] sm:$0xf] %v361_v9 }
   0x8   :  { %58 = vst [vmem:[#allocation0 + $0xa8] sm:$0xf] %v362_v10  ;;  %v363_v11 = vld [vmem:[%s579_s0 + $0x50] sm:$0xf]  ;;  %v364_v12 = vld [vmem:[%s579_s0 + $0x4c] sm:$0xf] }
   0x9   :  { %v365_v13 = vld [vmem:[%s579_s0 + $0x48] sm:$0xf]  ;;  %63 = vst [vmem:[#allocation0 + $0xa0] sm:$0xf] %v363_v11  ;;  %68 = vst [vmem:[#allocation0 + $0x98] sm:$0xf] %v364_v12 }
   0xa   :  { %73 = vst [vmem:[#allocation0 + $0x90] sm:$0xf] %v365_v13  ;;  %v366_v14 = vld [vmem:[%s579_s0 + $0x44] sm:$0xf]  ;;  %v367_v15 = vld [vmem:[%s579_s0 + $0x40] sm:$0xf] }
   0xb   :  { %v368_v16 = vld [vmem:[%s579_s0 + $0x3c] sm:$0xf]  ;;  %78 = vst [vmem:[#allocation0 + $0x88] sm:$0xf] %v366_v14  ;;  %83 = vst [vmem:[#allocation0 + $0x80] sm:$0xf] %v367_v15 }
   0xc   :  { %88 = vst [vmem:[#allocation0 + $0x78] sm:$0xf] %v368_v16  ;;  %v369_v17 = vld [vmem:[%s579_s0 + $0x38] sm:$0xf]  ;;  %v370_v18 = vld [vmem:[%s579_s0 + $0x34] sm:$0xf] }
   0xd   :  { %v371_v19 = vld [vmem:[%s579_s0 + $0x30] sm:$0xf]  ;;  %93 = vst [vmem:[#allocation0 + $0x70] sm:$0xf] %v369_v17  ;;  %98 = vst [vmem:[#allocation0 + $0x68] sm:$0xf] %v370_v18 }
   0xe   :  { %103 = vst [vmem:[#allocation0 + $0x60] sm:$0xf] %v371_v19  ;;  %v372_v20 = vld [vmem:[%s579_s0 + $0x2c] sm:$0xf]  ;;  %v373_v21 = vld [vmem:[%s579_s0 + $0x28] sm:$0xf] }
   0xf   :  { %v374_v22 = vld [vmem:[%s579_s0 + $0x24] sm:$0xf]  ;;  %108 = vst [vmem:[#allocation0 + $0x58] sm:$0xf] %v372_v20  ;;  %113 = vst [vmem:[#allocation0 + $0x50] sm:$0xf] %v373_v21 }
  0x10   :  { %118 = vst [vmem:[#allocation0 + $0x48] sm:$0xf] %v374_v22  ;;  %v375_v23 = vld [vmem:[%s579_s0 + $0x20] sm:$0xf]  ;;  %v352_v24 = vld [vmem:[%s579_s0 + $0x7c] sm:$0xf] }
  0x11   :  { %v353_v25 = vld [vmem:[%s579_s0 + $0x78] sm:$0xf]  ;;  %123 = vst [vmem:[#allocation0 + $0x40] sm:$0xf] %v375_v23  ;;  %8 = vst [vmem:[#allocation0 + $0xf8] sm:$0xf] %v352_v24 }
  0x12   :  { %v196_v26 = vld [vmem:[#allocation0 + $0x3] ss:$8 sm:$0xf0]   ;;  %13 = vst [vmem:[#allocation0 + $0xf0] sm:$0xf] %v353_v25  ;;  %vm287_vm4 = vcmask 261248  }
  0x13   :  { %v354_v27 = vld [vmem:[%s579_s0 + $0x74] sm:$0xf]  ;;  %v194_v28 = vld [vmem:[#allocation0 + $0x3] ss:$8 sm:$0xf]  }
  0x14   :  { %18 = vst [vmem:[#allocation0 + $0xe8] sm:$0xf] %v354_v27  ;;  %v355_v29 = vld [vmem:[%s579_s0 + $0x70] sm:$0xf]  ;;  %v198_v30 = vsel %vm162_vm0, %v196_v26, %v194_v28  ;;  %v356_v31 = vld [vmem:[%s579_s0 + $0x6c] sm:$0xf] }
  0x15   :  { %23 = vst [vmem:[#allocation0 + $0xe0] sm:$0xf] %v355_v29  ;;  %v357_v32 = vld [vmem:[%s579_s0 + $0x68] sm:$0xf]  ;;  %v358_v33 = vld [vmem:[%s579_s0 + $0x64] sm:$0xf]  ;;  %199 = vrot.lane.b32.xlu0 %v198_v30, %s398_s10 }
  0x16   :  { %v217_v34 = vld [vmem:[#allocation0 + $0x83] ss:$8 sm:$0xf0]   ;;  %28 = vst [vmem:[#allocation0 + $0xd8] sm:$0xf] %v356_v31 }
  0x17   :  { %33 = vst [vmem:[#allocation0 + $0xd0] sm:$0xf] %v357_v32  ;;  %38 = vst [vmem:[#allocation0 + $0xc8] sm:$0xf] %v358_v33  ;;  %v359_v35 = vld [vmem:[%s579_s0 + $0x60] sm:$0xf] }
  0x18   :  { %v215_v36 = vld [vmem:[#allocation0 + $0x83] ss:$8 sm:$0xf]   ;;  %43 = vst [vmem:[#allocation0 + $0xc0] sm:$0xf] %v359_v35  ;;  %s399_s0 = smov 32  }
  0x19   :  { %v219_v37 = vsel %vm162_vm0, %v217_v34, %v215_v36  ;;  %v206_v38 = vld [vmem:[#allocation0 + $0x43] ss:$8 sm:$0xf0]   ;;  %v237_v39 = vld [vmem:[#allocation0 + $0x2] ss:$8 sm:$0xf]  }
  0x1a   :  { %220 = vrot.lane.b32.xlu1 %v219_v37, %s398_s10  ;;  %v204_v40 = vld [vmem:[#allocation0 + $0x43] ss:$8 sm:$0xf]   ;;  %v239_v41 = vld [vmem:[#allocation0 + $0x2] ss:$8 sm:$0xf0]  }
  0x1b   :  { %v208_v42 = vsel %vm162_vm0, %v206_v38, %v204_v40  ;;  %v249_v44 = vld [vmem:[#allocation0 + $0x42] ss:$8 sm:$0xf0]   ;;  %v241_v45 = vsel %vm162_vm0, %v239_v41, %v237_v39  ;;  %v280_v52 = vld [vmem:[#allocation0 + $0x1] ss:$8 sm:$0xf]  }
  0x1c   :  { %209 = vrot.lane.b32.xlu0 %v208_v42, %s398_s10  ;;  %v228_v43 = vld [vmem:[#allocation0 + $0xc3] ss:$8 sm:$0xf0]   ;;  %v247_v46 = vld [vmem:[#allocation0 + $0x42] ss:$8 sm:$0xf]  }
  0x1d   :  { %v258_v47 = vld [vmem:[#allocation0 + $0x82] ss:$8 sm:$0xf]   ;;  %v251_v53 = vsel %vm162_vm0, %v249_v44, %v247_v46  ;;  %v282_v55 = vld [vmem:[#allocation0 + $0x1] ss:$8 sm:$0xf0]  }
  0x1e   :  { %v260_v49 = vld [vmem:[#allocation0 + $0x82] ss:$8 sm:$0xf0]   ;;  %v160_v56 = vld [vmem:[#allocation0] ss:$8 sm:$0xf]   ;;  %v284_v4 = vsel %vm162_vm0, %v282_v55, %v280_v52 }
  0x1f   :  { %v226_v48 = vld [vmem:[#allocation0 + $0xc3] ss:$8 sm:$0xf]   ;;  %v271_v51 = vld [vmem:[#allocation0 + $0xc2] ss:$8 sm:$0xf0]   ;;  %v262_v54 = vsel %vm162_vm0, %v260_v49, %v258_v47 }
  0x20   :  { %v230_v50 = vsel %vm162_vm0, %v228_v43, %v226_v48  ;;  %242 = vrot.lane.b32.xlu0 %v241_v45, %s399_s0  ;;  %v269_v57 = vld [vmem:[#allocation0 + $0xc2] ss:$8 sm:$0xf]   ;;  %v161_v58 = vld [vmem:[#allocation0] ss:$8 sm:$0xf0]  }
  0x21   :  { %231 = vrot.lane.b32.xlu1 %v230_v50, %s398_s10  ;;  %v163_v59 = vsel %vm162_vm0, %v161_v58, %v160_v56  ;;  %v176_v60 = vld [vmem:[#allocation0 + $0x80] ss:$8 sm:$0xf]   ;;  %v290_v62 = vld [vmem:[#allocation0 + $0x41] ss:$8 sm:$0xf]   ;;  %v273_v3 = vsel %vm162_vm0, %v271_v51, %v269_v57 }
  0x22   :  { %v178_v61 = vld [vmem:[#allocation0 + $0x80] ss:$8 sm:$0xf0]   ;;  %v292_v63 = vld [vmem:[#allocation0 + $0x41] ss:$8 sm:$0xf0]  }
  0x23   :  { %165 = vst.msk [vmem:[%s580_s1] sm:$0xff] %vm164_vm1, %v163_v59   ;;  %v180_v0 = vsel %vm162_vm0, %v178_v61, %v176_v60  ;;  %v167_v1 = vld [vmem:[#allocation0 + $0x40] ss:$8 sm:$0xf]   ;;  %v294_v11 = vsel %vm162_vm0, %v292_v63, %v290_v62 }
  0x24   :  { %263 = vrot.lane.b32.xlu0 %v262_v54, %s399_s0  ;;  %v169_v2 = vld [vmem:[#allocation0 + $0x40] ss:$8 sm:$0xf0]   ;;  %384 = vst.msk [vmem:[%s580_s1 + $0x10] sm:$0xff] %vm164_vm1, %v180_v0  }
  0x25   :  { %252 = vrot.lane.b32.xlu1 %v251_v53, %s399_s0  ;;  %v171_v5 = vsel %vm162_vm0, %v169_v2, %v167_v1  ;;  %v185_v6 = vld [vmem:[#allocation0 + $0xc0] ss:$8 sm:$0xf]   ;;  %v301_v8 = vld [vmem:[#allocation0 + $0x81] ss:$8 sm:$0xf]  }
  0x26   :  { %v187_v7 = vld [vmem:[#allocation0 + $0xc0] ss:$8 sm:$0xf0]   ;;  %v303_v9 = vld [vmem:[#allocation0 + $0x81] ss:$8 sm:$0xf0]  }
  0x27   :  { %383 = vst.msk [vmem:[%s580_s1 + $0x8] sm:$0xff] %vm164_vm1, %v171_v5   ;;  %v189_v10 = vsel %vm162_vm0, %v187_v7, %v185_v6  ;;  %v305_v12 = vsel %vm162_vm0, %v303_v9, %v301_v8  ;;  %v312_v13 = vld [vmem:[#allocation0 + $0xc1] ss:$8 sm:$0xf]  }
  0x28   :  { %385 = vst.msk [vmem:[%s580_s1 + $0x18] sm:$0xff] %vm164_vm1, %v189_v10   ;;  %285 = vrot.lane.b32.xlu0 %v284_v4, %s400_s21  ;;  %v314_v14 = vld [vmem:[#allocation0 + $0xc1] ss:$8 sm:$0xf0]  }
  0x29   :  { %274 = vrot.lane.b32.xlu1 %v273_v3, %s399_s0  ;;  %v316_v15 = vsel %vm162_vm0, %v314_v14, %v312_v13 }
  0x2c   :  { %306 = vrot.lane.b32.xlu0 %v305_v12, %s400_s21 }
  0x2d   :  { %295 = vrot.lane.b32.xlu1 %v294_v11, %s400_s21 }
  0x31   :  { %317 = vrot.lane.b32.xlu1 %v316_v15, %s400_s21 }
  0x87   :  { %v200_v16 = vpop.permute.xlu0 %199  }
  0x88   :  { %202 = vst.msk [vmem:[%s580_s1] sm:$0xff] %vm201_vm2, %v200_v16  }
  0x8c   :  { %v221_v17 = vpop.permute.xlu1 %220  }
  0x8d   :  { %387 = vst.msk [vmem:[%s580_s1 + $0x10] sm:$0xff] %vm201_vm2, %v221_v17  }
  0x8e   :  { %v210_v18 = vpop.permute.xlu0 %209  }
  0x8f   :  { %386 = vst.msk [vmem:[%s580_s1 + $0x8] sm:$0xff] %vm201_vm2, %v210_v18  }
  0x92   :  { %v243_v20 = vpop.permute.xlu0 %242  }
  0x93   :  { %v232_v19 = vpop.permute.xlu1 %231   ;;  %245 = vst.msk [vmem:[%s580_s1] sm:$0xff] %vm244_vm3, %v243_v20  }
  0x94   :  { %388 = vst.msk [vmem:[%s580_s1 + $0x18] sm:$0xff] %vm201_vm2, %v232_v19  }
  0x96   :  { %v264_v22 = vpop.permute.xlu0 %263  }
  0x97   :  { %v253_v21 = vpop.permute.xlu1 %252   ;;  %390 = vst.msk [vmem:[%s580_s1 + $0x10] sm:$0xff] %vm244_vm3, %v264_v22  }
  0x98   :  { %389 = vst.msk [vmem:[%s580_s1 + $0x8] sm:$0xff] %vm244_vm3, %v253_v21  }
  0x9a   :  { %v286_v24 = vpop.permute.xlu0 %285  }
  0x9b   :  { %v275_v23 = vpop.permute.xlu1 %274   ;;  %288 = vst.msk [vmem:[%s580_s1] sm:$0xff] %vm287_vm4, %v286_v24  }
  0x9c   :  { %391 = vst.msk [vmem:[%s580_s1 + $0x18] sm:$0xff] %vm244_vm3, %v275_v23  }
  0x9e   :  { %v307_v26 = vpop.permute.xlu0 %306  }
  0x9f   :  { %v296_v25 = vpop.permute.xlu1 %295   ;;  %393 = vst.msk [vmem:[%s580_s1 + $0x10] sm:$0xff] %vm287_vm4, %v307_v26  }
  0xa0   :  { %392 = vst.msk [vmem:[%s580_s1 + $0x8] sm:$0xff] %vm287_vm4, %v296_v25  }
  0xa3   :  { %v318_v27 = vpop.permute.xlu1 %317  }
  0xa4   :  { %394 = vst.msk [vmem:[%s580_s1 + $0x18] sm:$0xff] %vm287_vm4, %v318_v27  }

// kernel: fused_pipeline_gpt1d_forward.1
= control target key start
LH: loop header
LB: loop body
LE: loop exit
PB: predicated region body
PF: predicated region fallthrough
CT: control target
= control target key end

     0   :  { %s7023_s0 = inlined_call_operand.vmem [shape: f32[32,128], index: 0, kind: input, shape index: {}]   ;;  %s7024_s1 = inlined_call_operand.vmem [shape: f32[2,16,64], index: 1, kind: input, shape index: {}]   ;;  %s7025_s2 = inlined_call_operand.vmem [shape: f32[4,1,256], index: 2, kind: input, shape index: {}]   ;;  %s7026_s3 = inlined_call_operand.hbm [shape: f32[64,64], index: 3, kind: input, shape index: {}]   ;;  %s7027_s4 = inlined_call_operand.hbm [shape: f32[2,1,128], index: 4, kind: input, shape index: {}]   ;;  %s7028_s5 = inlined_call_operand.hbm [shape: f32[2,1,128], index: 5, kind: input, shape index: {}]   ;;  %s7029_s6 = inlined_call_operand.hbm [shape: bf16[2,128,384], index: 6, kind: input, shape index: {}]   ;;  %s7030_s7 = inlined_call_operand.vmem [shape: f32[2,1,384], index: 7, kind: input, shape index: {}]   ;;  %s7031_s8 = inlined_call_operand.vmem [shape: bf16[2,128,128], index: 8, kind: input, shape index: {}]   ;;  %s7032_s9 = inlined_call_operand.vmem [shape: f32[2,1,128], index: 9, kind: input, shape index: {}]   ;;  %s7033_s10 = inlined_call_operand.hbm [shape: f32[2,1,128], index: 10, kind: input, shape index: {}]   ;;  %s7034_s11 = inlined_call_operand.hbm [shape: f32[2,1,128], index: 11, kind: input, shape index: {}]   ;;  %s7035_s12 = inlined_call_operand.vmem [shape: bf16[2,128,512], index: 12, kind: input, shape index: {}]   ;;  %s7036_s13 = inlined_call_operand.vmem [shape: f32[2,1,512], index: 13, kind: input, shape index: {}]   ;;  %s7037_s14 = inlined_call_operand.hbm [shape: bf16[2,512,128], index: 14, kind: input, shape index: {}]   ;;  %s7038_s15 = inlined_call_operand.vmem [shape: f32[2,1,128], index: 15, kind: input, shape index: {}]   ;;  %s7039_s16 = inlined_call_operand.hbm [shape: f32[1,128], index: 16, kind: input, shape index: {}]   ;;  %s7040_s17 = inlined_call_operand.hbm [shape: f32[1,128], index: 17, kind: input, shape index: {}]   ;;  %s7041_s18 = inlined_call_operand.vmem [shape: bf16[128,256], index: 18, kind: input, shape index: {}]   ;;  %s7042_s19 = inlined_call_operand.hbm [shape: f32[32,256], index: 19, kind: output, shape index: {}]  }
   0x1   :  { %7051 = sst [smem:[#allocation24_spill]] %s7023_s0 }
   0x2   :  { %7052 = sst [smem:[#allocation25_spill]] %s7024_s1 }
   0x3   :  { %7053 = sst [smem:[#allocation26_spill]] %s7025_s2 }
   0x4   :  { %7054 = sst [smem:[#allocation27_spill]] %s7026_s3 }
   0x5   :  { %24 = vsyncpa [#allocation3], 0 }
   0x6   :  { %25 = vsyncpa [#allocation6], 0 }
   0x7   :  { %26 = vsyncpa [#allocation9], 0 }
   0x8   :  { %27 = vsyncpa [#allocation12], 0 }
   0x9   :  { %28 = vsyncpa [#allocation15], 0 }
   0xa   :  { %29 = vsyncpa [#allocation4], 0  ;;  %s5606_s0 = smov [#allocation5]   ;;  %s5374_s1 = scalar_lea.hbm %s7027_s4, 32 }
   0xb   :  { %s53_s30 = sshll.u32 %s5606_s0, 4  ;;  %p5375_p0 = scmp.ne.s32.totalorder %s7027_s4, %s5374_s1  ;;  %s54_s30 = int_to_ptr.vmem [resolvable:$true] %s53_s30 }
   0xc   :  { %p5378_p1 = scmp.lt.u32.totalorder %s5374_s1, %s7027_s4 }
   0xe   :  { %p5380_p2 = pnand %p5378_p1, %p5375_p0 }
  0x10   :  { %5383 = shalt.err (!%p5380_p2)
}
  0x11   :  { %s5384_s25 = scalar_lea.vmem %s54_s30, 32  ;;  %p5389_p4 = scmp.lt.s32.totalorder %s54_s30, %s54_s30 }
  0x12   :  { %p5385_p3 = scmp.ne.s32.totalorder %s54_s30, %s5384_s25  ;;  %p5390_p5 = scmp.lt.s32.totalorder %s5384_s25, %s5384_s25 }
  0x14   :  { %p5391_p6 = por %p5390_p5, %p5389_p4 }
  0x16   :  { %p5392_p7 = pnand %p5391_p6, %p5385_p3 }
  0x18   :  { %5395 = shalt.err (!%p5392_p7)
}
  0x19   :  { %s7047_s3 = smov 16   ;;  %s7049_s26 = smov 1  }
  0x1a   :  { %59 = dma.hbm_to_vmem [thread:$0]  %s7027_s4, 32, %s54_s30, [#allocation6], %s7047_s3, %s7047_s3, %s7049_s26  }
  0x1b   :  { %s5609_s29 = smov [#allocation8]   ;;  %s5396_s1 = scalar_lea.hbm %s7029_s6, 6144 }
  0x1c   :  { %s77_s0 = sshll.u32 %s5609_s29, 4  ;;  %p5397_p8 = scmp.ne.s32.totalorder %s7029_s6, %s5396_s1  ;;  %s78_s0 = int_to_ptr.vmem [resolvable:$true] %s77_s0 }
  0x1d   :  { %p5400_p9 = scmp.lt.u32.totalorder %s5396_s1, %s7029_s6 }
  0x1f   :  { %p5402_p10 = pnand %p5400_p9, %p5397_p8 }
  0x21   :  { %5405 = shalt.err (!%p5402_p10)
}
  0x22   :  { %s5406_s25 = scalar_lea.vmem %s78_s0, 6144  ;;  %p5411_p12 = scmp.lt.s32.totalorder %s78_s0, %s78_s0 }
  0x23   :  { %p5407_p11 = scmp.ne.s32.totalorder %s78_s0, %s5406_s25  ;;  %p5412_p13 = scmp.lt.s32.totalorder %s5406_s25, %s5406_s25 }
  0x25   :  { %p5413_p0 = por %p5412_p13, %p5411_p12 }
  0x27   :  { %p5414_p1 = pnand %p5413_p0, %p5407_p11 }
  0x29   :  { %5417 = shalt.err (!%p5414_p1)
}
  0x2a   :  { %s5610_s4 = smov 192   ;;  %s5611_s30 = smov 12  }
  0x2b   :  { %83 = dma.hbm_to_vmem [thread:$0]  %s7029_s6, 6144, %s78_s0, [#allocation9], %s5610_s4, %s5610_s4, %s5611_s30  }
  0x2c   :  { %s5612_s29 = smov [#allocation11]   ;;  %s5613_s21 = smov [#allocation14]  }
  0x2d   :  { %s107_s20 = sshll.u32 %s5612_s29, 4  ;;  %s138_s22 = sshll.u32 %s5613_s21, 4  ;;  %s108_s20 = int_to_ptr.vmem [resolvable:$true] %s107_s20  ;;  %s139_s22 = int_to_ptr.vmem [resolvable:$true] %s138_s22 }
  0x2e   :  { %s5418_s23 = scalar_lea.hbm %s7034_s11, 32 }
  0x2f   :  { %p5419_p2 = scmp.ne.s32.totalorder %s7034_s11, %s5418_s23  ;;  %p5422_p3 = scmp.lt.u32.totalorder %s5418_s23, %s7034_s11 }
  0x31   :  { %p5424_p4 = pnand %p5422_p3, %p5419_p2 }
  0x33   :  { %5427 = shalt.err (!%p5424_p4)
}
  0x34   :  { %s5428_s6 = scalar_lea.vmem %s108_s20, 32  ;;  %p5433_p6 = scmp.lt.s32.totalorder %s108_s20, %s108_s20 }
  0x35   :  { %p5429_p5 = scmp.ne.s32.totalorder %s108_s20, %s5428_s6  ;;  %p5434_p7 = scmp.lt.s32.totalorder %s5428_s6, %s5428_s6 }
  0x37   :  { %p5435_p8 = por %p5434_p7, %p5433_p6 }
  0x39   :  { %p5436_p9 = pnand %p5435_p8, %p5429_p5 }
  0x3b   :  { %5439 = shalt.err (!%p5436_p9)
}
  0x3c   :  { %s7055_s0 = smov 1   ;;  %s7056_s4 = smov 16  }
  0x3d   :  { %113 = dma.hbm_to_vmem [thread:$0]  %s7034_s11, 32, %s108_s20, [#allocation12], %s7056_s4, %s7056_s4, %s7055_s0  }
  0x3e   :  { %s5440_s3 = scalar_lea.hbm %s7039_s16, 16 }
  0x3f   :  { %p5441_p10 = scmp.ne.s32.totalorder %s7039_s16, %s5440_s3  ;;  %p5444_p11 = scmp.lt.u32.totalorder %s5440_s3, %s7039_s16 }
  0x41   :  { %p5446_p12 = pnand %p5444_p11, %p5441_p10 }
  0x43   :  { %5449 = shalt.err (!%p5446_p12)
}
  0x44   :  { %s5450_s23 = scalar_lea.vmem %s139_s22, 16  ;;  %s5454_s24 = scalar_lea.vmem %s139_s22, 32 }
  0x45   :  { %p5451_p13 = scmp.ne.s32.totalorder %s139_s22, %s5450_s23  ;;  %p5455_p0 = scmp.lt.s32.totalorder %s139_s22, %s139_s22 }
  0x46   :  { %p5456_p1 = scmp.lt.s32.totalorder %s5454_s24, %s5450_s23 }
  0x48   :  { %p5457_p2 = por %p5456_p1, %p5455_p0 }
  0x4a   :  { %p5458_p3 = pnand %p5457_p2, %p5451_p13 }
  0x4c   :  { %5461 = shalt.err (!%p5458_p3)
}
  0x4d   :  { %141 = dma.hbm_to_vmem [thread:$0]  %s7039_s16, 16, %s139_s22, [#allocation15]  }
  0x4e   :  { %s5614_s25 = smov [#allocation2]   ;;  %s7057_s28 = sld [smem:[#allocation27_spill]] }
  0x4f   :  { %s41_s6 = sshll.u32 %s5614_s25, 4  ;;  %s42_s6 = int_to_ptr.vmem [resolvable:$true] %s41_s6 }
  0x54   :  { %s5462_s29 = scalar_lea.hbm %s7057_s28, 1024 }
  0x55   :  { %p5463_p4 = scmp.ne.s32.totalorder %s7057_s28, %s5462_s29  ;;  %p5466_p5 = scmp.lt.u32.totalorder %s5462_s29, %s7057_s28 }
  0x57   :  { %p5468_p6 = pnand %p5466_p5, %p5463_p4 }
  0x59   :  { %5471 = shalt.err (!%p5468_p6)
}
  0x5a   :  { %s5472_s2 = scalar_lea.vmem %s42_s6, 1024  ;;  %p5477_p8 = scmp.lt.s32.totalorder %s42_s6, %s42_s6 }
  0x5b   :  { %p5473_p7 = scmp.ne.s32.totalorder %s42_s6, %s5472_s2  ;;  %p5478_p9 = scmp.lt.s32.totalorder %s5472_s2, %s5472_s2 }
  0x5d   :  { %p5479_p10 = por %p5478_p9, %p5477_p8 }
  0x5f   :  { %p5480_p11 = pnand %p5479_p10, %p5473_p7 }
  0x61   :  { %5483 = shalt.err (!%p5480_p11)
}
  0x62   :  { %s5615_s16 = smov 128   ;;  %s5616_s22 = smov 8  }
  0x63   :  { %47 = dma.hbm_to_vmem [thread:$0]  %s7057_s28, 1024, %s42_s6, [#allocation3], %s5615_s16, %s5615_s16, %s5616_s22  }
  0x64   :  { %s5617_s11 = smov [#allocation7]   ;;  %s5618_s25 = smov [#allocation10]  }
  0x65   :  { %s65_s20 = sshll.u32 %s5617_s11, 4  ;;  %s95_s30 = sshll.u32 %s5618_s25, 4  ;;  %s66_s20 = int_to_ptr.vmem [resolvable:$true] %s65_s20  ;;  %s96_s30 = int_to_ptr.vmem [resolvable:$true] %s95_s30 }
  0x66   :  { %s5484_s3 = scalar_lea.hbm %s7028_s5, 32 }
  0x67   :  { %p5485_p12 = scmp.ne.s32.totalorder %s7028_s5, %s5484_s3  ;;  %p5488_p13 = scmp.lt.u32.totalorder %s5484_s3, %s7028_s5 }
  0x69   :  { %p5490_p0 = pnand %p5488_p13, %p5485_p12 }
  0x6b   :  { %5493 = shalt.err (!%p5490_p0)
}
  0x6c   :  { %s5494_s6 = scalar_lea.vmem %s66_s20, 32  ;;  %p5499_p2 = scmp.lt.s32.totalorder %s66_s20, %s66_s20 }
  0x6d   :  { %p5495_p1 = scmp.ne.s32.totalorder %s66_s20, %s5494_s6  ;;  %p5500_p3 = scmp.lt.s32.totalorder %s5494_s6, %s5494_s6 }
  0x6f   :  { %p5501_p4 = por %p5500_p3, %p5499_p2 }
  0x71   :  { %p5502_p5 = pnand %p5501_p4, %p5495_p1 }
  0x73   :  { %5505 = shalt.err (!%p5502_p5)
}
  0x74   :  { %71 = dma.hbm_to_vmem [thread:$0]  %s7028_s5, 32, %s66_s20, [#allocation6], %s7056_s4, %s7056_s4, %s7055_s0  }
  0x75   :  { %s5506_s24 = scalar_lea.hbm %s7033_s10, 32 }
  0x76   :  { %p5507_p6 = scmp.ne.s32.totalorder %s7033_s10, %s5506_s24  ;;  %p5510_p7 = scmp.lt.u32.totalorder %s5506_s24, %s7033_s10 }
  0x78   :  { %p5512_p8 = pnand %p5510_p7, %p5507_p6 }
  0x7a   :  { %5515 = shalt.err (!%p5512_p8)
}
  0x7b   :  { %s5516_s3 = scalar_lea.vmem %s96_s30, 32  ;;  %p5521_p10 = scmp.lt.s32.totalorder %s96_s30, %s96_s30 }
  0x7c   :  { %p5517_p9 = scmp.ne.s32.totalorder %s96_s30, %s5516_s3  ;;  %p5522_p11 = scmp.lt.s32.totalorder %s5516_s3, %s5516_s3 }
  0x7e   :  { %p5523_p12 = por %p5522_p11, %p5521_p10 }
  0x80   :  { %p5524_p13 = pnand %p5523_p12, %p5517_p9 }
  0x82   :  { %5527 = shalt.err (!%p5524_p13)
}
  0x83   :  { %101 = dma.hbm_to_vmem [thread:$0]  %s7033_s10, 32, %s96_s30, [#allocation9], %s7056_s4, %s7056_s4, %s7055_s0  }
  0x84   :  { %s5619_s26 = smov [#allocation13]   ;;  %s5528_s6 = scalar_lea.hbm %s7037_s14, 8192 }
  0x85   :  { %s123_s21 = sshll.u32 %s5619_s26, 4  ;;  %p5529_p0 = scmp.ne.s32.totalorder %s7037_s14, %s5528_s6  ;;  %s124_s21 = int_to_ptr.vmem [resolvable:$true] %s123_s21 }
  0x86   :  { %p5532_p1 = scmp.lt.u32.totalorder %s5528_s6, %s7037_s14 }
  0x88   :  { %p5534_p2 = pnand %p5532_p1, %p5529_p0 }
  0x8a   :  { %5537 = shalt.err (!%p5534_p2)
}
  0x8b   :  { %s5538_s24 = scalar_lea.vmem %s124_s21, 8192  ;;  %p5543_p4 = scmp.lt.s32.totalorder %s124_s21, %s124_s21 }
  0x8c   :  { %p5539_p3 = scmp.ne.s32.totalorder %s124_s21, %s5538_s24  ;;  %p5544_p5 = scmp.lt.s32.totalorder %s5538_s24, %s5538_s24 }
  0x8e   :  { %p5545_p6 = por %p5544_p5, %p5543_p4 }
  0x90   :  { %p5546_p7 = pnand %p5545_p6, %p5539_p3 }
  0x92   :  { %5549 = shalt.err (!%p5546_p7)
}
  0x93   :  { %s5620_s10 = smov 64   ;;  %s5621_s0 = smov 4  }
  0x94   :  { %129 = dma.hbm_to_vmem [thread:$0]  %s7037_s14, 8192, %s124_s21, [#allocation12], %s5620_s10, %s5620_s10, %s5621_s0  }
  0x95   :  { %s5622_s25 = smov [#allocation16]   ;;  %s5550_s5 = scalar_lea.hbm %s7040_s17, 16 }
  0x96   :  { %s148_s27 = sshll.u32 %s5622_s25, 4  ;;  %p5551_p8 = scmp.ne.s32.totalorder %s7040_s17, %s5550_s5  ;;  %s149_s27 = int_to_ptr.vmem [resolvable:$true] %s148_s27 }
  0x97   :  { %p5554_p9 = scmp.lt.u32.totalorder %s5550_s5, %s7040_s17 }
  0x99   :  { %p5556_p10 = pnand %p5554_p9, %p5551_p8 }
  0x9b   :  { %5559 = shalt.err (!%p5556_p10)
}
  0x9c   :  { %s5560_s6 = scalar_lea.vmem %s149_s27, 16  ;;  %s5564_s14 = scalar_lea.vmem %s149_s27, 32 }
  0x9d   :  { %p5561_p11 = scmp.ne.s32.totalorder %s149_s27, %s5560_s6  ;;  %p5565_p12 = scmp.lt.s32.totalorder %s149_s27, %s149_s27 }
  0x9e   :  { %p5566_p13 = scmp.lt.s32.totalorder %s5564_s14, %s5560_s6 }
  0xa0   :  { %p5567_p0 = por %p5566_p13, %p5565_p12 }
  0xa2   :  { %p5568_p1 = pnand %p5567_p0, %p5561_p11 }
  0xa4   :  { %5571 = shalt.err (!%p5568_p1)
}
  0xa5   :  { %151 = dma.hbm_to_vmem [thread:$0]  %s7040_s17, 16, %s149_s27, [#allocation15]  }
  0xa6   :  { %5594 = dma.done.wait [#allocation3], 1024  }
  0xa7   :  { %5595 = vsyncadd [#allocation3], 4294966272 }
  0xa8   :  { %5596 = dma.done.wait [#allocation6], 64  }
  0xa9   :  { %5597 = vsyncadd [#allocation6], 4294967232 }
  0xaa   :  { %5598 = dma.done.wait [#allocation9], 6176  }
  0xab   :  { %5599 = vsyncadd [#allocation9], 4294961120 }
  0xac   :  { %5600 = dma.done.wait [#allocation12], 8224  }
  0xad   :  { %5601 = vsyncadd [#allocation12], 4294959072 }
  0xae   :  { %5602 = dma.done.wait [#allocation15], 32  }
  0xaf   :  { %5603 = vsyncadd [#allocation15], 4294967264  ;;  %s7058_s23 = sld [smem:[#allocation24_spill]]  ;;  %v4967_v3 = vld [vmem:[#allocation8 + $0x4] ss:$12 sps:$4 sm:$0xff]   ;;  %v5623_v30 = vmov 0  }
  0xb0   :  { %v4969_v4 = vld [vmem:[#allocation8] ss:$12 sps:$4 sm:$0xff]   ;;  %v4970_v5 = vld [vmem:[#allocation8 + $0x1c] ss:$12 sps:$4 sm:$0xff]   ;;  %440 = vmatprep.subr.bf16.mxu0 %v4967_v3  ;;  %v4972_v19 = vld [vmem:[#allocation8 + $0x18] ss:$12 sps:$4 sm:$0xff]   ;;  %472 = vmatprep.mubr.bf16.mxu0 %v5623_v30 }
  0xb1   :  { %441 = vmatpush1.bf16.msra.mxu0 %v4969_v4  ;;  %v4973_v20 = vld [vmem:[#allocation8 + $0x34] ss:$12 sps:$4 sm:$0xff]   ;;  %v4975_v21 = vld [vmem:[#allocation8 + $0x30] ss:$12 sps:$4 sm:$0xff]   ;;  %v4976_v22 = vld [vmem:[#allocation8 + $0x4c] ss:$12 sps:$4 sm:$0xff]  }
  0xb2   :  { %442 = vmatprep.subr.bf16.mxu0 %v4970_v5  ;;  %v4978_v23 = vld [vmem:[#allocation8 + $0x48] ss:$12 sps:$4 sm:$0xff]   ;;  %v4979_v24 = vld [vmem:[#allocation8 + $0x64] ss:$12 sps:$4 sm:$0xff]   ;;  %v4981_v25 = vld [vmem:[#allocation8 + $0x60] ss:$12 sps:$4 sm:$0xff]  }
  0xb3   :  { %v4982_v26 = vld [vmem:[#allocation8 + $0x7c] ss:$12 sps:$4 sm:$0xff]   ;;  %v4984_v27 = vld [vmem:[#allocation8 + $0x78] ss:$12 sps:$4 sm:$0xff]   ;;  %v4985_v28 = vld [vmem:[#allocation8 + $0x94] ss:$12 sps:$4 sm:$0xff]  }
  0xb4   :  { %v4987_v29 = vld [vmem:[#allocation8 + $0x90] ss:$12 sps:$4 sm:$0xff]   ;;  %v4988_v31 = vld [vmem:[#allocation8 + $0xac] ss:$12 sps:$4 sm:$0xff]   ;;  %v4990_v32 = vld [vmem:[#allocation8 + $0xa8] ss:$12 sps:$4 sm:$0xff]  }
  0xb5   :  { %v182_v0 = vld [vmem:[%s7058_s23] sm:$0xff]  ;;  %v183_v1 = vld [vmem:[%s7058_s23 + $0x8] sm:$0xff]  ;;  %v184_v2 = vld [vmem:[%s7058_s23 + $0x10] sm:$0xff]  ;;  %443 = vmatpush1.bf16.msra.mxu0 %v4972_v19  ;;  %v5624_v62 = vmov 0.0   ;;  %vm5625_vm0 = vmmov 0   ;;  %s7059_s5 = sld [smem:[#allocation26_spill]] }
  0xb6   :  { %196 = vadd.xlane.f32.xlu0 %v182_v0  ;;  %v5870_v17 = vld [vmem:[%s7058_s23 + $0x18] sm:$0xff]  ;;  %444 = vmatprep.subr.bf16.mxu0 %v4973_v20  ;;  %v4992_v34 = vld [vmem:[#allocation8 + $0x20] ss:$12 sps:$4 sm:$0xff]   ;;  %v4106_v48 = vld [vmem:[#allocation5] ss:$0 sm:$0xff]  ;;  %s7060_s16 = sld [smem:[#allocation25_spill]] }
  0xb7   :  { %v4991_v33 = vld [vmem:[#allocation8 + $0x8] ss:$12 sps:$4 sm:$0xff]   ;;  %v4993_v35 = vld [vmem:[#allocation8 + $0x38] ss:$12 sps:$4 sm:$0xff]   ;;  %v4107_v52 = vld [vmem:[#allocation7] ss:$0 sm:$0xff] }
  0xb8   :  { %4629 = vmatprep.subr.bf16.mxu1 %v4991_v33  ;;  %v4994_v57 = vld [vmem:[#allocation8 + $0x50] ss:$12 sps:$4 sm:$0xff]   ;;  %v4995_v58 = vld [vmem:[#allocation8 + $0x68] ss:$12 sps:$4 sm:$0xff]   ;;  %v4996_v59 = vld [vmem:[#allocation8 + $0x80] ss:$12 sps:$4 sm:$0xff]  }
  0xb9   :  { %445 = vmatpush1.bf16.msra.mxu0 %v4975_v21  ;;  %4630 = vmatpush3.bf16.msra.mxu1 %v4991_v33  ;;  %v4997_v60 = vld [vmem:[#allocation8 + $0x98] ss:$12 sps:$4 sm:$0xff]   ;;  %v4998_v61 = vld [vmem:[#allocation8 + $0xb0] ss:$12 sps:$4 sm:$0xff]   ;;  %vm657_vm1 = vcmask 523264  }
  0xba   :  { %198 = vadd.xlane.f32.xlu0 %v183_v1  ;;  %446 = vmatprep.subr.bf16.mxu0 %v4976_v22 }
  0xbb   :  { %4631 = vmatprep.subr.bf16.mxu1 %v4992_v34  ;;  %v542_v21 = vld [vmem:[%s7059_s5] sm:$0x3] }
  0xbd   :  { %447 = vmatpush1.bf16.msra.mxu0 %v4978_v23  ;;  %4632 = vmatpush3.bf16.msra.mxu1 %v4992_v34  ;;  %v4132_v23 = vld [vmem:[%s7059_s5 + $0x2] sm:$0x3] }
  0xbe   :  { %200 = vadd.xlane.f32.xlu0 %v184_v2  ;;  %448 = vmatprep.subr.bf16.mxu0 %v4979_v24  ;;  %v4133_v24 = vld [vmem:[%s7059_s5 + $0x4] sm:$0x3] }
  0xbf   :  { %4633 = vmatprep.subr.bf16.mxu1 %v4993_v35 }
  0xc1   :  { %449 = vmatpush1.bf16.msra.mxu0 %v4981_v25  ;;  %4634 = vmatpush3.bf16.msra.mxu1 %v4993_v35  ;;  %v4134_v25 = vld [vmem:[%s7059_s5 + $0x6] sm:$0x3] }
  0xc2   :  { %450 = vmatprep.subr.bf16.mxu0 %v4982_v26  ;;  %4635 = vmatprep.subr.bf16.mxu1 %v4994_v57 }
  0xc5   :  { %451 = vmatpush1.bf16.msra.mxu0 %v4984_v27  ;;  %4636 = vmatpush3.bf16.msra.mxu1 %v4994_v57 }
  0xc6   :  { %452 = vmatprep.subr.bf16.mxu0 %v4985_v28  ;;  %4637 = vmatprep.subr.bf16.mxu1 %v4995_v58 }
  0xc9   :  { %453 = vmatpush1.bf16.msra.mxu0 %v4987_v29  ;;  %4638 = vmatpush3.bf16.msra.mxu1 %v4995_v58 }
  0xca   :  { %454 = vmatprep.subr.bf16.mxu0 %v4988_v31  ;;  %4639 = vmatprep.subr.bf16.mxu1 %v4996_v59 }
  0xcd   :  { %455 = vmatpush1.bf16.msra.mxu0 %v4990_v32  ;;  %4640 = vmatpush3.bf16.msra.mxu1 %v4996_v59 }
  0xce   :  { %4641 = vmatprep.subr.bf16.mxu1 %v4997_v60  ;;  %4649 = vmatprep.subr.bf16.mxu0 %v5624_v62 }
  0xd1   :  { %4642 = vmatpush3.bf16.msra.mxu1 %v4997_v60 }
  0xd2   :  { %4643 = vmatprep.subr.bf16.mxu1 %v4998_v61 }
  0xd5   :  { %4644 = vmatpush3.bf16.msra.mxu1 %v4998_v61 }
 0x143   :  { %v197_v6 = vpop.xlane.xlu0 %196 }
 0x144   :  { %v205_v7 = vmul.f32 0.0078125, %v197_v6 }
 0x146   :  { %v5857_v8 = vsub.f32 %v182_v0, %v205_v7 }
 0x147   :  { %v199_v9 = vpop.xlane.xlu0 %198 }
 0x148   :  { %v206_v10 = vmul.f32 0.0078125, %v199_v9  ;;  %v213_v11 = vmul.f32 %v5857_v8, %v5857_v8 }
 0x14a   :  { %v5861_v12 = vsub.f32 %v183_v1, %v206_v10  ;;  %217 = vadd.xlane.f32.xlu1 %v213_v11 }
 0x14b   :  { %v201_v13 = vpop.xlane.xlu0 %200 }
 0x14c   :  { %v214_v14 = vmul.f32 %v5861_v12, %v5861_v12  ;;  %v207_v15 = vmul.f32 0.0078125, %v201_v13 }
 0x14e   :  { %219 = vadd.xlane.f32.xlu1 %v214_v14  ;;  %v5865_v16 = vsub.f32 %v184_v2, %v207_v15  ;;  %v297_v14 = vlaneseq }
 0x150   :  { %v215_v18 = vmul.f32 %v5865_v16, %v5865_v16  ;;  %v5884_v15 = vshrl.u32 %v297_v14, 7 }
 0x152   :  { %202 = vadd.xlane.f32.xlu1 %v5870_v17  ;;  %221 = vadd.xlane.f32.xlu0 %v215_v18  ;;  %v5887_v18 = vsub.s32 1, %v5884_v15  ;;  %v5893_v19 = vsub.s32 0, %v5884_v15 }
 0x154   :  { %v5914_v28 = vrot.slane %v542_v21, %v5893_v19  ;;  %v5918_v31 = vrot.slane %v4132_v23, %v5893_v19  ;;  %v5921_v32 = vrot.slane %v4133_v24, %v5893_v19  ;;  %v5924_v33 = vrot.slane %v4134_v25, %v5893_v19 }
 0x155   :  { %v5951_v57 = vrot.slane %v4132_v23, %v5887_v18  ;;  %v5954_v58 = vrot.slane %v4133_v24, %v5887_v18  ;;  %v5957_v59 = vrot.slane %v4134_v25, %v5887_v18 }
 0x1d7   :  { %v218_v36 = vpop.xlane.xlu1 %217 }
 0x1d8   :  { %v225_v37 = vmul.f32 0.0078125, %v218_v36 }
 0x1da   :  { %v229_v38 = vadd.f32 1e-05, %v225_v37 }
 0x1db   :  { %v220_v39 = vpop.xlane.xlu1 %219 }
 0x1dc   :  { %5231 = vrsqrt.f32 %v229_v38  ;;  %v226_v40 = vmul.f32 0.0078125, %v220_v39 }
 0x1de   :  { %v230_v41 = vadd.f32 1e-05, %v226_v40 }
 0x1df   :  { %v203_v42 = vpop.xlane.xlu1 %202  ;;  %v222_v63 = vpop.xlane.xlu0 %221 }
 0x1e0   :  { %5233 = vrsqrt.f32 %v230_v41  ;;  %v208_v43 = vmul.f32 0.0078125, %v203_v42  ;;  %v227_v0 = vmul.f32 0.0078125, %v222_v63 }
 0x1e2   :  { %v212_v44 = vsub.f32 %v5870_v17, %v208_v43  ;;  %v231_v1 = vadd.f32 1e-05, %v227_v0 }
 0x1e4   :  { %v216_v45 = vmul.f32 %v212_v44, %v212_v44  ;;  %5235 = vrsqrt.f32 %v231_v1 }
 0x1e6   :  { %v5232_v46 = vpop.eup %5231  ;;  %223 = vadd.xlane.f32.xlu1 %v216_v45 }
 0x1e7   :  { %v237_v47 = vmul.f32 %v5232_v46, %v5857_v8 }
 0x1e9   :  { %v247_v51 = vmul.f32 %v4106_v48, %v237_v47 }
 0x1ea   :  { %v5234_v49 = vpop.eup %5233 }
 0x1eb   :  { %v238_v50 = vmul.f32 %v5234_v49, %v5861_v12  ;;  %v257_v54 = vadd.f32 %v4107_v52, %v247_v51 }
 0x1ed   :  { %v248_v53 = vmul.f32 %v4106_v48, %v238_v50 }
 0x1ee   :  { %v5236_v5 = vpop.eup %5235 }
 0x1ef   :  { %v258_v55 = vadd.f32 %v4107_v52, %v248_v53  ;;  %v239_v6 = vmul.f32 %v5236_v5, %v5865_v16  ;;  %v295_v16 = vld [vmem:[%s7030_s7] sm:$0x7] }
 0x1f0   :  { %v5896_v20 = vrot.slane %v295_v16, %v5887_v18  ;;  %v5902_v22 = vrot.slane %v295_v16, %v5893_v19 }
 0x1f1   :  { %v261_v56 = vpack.c.bf16 %v258_v55, %v257_v54  ;;  %v249_v9 = vmul.f32 %v4106_v48, %v239_v6 }
 0x1f3   :  { %473 = vmatmul.mubr.bf16.vlgmr.msra.gmra.mrb[0].mxu0 %v261_v56  ;;  %4645 = vmatprep.mubr.bf16.mxu1 %v261_v56  ;;  %v259_v11 = vadd.f32 %v4107_v52, %v249_v9  ;;  %v5948_v56 = vrot.slane %v542_v21, %v5887_v18 }
 0x1f4   :  { %482 = vmatprep.mubr.bf16.mxu0 %v5623_v30 }
 0x273   :  { %v224_v2 = vpop.xlane.xlu1 %223 }
 0x274   :  { %v228_v3 = vmul.f32 0.0078125, %v224_v2 }
 0x276   :  { %v232_v4 = vadd.f32 1e-05, %v228_v3 }
 0x278   :  { %5237 = vrsqrt.f32 %v232_v4 }
 0x282   :  { %v5238_v7 = vpop.eup %5237 }
 0x283   :  { %v240_v8 = vmul.f32 %v5238_v7, %v212_v44 }
 0x285   :  { %v250_v10 = vmul.f32 %v4106_v48, %v240_v8 }
 0x287   :  { %v260_v12 = vadd.f32 %v4107_v52, %v250_v10  ;;  %v5944_v52 = vsub.s32 2, %v5884_v15 }
 0x289   :  { %v262_v13 = vpack.c.bf16 %v260_v12, %v259_v11  ;;  %v308_v53 = vrot.slane %v295_v16, %v5944_v52 }
 0x28b   :  { %483 = vmatmul.mubr.bf16.gmra.mrb[4].mxu0 %v262_v13  ;;  %4646 = vmatmul.mubr.bf16.vlgmr.msra.gmra.mrb[0].mxu1 %v262_v13 }
 0x28c   :  { %4657 = vmatprep.mubr.msk.bf16.mxu0 %vm5625_vm0, %v5624_v62 }
 0x2c6   :  { %v474_v26 = vpop.f32.mrb[0].mxu0 }
 0x2c7   :  { %v476_v27 = vpop.f32.mrb[1].mxu0  ;;  %v475_v35 = vadd.f32 %v474_v26, %v5902_v22 }
 0x2c8   :  { %v477_v29 = vadd.f32 %v476_v27, %v5896_v20  ;;  %v478_v34 = vpop.f32.mrb[2].mxu0 }
 0x2c9   :  { %v479_v36 = vadd.f32 %v478_v34, %v5902_v22  ;;  %v480_v37 = vpop.f32.mrb[3].mxu0 }
 0x2ca   :  { %v481_v39 = vadd.f32 %v480_v37, %v5896_v20  ;;  %v554_v40 = vmul.f32 %v5914_v28, %v477_v29  ;;  %v571_v41 = vmul.f32 %v5918_v31, %v477_v29  ;;  %v588_v42 = vmul.f32 %v5921_v32, %v477_v29 }
 0x2cb   :  { %v609_v38 = vpack.c.bf16 %v479_v36, %v475_v35  ;;  %v605_v43 = vmul.f32 %v5924_v33, %v477_v29 }
 0x2cc   :  { %v556_v44 = vmul.f32 %v5914_v28, %v481_v39  ;;  %v573_v45 = vmul.f32 %v5918_v31, %v481_v39  ;;  %v590_v46 = vmul.f32 %v5921_v32, %v481_v39  ;;  %v607_v47 = vmul.f32 %v5924_v33, %v481_v39 }
 0x2ce   :  { %v610_v48 = vpack.c.bf16 %v556_v44, %v554_v40  ;;  %v611_v49 = vpack.c.bf16 %v573_v45, %v571_v41  ;;  %v612_v50 = vpack.c.bf16 %v590_v46, %v588_v42  ;;  %v613_v51 = vpack.c.bf16 %v607_v47, %v605_v43 }
 0x2d0   :  { %4650 = vmatpush3.bf16.xpose.msra.mxu0 %v610_v48 }
 0x2d1   :  { %4651 = vmatprep.subr.bf16.mxu0 %v5624_v62 }
 0x2d8   :  { %4652 = vmatpush3.bf16.xpose.msra.mxu0 %v611_v49 }
 0x2d9   :  { %4653 = vmatprep.subr.bf16.mxu0 %v5624_v62 }
 0x2e0   :  { %4654 = vmatpush3.bf16.xpose.msra.mxu0 %v612_v50 }
 0x2e1   :  { %4655 = vmatprep.subr.bf16.mxu0 %v5624_v62 }
 0x2e8   :  { %4656 = vmatpush3.bf16.xpose.msra.mxu0 %v613_v51 }
 0x2e9   :  { %4692 = vmatprep.subr.bf16.mxu0 %v5624_v62 }
 0x2ef   :  { %4658 = vmatmul.mubr.bf16.vlgmr.msra.gmra.mrb[8].mxu0 %v609_v38 }
 0x2f0   :  { %4700 = vmatprep.mubr.msk.bf16.mxu0 %vm5625_vm0, %v5624_v62 }
 0x35e   :  { %v484_v54 = vpop.f32.mrb[4].mxu0  ;;  %v4647_v55 = vpop.f32.mrb[0].mxu1 }
 0x35f   :  { %v536_v60 = vadd.f32 %v4647_v55, %v308_v53  ;;  %v486_v61 = vpop.f32.mrb[5].mxu0  ;;  %v527_v63 = vpop.f32.mrb[1].mxu1  ;;  %v485_v3 = vadd.f32 %v484_v54, %v5902_v22 }
 0x360   :  { %v487_v0 = vadd.f32 %v486_v61, %v5896_v20  ;;  %v488_v1 = vpop.f32.mrb[6].mxu0  ;;  %v4648_v2 = vpop.f32.mrb[2].mxu1  ;;  %v528_v4 = vadd.f32 %v527_v63, %v308_v53  ;;  %v614_v63 = vld [vmem:[%s7060_s16] sm:$0xff] }
 0x361   :  { %v490_v5 = vpop.f32.mrb[7].mxu0  ;;  %v530_v6 = vpop.f32.mrb[3].mxu1  ;;  %v5962_v7 = vmul.f32 %v5948_v56, %v536_v60  ;;  %v5965_v8 = vmul.f32 %v5951_v57, %v536_v60  ;;  %v5968_v9 = vmul.f32 %v5954_v58, %v536_v60  ;;  %v5971_v10 = vmul.f32 %v5957_v59, %v536_v60 }
 0x362   :  { %v804_v11 = vmul.f32 %v5914_v28, %v487_v0  ;;  %v808_v12 = vmul.f32 %v5918_v31, %v487_v0  ;;  %v812_v13 = vmul.f32 %v5921_v32, %v487_v0  ;;  %v816_v14 = vmul.f32 %v5924_v33, %v487_v0 }
 0x363   :  { %v489_v16 = vadd.f32 %v488_v1, %v5902_v22  ;;  %v539_v21 = vadd.f32 %v4648_v2, %v308_v53  ;;  %v491_v23 = vadd.f32 %v490_v5, %v5896_v20  ;;  %v531_v24 = vadd.f32 %v530_v6, %v308_v53  ;;  %v615_v1 = vld [vmem:[%s7060_s16 + $0x8] sm:$0xff] }
 0x364   :  { %v5980_v25 = vmul.f32 %v5948_v56, %v528_v4  ;;  %v5983_v26 = vmul.f32 %v5951_v57, %v528_v4  ;;  %v5986_v27 = vmul.f32 %v5954_v58, %v528_v4  ;;  %v5989_v29 = vmul.f32 %v5957_v59, %v528_v4 }
 0x365   :  { %v820_v34 = vpack.c.bf16 %v489_v16, %v485_v3  ;;  %v5992_v35 = vmul.f32 %v5948_v56, %v539_v21  ;;  %v5995_v22 = vmul.f32 %v5951_v57, %v539_v21  ;;  %v5998_v20 = vmul.f32 %v5954_v58, %v539_v21 }
 0x366   :  { %v6001_v36 = vmul.f32 %v5957_v59, %v539_v21  ;;  %v806_v37 = vmul.f32 %v5914_v28, %v491_v23  ;;  %v810_v38 = vmul.f32 %v5918_v31, %v491_v23  ;;  %v814_v39 = vmul.f32 %v5921_v32, %v491_v23  ;;  %v188_v21 = vld [vmem:[#allocation2 + $0x10] sm:$0xff] }
 0x367   :  { %v818_v40 = vmul.f32 %v5924_v33, %v491_v23  ;;  %v6008_v41 = vmul.f32 %v5948_v56, %v531_v24  ;;  %v6011_v42 = vmul.f32 %v5951_v57, %v531_v24  ;;  %v6014_v43 = vmul.f32 %v5954_v58, %v531_v24  ;;  %v189_v23 = vld [vmem:[#allocation2 + $0x18] sm:$0xff] }
 0x368   :  { %v6017_v44 = vmul.f32 %v5957_v59, %v531_v24  ;;  %v821_v45 = vpack.c.bf16 %v806_v37, %v804_v11  ;;  %v822_v46 = vpack.c.bf16 %v810_v38, %v808_v12  ;;  %v823_v47 = vpack.c.bf16 %v814_v39, %v812_v13  ;;  %v186_v13 = vld [vmem:[#allocation2] sm:$0xff]  ;;  %v191_v37 = vld [vmem:[#allocation2 + $0x28] sm:$0xff]  ;;  %v192_v39 = vld [vmem:[#allocation2 + $0x30] sm:$0xff] }
 0x369   :  { %v824_v48 = vpack.c.bf16 %v818_v40, %v816_v14  ;;  %v756_v49 = vpack.c.bf16 %v6008_v41, %v5980_v25  ;;  %v757_v50 = vpack.c.bf16 %v6011_v42, %v5983_v26  ;;  %v758_v51 = vpack.c.bf16 %v6014_v43, %v5986_v27  ;;  %v187_v14 = vld [vmem:[#allocation2 + $0x8] sm:$0xff]  ;;  %v193_v40 = vld [vmem:[#allocation2 + $0x38] sm:$0xff] }
 0x36a   :  { %4693 = vmatpush3.bf16.xpose.msra.mxu0 %v821_v45  ;;  %v759_v53 = vpack.c.bf16 %v6017_v44, %v5989_v29  ;;  %v967_v54 = vpack.c.bf16 %v5992_v35, %v5962_v7  ;;  %v968_v55 = vpack.c.bf16 %v5995_v22, %v5965_v8  ;;  %v969_v60 = vpack.c.bf16 %v5998_v20, %v5968_v9  ;;  %v4999_v7 = vld [vmem:[%s7031_s8] sm:$0xff]   ;;  %v5000_v8 = vld [vmem:[%s7031_s8 + $0x8] sm:$0xff]   ;;  %v5001_v9 = vld [vmem:[%s7031_s8 + $0x10] sm:$0xff]  }
 0x36b   :  { %4694 = vmatprep.subr.bf16.mxu0 %v5624_v62  ;;  %v970_v61 = vpack.c.bf16 %v6001_v36, %v5971_v10  ;;  %v6046_v16 = vpack.c.bf16 %v187_v14, %v186_v13  ;;  %v6050_v24 = vpack.c.bf16 %v189_v23, %v188_v21  ;;  %v6058_v45 = vpack.c.bf16 %v193_v40, %v192_v39  ;;  %v5002_v10 = vld [vmem:[%s7031_s8 + $0x18] sm:$0xff]   ;;  %v5003_v35 = vld [vmem:[%s7031_s8 + $0x20] sm:$0xff]   ;;  %v5004_v22 = vld [vmem:[%s7031_s8 + $0x28] sm:$0xff]  }
 0x36c   :  { %v5005_v20 = vld [vmem:[%s7031_s8 + $0x30] sm:$0xff]  }
 0x36d   :  { %4882 = vmatprep.subr.bf16.mxu1 %v6046_v16 }
 0x36e   :  { %4884 = vmatpush3.bf16.msra.mxu1 %v6046_v16 }
 0x36f   :  { %4886 = vmatprep.subr.bf16.mxu1 %v6050_v24 }
 0x372   :  { %4695 = vmatpush3.bf16.xpose.msra.mxu0 %v822_v46  ;;  %4888 = vmatpush3.bf16.msra.mxu1 %v6050_v24 }
 0x373   :  { %4696 = vmatprep.subr.bf16.mxu0 %v5624_v62 }
 0x37a   :  { %4697 = vmatpush3.bf16.xpose.msra.mxu0 %v823_v47 }
 0x37b   :  { %4698 = vmatprep.subr.bf16.mxu0 %v5624_v62 }
 0x382   :  { %4699 = vmatpush3.bf16.xpose.msra.mxu0 %v824_v48 }
 0x383   :  { %4735 = vmatprep.subr.bf16.mxu0 %v4999_v7 }
 0x389   :  { %4701 = vmatmul.mubr.bf16.vlgmr.msra.gmra.mrb[12].mxu0 %v820_v34  ;;  %v190_v34 = vld [vmem:[#allocation2 + $0x20] sm:$0xff] }
 0x38a   :  { %v6054_v38 = vpack.c.bf16 %v191_v37, %v190_v34  ;;  %4736 = vmatpush3.bf16.msra.mxu0 %v4999_v7  ;;  %v5016_v7 = vld [vmem:[%s7035_s12 + $0x28] ss:$16 sps:$4 sm:$0xff]  }
 0x38b   :  { %4737 = vmatprep.subr.bf16.mxu0 %v5000_v8 }
 0x38c   :  { %4890 = vmatprep.subr.bf16.mxu1 %v6054_v38 }
 0x38d   :  { %4892 = vmatpush3.bf16.msra.mxu1 %v6054_v38 }
 0x38e   :  { %4894 = vmatprep.subr.bf16.mxu1 %v6058_v45  ;;  %4738 = vmatpush3.bf16.msra.mxu0 %v5000_v8 }
 0x38f   :  { %4739 = vmatprep.subr.bf16.mxu0 %v5001_v9 }
 0x391   :  { %4896 = vmatpush3.bf16.msra.mxu1 %v6058_v45 }
 0x392   :  { %4680 = vmatprep.subr.bf16.mxu1 %v5624_v62  ;;  %4740 = vmatpush3.bf16.msra.mxu0 %v5001_v9 }
 0x393   :  { %4741 = vmatprep.subr.bf16.mxu0 %v5002_v10 }
 0x396   :  { %4742 = vmatpush3.bf16.msra.mxu0 %v5002_v10 }
 0x397   :  { %4743 = vmatprep.subr.bf16.mxu0 %v5003_v35 }
 0x39a   :  { %4744 = vmatpush3.bf16.msra.mxu0 %v5003_v35 }
 0x39b   :  { %4745 = vmatprep.subr.bf16.mxu0 %v5004_v22 }
 0x39e   :  { %4746 = vmatpush3.bf16.msra.mxu0 %v5004_v22 }
 0x39f   :  { %4747 = vmatprep.subr.bf16.mxu0 %v5005_v20 }
 0x3a2   :  { %4748 = vmatpush3.bf16.msra.mxu0 %v5005_v20 }
 0x3c2   :  { %v650_v0 = vpop.f32.mrb[8].mxu0 }
 0x3c3   :  { %v651_v2 = vadd.f32 %v650_v0, %v614_v63  ;;  %v4659_v3 = vpop.f32.mrb[9].mxu0 }
 0x3c4   :  { %v653_v4 = vpop.f32.mrb[10].mxu0  ;;  %v4138_v3 = vld [vmem:[%s7060_s16 + $0x10] sm:$0xff] }
 0x3c5   :  { %v654_v5 = vadd.f32 %v653_v4, %v615_v1  ;;  %v4660_v6 = vpop.f32.mrb[11].mxu0  ;;  %v658_v11 = vsel %vm657_vm1, %v651_v2, -inf }
 0x3c6   :  { %659 = vmax.xlane.f32.xlu0 %v658_v11  ;;  %v4139_v6 = vld [vmem:[%s7060_s16 + $0x18] sm:$0xff] }
 0x3c7   :  { %v661_v12 = vsel %vm657_vm1, %v654_v5, -inf }
 0x3c8   :  { %662 = vmax.xlane.f32.xlu1 %v661_v12 }
 0x453   :  { %v660_v46 = vpop.xlane.xlu0 %659 }
 0x454   :  { %v664_v47 = vsub.f32 %v651_v2, %v660_v46 }
 0x455   :  { %v663_v48 = vpop.xlane.xlu1 %662 }
 0x456   :  { %v666_v63 = vmul.f32 1.442695, %v664_v47  ;;  %v665_v0 = vsub.f32 %v654_v5, %v663_v48 }
 0x458   :  { %5239 = vpow2.f32 %v666_v63  ;;  %v668_v1 = vmul.f32 1.442695, %v665_v0 }
 0x45a   :  { %5241 = vpow2.f32 %v668_v1 }
 0x45c   :  { %v862_v4 = vpop.f32.mrb[12].mxu0 }
 0x45d   :  { %v863_v11 = vadd.f32 %v4138_v3, %v862_v4  ;;  %v4702_v12 = vpop.f32.mrb[13].mxu0  ;;  %v5006_v4 = vld [vmem:[%s7031_s8 + $0x38] sm:$0xff]  }
 0x45e   :  { %v865_v13 = vpop.f32.mrb[14].mxu0  ;;  %4749 = vmatprep.subr.bf16.mxu0 %v5006_v4 }
 0x45f   :  { %v866_v14 = vadd.f32 %v4139_v6, %v865_v13  ;;  %v4703_v2 = vpop.f32.mrb[15].mxu0  ;;  %v869_v21 = vsel %vm657_vm1, %v863_v11, -inf  ;;  %4750 = vmatpush3.bf16.msra.mxu0 %v5006_v4  ;;  %v5033_v4 = vld [vmem:[%s7035_s12 + $0x84] ss:$16 sps:$4 sm:$0xff]  }
 0x460   :  { %870 = vmax.xlane.f32.xlu0 %v869_v21  ;;  %v4143_v2 = vld [vmem:[%s7032_s9] ss:$0 sm:$0xff] }
 0x461   :  { %v872_v5 = vsel %vm657_vm1, %v866_v14, -inf }
 0x462   :  { %v5240_v23 = vpop.eup %5239  ;;  %873 = vmax.xlane.f32.xlu1 %v872_v5 }
 0x463   :  { %4677 = vmatprep.mubr.msk.f32.mxu1 %vm657_vm1, %v5240_v23 }
 0x464   :  { %v5242_v34 = vpop.eup %5241 }
 0x465   :  { %4678 = vmatmul.mubr.msk.f32.vlgmr.msra.gmra.mrb[4].mxu1 %vm657_vm1, %v5242_v34 }
 0x466   :  { %4681 = vmatpush3.bf16.msra.mxu1 %v756_v49  ;;  %4688 = vmatprep.mubr.msk.bf16.mxu1 %vm5625_vm0, %v5624_v62 }
 0x467   :  { %4682 = vmatprep.subr.bf16.mxu1 %v5624_v62 }
 0x46a   :  { %4683 = vmatpush3.bf16.msra.mxu1 %v757_v50 }
 0x46b   :  { %4684 = vmatprep.subr.bf16.mxu1 %v5624_v62 }
 0x46e   :  { %4685 = vmatpush3.bf16.msra.mxu1 %v758_v51 }
 0x46f   :  { %4686 = vmatprep.subr.bf16.mxu1 %v5624_v62 }
 0x472   :  { %4687 = vmatpush3.bf16.msra.mxu1 %v759_v53 }
 0x473   :  { %4898 = vmatprep.subr.bf16.mxu1 %v6046_v16 }
 0x4ed   :  { %v871_v25 = vpop.xlane.xlu0 %870 }
 0x4ee   :  { %v875_v41 = vsub.f32 %v863_v11, %v871_v25 }
 0x4ef   :  { %v874_v37 = vpop.xlane.xlu1 %873 }
 0x4f0   :  { %v877_v42 = vmul.f32 1.442695, %v875_v41  ;;  %v876_v39 = vsub.f32 %v866_v14, %v874_v37  ;;  %v5368_v37 = vld [vmem:[%s7058_s23 + $0x8] sm:$0xff] }
 0x4f2   :  { %v879_v29 = vmul.f32 1.442695, %v876_v39  ;;  %v5010_v39 = vld [vmem:[%s7035_s12 + $0x8] ss:$16 sps:$4 sm:$0xff]  }
 0x538   :  { %v4679_v49 = vpop.f32.mrb[4].mxu1 }
 0x539   :  { %5243 = vrcp.f32 %v4679_v49  ;;  %v742_v26 = vpop.f32.mrb[5].mxu1 }
 0x53a   :  { %5245 = vrcp.f32 %v742_v26  ;;  %v5367_v26 = vld [vmem:[%s7058_s23] sm:$0xff] }
 0x53b   :  { %5247 = vpow2.f32 %v877_v42 }
 0x53c   :  { %5249 = vpow2.f32 %v879_v29  ;;  %v5018_v29 = vld [vmem:[%s7035_s12 + $0x2c] ss:$16 sps:$4 sm:$0xff]  }
 0x543   :  { %v5244_v50 = vpop.eup %5243 }
 0x544   :  { %v5246_v27 = vpop.eup %5245  ;;  %v754_v43 = vmul.f32 %v5244_v50, %v5242_v34 }
 0x545   :  { %v753_v51 = vmul.f32 %v5246_v27, %v5240_v23  ;;  %v5248_v46 = vpop.eup %5247 }
 0x546   :  { %v5250_v44 = vpop.eup %5249 }
 0x547   :  { %v755_v40 = vpack.c.bf16 %v754_v43, %v753_v51  ;;  %v5007_v43 = vld [vmem:[%s7035_s12] ss:$16 sps:$4 sm:$0xff]   ;;  %v5009_v51 = vld [vmem:[%s7035_s12 + $0x4] ss:$16 sps:$4 sm:$0xff]  }
 0x549   :  { %4689 = vmatmul.mubr.msk.bf16.vlgmr.msra.gmra.mrb[8].mxu1 %vm657_vm1, %v755_v40  ;;  %v5012_v40 = vld [vmem:[%s7035_s12 + $0xc] ss:$16 sps:$4 sm:$0xff]  }
 0x54a   :  { %4900 = vmatpush3.bf16.msra.mxu1 %v6046_v16  ;;  %4720 = vmatprep.mubr.msk.f32.mxu1 %vm657_vm1, %v5248_v46 }
 0x54b   :  { %4902 = vmatprep.subr.bf16.mxu1 %v6050_v24  ;;  %1476 = vmatprep.subr.bf16.mxu0 %v5012_v40 }
 0x54e   :  { %4904 = vmatpush3.bf16.msra.mxu1 %v6050_v24 }
 0x54f   :  { %4906 = vmatprep.subr.bf16.mxu1 %v6054_v38 }
 0x552   :  { %4908 = vmatpush3.bf16.msra.mxu1 %v6054_v38 }
 0x553   :  { %4910 = vmatprep.subr.bf16.mxu1 %v6058_v45 }
 0x556   :  { %4912 = vmatpush3.bf16.msra.mxu1 %v6058_v45 }
 0x557   :  { %4723 = vmatprep.subr.bf16.mxu1 %v5624_v62 }
 0x559   :  { %4721 = vmatmul.mubr.msk.f32.vlgmr.msra.gmra.mrb[6].mxu1 %vm657_vm1, %v5250_v44 }
 0x55a   :  { %4724 = vmatpush3.bf16.msra.mxu1 %v967_v54  ;;  %4731 = vmatprep.mubr.msk.bf16.mxu1 %vm5625_vm0, %v5624_v62 }
 0x55b   :  { %4725 = vmatprep.subr.bf16.mxu1 %v5624_v62 }
 0x55e   :  { %4726 = vmatpush3.bf16.msra.mxu1 %v968_v55 }
 0x55f   :  { %4727 = vmatprep.subr.bf16.mxu1 %v5624_v62 }
 0x562   :  { %4728 = vmatpush3.bf16.msra.mxu1 %v969_v60 }
 0x563   :  { %4729 = vmatprep.subr.bf16.mxu1 %v5624_v62 }
 0x566   :  { %4730 = vmatpush3.bf16.msra.mxu1 %v970_v61 }
 0x567   :  { %1423 = vmatprep.subr.bf16.mxu1 %v5009_v51 }
 0x61c   :  { %v797_v36 = vpop.f32.mrb[8].mxu1 }
 0x61d   :  { %v4690_v53 = vpop.f32.mrb[9].mxu1 }
 0x61e   :  { %v800_v54 = vpop.f32.mrb[10].mxu1 }
 0x61f   :  { %v1015_v55 = vpack.c.bf16 %v800_v54, %v797_v36  ;;  %v4691_v60 = vpop.f32.mrb[11].mxu1  ;;  %v5369_v54 = vld [vmem:[%s7058_s23 + $0x10] sm:$0xff] }
 0x621   :  { %4751 = vmatprep.mubr.bf16.mxu0 %v1015_v55 }
 0x62c   :  { %v4722_v61 = vpop.f32.mrb[6].mxu1 }
 0x62d   :  { %5251 = vrcp.f32 %v4722_v61  ;;  %v953_v47 = vpop.f32.mrb[7].mxu1  ;;  %v5021_v61 = vld [vmem:[%s7035_s12 + $0x44] ss:$16 sps:$4 sm:$0xff]  }
 0x62e   :  { %5253 = vrcp.f32 %v953_v47  ;;  %v5024_v47 = vld [vmem:[%s7035_s12 + $0x4c] ss:$16 sps:$4 sm:$0xff]  }
 0x637   :  { %v5252_v48 = vpop.eup %5251 }
 0x638   :  { %v5254_v63 = vpop.eup %5253  ;;  %v965_v0 = vmul.f32 %v5252_v48, %v5250_v44  ;;  %v5013_v44 = vld [vmem:[%s7035_s12 + $0x20] ss:$16 sps:$4 sm:$0xff]  }
 0x639   :  { %v964_v1 = vmul.f32 %v5254_v63, %v5248_v46  ;;  %v5015_v46 = vld [vmem:[%s7035_s12 + $0x24] ss:$16 sps:$4 sm:$0xff]   ;;  %v5019_v48 = vld [vmem:[%s7035_s12 + $0x40] ss:$16 sps:$4 sm:$0xff]  }
 0x63a   :  { %v5027_v63 = vld [vmem:[%s7035_s12 + $0x64] ss:$16 sps:$4 sm:$0xff]  }
 0x63b   :  { %v966_v3 = vpack.c.bf16 %v965_v0, %v964_v1  ;;  %v5030_v0 = vld [vmem:[%s7035_s12 + $0x6c] ss:$16 sps:$4 sm:$0xff]   ;;  %v5025_v1 = vld [vmem:[%s7035_s12 + $0x60] ss:$16 sps:$4 sm:$0xff]  }
 0x63d   :  { %4732 = vmatmul.mubr.msk.bf16.vlgmr.msra.gmra.mrb[12].mxu1 %vm657_vm1, %v966_v3  ;;  %v5028_v3 = vld [vmem:[%s7035_s12 + $0x68] ss:$16 sps:$4 sm:$0xff]  }
 0x63e   :  { %1455 = vmatprep.mubr.bf16.mxu1 %v5623_v30  ;;  %1424 = vmatpush1.bf16.msra.mxu1 %v5007_v43 }
 0x63f   :  { %1425 = vmatprep.subr.bf16.mxu1 %v5015_v46 }
 0x642   :  { %1426 = vmatpush1.bf16.msra.mxu1 %v5013_v44 }
 0x643   :  { %1427 = vmatprep.subr.bf16.mxu1 %v5021_v61 }
 0x646   :  { %1428 = vmatpush1.bf16.msra.mxu1 %v5019_v48 }
 0x647   :  { %1429 = vmatprep.subr.bf16.mxu1 %v5027_v63  ;;  %v6292_v63 = vld [vmem:[#allocation11] ss:$0 sm:$0xff] }
 0x64a   :  { %1430 = vmatpush1.bf16.msra.mxu1 %v5025_v1 }
 0x64b   :  { %1431 = vmatprep.subr.bf16.mxu1 %v5033_v4 }
 0x710   :  { %v1008_v6 = vpop.f32.mrb[12].mxu1 }
 0x711   :  { %v4733_v11 = vpop.f32.mrb[13].mxu1 }
 0x712   :  { %v1011_v12 = vpop.f32.mrb[14].mxu1  ;;  %v5031_v11 = vld [vmem:[%s7035_s12 + $0x80] ss:$16 sps:$4 sm:$0xff]  }
 0x713   :  { %v1016_v13 = vpack.c.bf16 %v1011_v12, %v1008_v6  ;;  %v4734_v14 = vpop.f32.mrb[15].mxu1  ;;  %v5036_v6 = vld [vmem:[%s7035_s12 + $0x8c] ss:$16 sps:$4 sm:$0xff]   ;;  %v5034_v12 = vld [vmem:[%s7035_s12 + $0x88] ss:$16 sps:$4 sm:$0xff]   ;;  %1432 = vmatpush1.bf16.msra.mxu1 %v5031_v11 }
 0x714   :  { %v5042_v14 = vld [vmem:[%s7035_s12 + $0xac] ss:$16 sps:$4 sm:$0xff]  }
 0x715   :  { %4752 = vmatmul.mubr.bf16.vlgmr.msra.gmra.mrb[16].mxu0 %v1016_v13  ;;  %v5039_v13 = vld [vmem:[%s7035_s12 + $0xa4] ss:$16 sps:$4 sm:$0xff]   ;;  %v5058_v11 = vld [vmem:[#allocation13 + $0x80] sm:$0xff]  }
 0x716   :  { %1508 = vmatprep.mubr.bf16.mxu0 %v5623_v30  ;;  %1477 = vmatpush1.bf16.msra.mxu0 %v5010_v39 }
 0x717   :  { %1478 = vmatprep.subr.bf16.mxu0 %v5018_v29  ;;  %1433 = vmatprep.subr.bf16.mxu1 %v5039_v13  ;;  %v5060_v13 = vld [vmem:[#allocation13 + $0xc8] sm:$0xff]  }
 0x71a   :  { %1479 = vmatpush1.bf16.msra.mxu0 %v5016_v7 }
 0x71b   :  { %1480 = vmatprep.subr.bf16.mxu0 %v5024_v47 }
 0x7e8   :  { %v4753_v21 = vpop.f32.mrb[16].mxu0 }
 0x7e9   :  { %v1131_v5 = vadd.f32 %v4753_v21, %v4143_v2  ;;  %v1122_v23 = vpop.f32.mrb[17].mxu0  ;;  %v5040_v21 = vld [vmem:[%s7035_s12 + $0xa8] ss:$16 sps:$4 sm:$0xff]  }
 0x7ea   :  { %v1123_v34 = vadd.f32 %v4143_v2, %v1122_v23  ;;  %v4754_v25 = vpop.f32.mrb[18].mxu0  ;;  %v5048_v23 = vld [vmem:[%s7035_s12 + $0xcc] ss:$16 sps:$4 sm:$0xff]  }
 0x7eb   :  { %v1134_v41 = vadd.f32 %v4754_v25, %v4143_v2  ;;  %v1125_v49 = vpop.f32.mrb[19].mxu0  ;;  %v6198_v55 = vadd.f32 %v5369_v54, %v1131_v5  ;;  %v5045_v5 = vld [vmem:[%s7035_s12 + $0xc4] ss:$16 sps:$4 sm:$0xff]   ;;  %v5046_v25 = vld [vmem:[%s7035_s12 + $0xc8] ss:$16 sps:$4 sm:$0xff]  }
 0x7ec   :  { %v6152_v42 = vadd.f32 %v5367_v26, %v1123_v34  ;;  %v1126_v50 = vadd.f32 %v4143_v2, %v1125_v49  ;;  %v5037_v2 = vld [vmem:[%s7035_s12 + $0xa0] ss:$16 sps:$4 sm:$0xff]   ;;  %v5054_v49 = vld [vmem:[%s7035_s12 + $0xec] ss:$16 sps:$4 sm:$0xff]   ;;  %v6287_v54 = vld [vmem:[#allocation10] ss:$0 sm:$0xff] }
 0x7ed   :  { %v6201_v60 = vadd.f32 %v1134_v41, %v5870_v17  ;;  %v5022_v17 = vld [vmem:[%s7035_s12 + $0x48] ss:$16 sps:$4 sm:$0xff]   ;;  %1434 = vmatpush1.bf16.msra.mxu1 %v5037_v2  ;;  %v5043_v34 = vld [vmem:[%s7035_s12 + $0xc0] ss:$16 sps:$4 sm:$0xff]   ;;  %v5051_v41 = vld [vmem:[%s7035_s12 + $0xe4] ss:$16 sps:$4 sm:$0xff]  }
 0x7ee   :  { %v6157_v27 = vadd.f32 %v5368_v37, %v1126_v50  ;;  %1143 = vadd.xlane.f32.xlu0 %v6152_v42  ;;  %1481 = vmatpush1.bf16.msra.mxu0 %v5022_v17  ;;  %v5049_v26 = vld [vmem:[%s7035_s12 + $0xe0] ss:$16 sps:$4 sm:$0xff]   ;;  %v5052_v50 = vld [vmem:[%s7035_s12 + $0xe8] ss:$16 sps:$4 sm:$0xff]  }
 0x7ef   :  { %1482 = vmatprep.subr.bf16.mxu0 %v5030_v0  ;;  %1435 = vmatprep.subr.bf16.mxu1 %v5045_v5  ;;  %v5062_v2 = vld [vmem:[#allocation13 + $0x88] sm:$0xff]   ;;  %v5064_v5 = vld [vmem:[#allocation13 + $0xd0] sm:$0xff]  }
 0x7f0   :  { %1145 = vadd.xlane.f32.xlu1 %v6157_v27 }
 0x7f1   :  { %1436 = vmatpush1.bf16.msra.mxu1 %v5043_v34  ;;  %v5066_v34 = vld [vmem:[#allocation13 + $0x90] sm:$0xff]  }
 0x7f2   :  { %1483 = vmatpush1.bf16.msra.mxu0 %v5028_v3  ;;  %1437 = vmatprep.subr.bf16.mxu1 %v5051_v41  ;;  %v5068_v41 = vld [vmem:[#allocation13 + $0xd8] sm:$0xff]  }
 0x7f3   :  { %1484 = vmatprep.subr.bf16.mxu0 %v5036_v6  ;;  %v5056_v6 = vld [vmem:[#allocation13 + $0xc0] sm:$0xff]  }
 0x7f5   :  { %1438 = vmatpush1.bf16.msra.mxu1 %v5049_v26  ;;  %v5070_v26 = vld [vmem:[#allocation13 + $0x98] sm:$0xff]  }
 0x7f6   :  { %1485 = vmatpush1.bf16.msra.mxu0 %v5034_v12  ;;  %v5059_v12 = vld [vmem:[#allocation13 + $0x48] sm:$0xff]  }
 0x7f7   :  { %1486 = vmatprep.subr.bf16.mxu0 %v5042_v14  ;;  %v5061_v14 = vld [vmem:[#allocation13 + $0x8] sm:$0xff]  }
 0x7fa   :  { %1487 = vmatpush1.bf16.msra.mxu0 %v5040_v21  ;;  %v5063_v21 = vld [vmem:[#allocation13 + $0x50] sm:$0xff]  }
 0x7fb   :  { %1488 = vmatprep.subr.bf16.mxu0 %v5048_v23  ;;  %v5065_v23 = vld [vmem:[#allocation13 + $0x10] sm:$0xff]  }
 0x7fe   :  { %1489 = vmatpush1.bf16.msra.mxu0 %v5046_v25  ;;  %v5067_v25 = vld [vmem:[#allocation13 + $0x58] sm:$0xff]  }
 0x7ff   :  { %1490 = vmatprep.subr.bf16.mxu0 %v5054_v49  ;;  %v5069_v49 = vld [vmem:[#allocation13 + $0x18] sm:$0xff]  }
 0x802   :  { %1491 = vmatpush1.bf16.msra.mxu0 %v5052_v50  ;;  %v5071_v50 = vld [vmem:[#allocation13 + $0x60] sm:$0xff]  }
 0x803   :  { %4485 = vmatprep.subr.bf16.mxu0 %v5056_v6 }
 0x87b   :  { %v1144_v8 = vpop.xlane.xlu0 %1143 }
 0x87c   :  { %v1151_v9 = vmul.f32 0.0078125, %v1144_v8 }
 0x87d   :  { %v1146_v10 = vpop.xlane.xlu1 %1145 }
 0x87e   :  { %v6186_v35 = vsub.f32 %v6152_v42, %v1151_v9  ;;  %v1152_v22 = vmul.f32 0.0078125, %v1146_v10 }
 0x880   :  { %v6189_v20 = vsub.f32 %v6157_v27, %v1152_v22  ;;  %v1159_v36 = vmul.f32 %v6186_v35, %v6186_v35 }
 0x882   :  { %1163 = vadd.xlane.f32.xlu0 %v1159_v36  ;;  %v1160_v53 = vmul.f32 %v6189_v20, %v6189_v20 }
 0x884   :  { %1165 = vadd.xlane.f32.xlu1 %v1160_v53 }
 0x886   :  { %1147 = vadd.xlane.f32.xlu0 %v6198_v55 }
 0x888   :  { %1149 = vadd.xlane.f32.xlu1 %v6201_v60 }
 0x90f   :  { %v1164_v37 = vpop.xlane.xlu0 %1163 }
 0x910   :  { %v1171_v43 = vmul.f32 0.0078125, %v1164_v37  ;;  %v5072_v37 = vld [vmem:[#allocation13 + $0xe0] sm:$0xff]  }
 0x911   :  { %v1166_v51 = vpop.xlane.xlu1 %1165 }
 0x912   :  { %v1175_v39 = vadd.f32 1e-05, %v1171_v43  ;;  %v1172_v40 = vmul.f32 0.0078125, %v1166_v51  ;;  %v5073_v43 = vld [vmem:[#allocation13 + $0x20] sm:$0xff]  }
 0x913   :  { %v1148_v46 = vpop.xlane.xlu0 %1147  ;;  %v5074_v51 = vld [vmem:[#allocation13 + $0xa0] sm:$0xff]  }
 0x914   :  { %5255 = vrsqrt.f32 %v1175_v39  ;;  %v1176_v29 = vadd.f32 1e-05, %v1172_v40  ;;  %v1153_v44 = vmul.f32 0.0078125, %v1148_v46  ;;  %v5075_v39 = vld [vmem:[#allocation13 + $0x68] sm:$0xff]  }
 0x915   :  { %v1150_v7 = vpop.xlane.xlu1 %1149  ;;  %v5076_v40 = vld [vmem:[#allocation13 + $0xe8] sm:$0xff]  }
 0x916   :  { %5257 = vrsqrt.f32 %v1176_v29  ;;  %v6278_v8 = vsub.f32 %v6198_v55, %v1153_v44  ;;  %v1154_v9 = vmul.f32 0.0078125, %v1150_v7  ;;  %v5077_v46 = vld [vmem:[#allocation13 + $0x28] sm:$0xff]   ;;  %v5079_v44 = vld [vmem:[#allocation13 + $0x70] sm:$0xff]  }
 0x917   :  { %v5078_v29 = vld [vmem:[#allocation13 + $0xa8] sm:$0xff]   ;;  %v5080_v7 = vld [vmem:[#allocation13 + $0xf0] sm:$0xff]  }
 0x918   :  { %v6281_v10 = vsub.f32 %v6201_v60, %v1154_v9  ;;  %v1161_v22 = vmul.f32 %v6278_v8, %v6278_v8  ;;  %v5081_v9 = vld [vmem:[#allocation13 + $0x30] sm:$0xff]  }
 0x91a   :  { %1167 = vadd.xlane.f32.xlu0 %v1161_v22  ;;  %v1162_v36 = vmul.f32 %v6281_v10, %v6281_v10  ;;  %v5082_v22 = vld [vmem:[#allocation13 + $0xb0] sm:$0xff]  }
 0x91c   :  { %1169 = vadd.xlane.f32.xlu1 %v1162_v36  ;;  %v5083_v36 = vld [vmem:[#allocation13 + $0x78] sm:$0xff]  }
 0x91e   :  { %v5256_v53 = vpop.eup %5255 }
 0x91f   :  { %v1183_v61 = vmul.f32 %v5256_v53, %v6186_v35  ;;  %v5055_v35 = vld [vmem:[#allocation13 + $0x40] sm:$0xff]   ;;  %v5084_v53 = vld [vmem:[#allocation13 + $0xf8] sm:$0xff]  }
 0x920   :  { %v5258_v47 = vpop.eup %5257  ;;  %4457 = vmatprep.subr.bf16.mxu1 %v5055_v35 }
 0x921   :  { %v1184_v48 = vmul.f32 %v5258_v47, %v6189_v20  ;;  %v1193_v17 = vmul.f32 %v6287_v54, %v1183_v61  ;;  %v5057_v20 = vld [vmem:[#allocation13] sm:$0xff]   ;;  %v5085_v61 = vld [vmem:[#allocation13 + $0x38] sm:$0xff]  }
 0x922   :  { %v5086_v47 = vld [vmem:[#allocation13 + $0xb8] sm:$0xff]  }
 0x923   :  { %v1194_v0 = vmul.f32 %v6287_v54, %v1184_v48  ;;  %v1203_v1 = vadd.f32 %v6292_v63, %v1193_v17 }
 0x925   :  { %v1204_v3 = vadd.f32 %v6292_v63, %v1194_v0 }
 0x927   :  { %v1207_v4 = vpack.c.bf16 %v1204_v3, %v1203_v1 }
 0x929   :  { %1456 = vmatmul.mubr.bf16.vlgmr.msra.gmra.mrb[16].mxu1 %v1207_v4  ;;  %1509 = vmatmul.mubr.bf16.vlgmr.msra.gmra.mrb[20].mxu0 %v1207_v4 }
 0x92a   :  { %1465 = vmatprep.mubr.bf16.mxu1 %v5623_v30  ;;  %1518 = vmatprep.mubr.bf16.mxu0 %v5623_v30 }
 0x92b   :  { %4458 = vmatpush3.bf16.msra.mxu1 %v5057_v20  ;;  %4486 = vmatpush3.bf16.msra.mxu0 %v5058_v11 }
 0x92c   :  { %4459 = vmatprep.subr.bf16.mxu1 %v5059_v12  ;;  %4487 = vmatprep.subr.bf16.mxu0 %v5060_v13 }
 0x92f   :  { %4460 = vmatpush3.bf16.msra.mxu1 %v5061_v14  ;;  %4488 = vmatpush3.bf16.msra.mxu0 %v5062_v2 }
 0x930   :  { %4461 = vmatprep.subr.bf16.mxu1 %v5063_v21  ;;  %4489 = vmatprep.subr.bf16.mxu0 %v5064_v5  ;;  %v1241_v5 = vld [vmem:[%s7036_s13] sm:$0xf] }
 0x933   :  { %4462 = vmatpush3.bf16.msra.mxu1 %v5065_v23  ;;  %4490 = vmatpush3.bf16.msra.mxu0 %v5066_v34  ;;  %v6310_v23 = vrot.slane %v1241_v5, %v5893_v19 }
 0x934   :  { %4463 = vmatprep.subr.bf16.mxu1 %v5067_v25  ;;  %4491 = vmatprep.subr.bf16.mxu0 %v5068_v41 }
 0x937   :  { %4464 = vmatpush3.bf16.msra.mxu1 %v5069_v49  ;;  %4492 = vmatpush3.bf16.msra.mxu0 %v5070_v26 }
 0x938   :  { %4465 = vmatprep.subr.bf16.mxu1 %v5071_v50  ;;  %4493 = vmatprep.subr.bf16.mxu0 %v5072_v37 }
 0x93b   :  { %4466 = vmatpush3.bf16.msra.mxu1 %v5073_v43  ;;  %4494 = vmatpush3.bf16.msra.mxu0 %v5074_v51 }
 0x93c   :  { %4467 = vmatprep.subr.bf16.mxu1 %v5075_v39  ;;  %4495 = vmatprep.subr.bf16.mxu0 %v5076_v40 }
 0x93f   :  { %4468 = vmatpush3.bf16.msra.mxu1 %v5077_v46  ;;  %4496 = vmatpush3.bf16.msra.mxu0 %v5078_v29 }
 0x940   :  { %4469 = vmatprep.subr.bf16.mxu1 %v5079_v44  ;;  %4497 = vmatprep.subr.bf16.mxu0 %v5080_v7 }
 0x943   :  { %4470 = vmatpush3.bf16.msra.mxu1 %v5081_v9  ;;  %4498 = vmatpush3.bf16.msra.mxu0 %v5082_v22 }
 0x944   :  { %4471 = vmatprep.subr.bf16.mxu1 %v5083_v36  ;;  %4499 = vmatprep.subr.bf16.mxu0 %v5084_v53 }
 0x947   :  { %4472 = vmatpush3.bf16.msra.mxu1 %v5085_v61  ;;  %4500 = vmatpush3.bf16.msra.mxu0 %v5086_v47 }
 0x9a7   :  { %v1168_v48 = vpop.xlane.xlu0 %1167 }
 0x9a8   :  { %v1173_v17 = vmul.f32 0.0078125, %v1168_v48 }
 0x9a9   :  { %v1170_v0 = vpop.xlane.xlu1 %1169 }
 0x9aa   :  { %v1177_v1 = vadd.f32 1e-05, %v1173_v17  ;;  %v1174_v3 = vmul.f32 0.0078125, %v1170_v0 }
 0x9ac   :  { %5259 = vrsqrt.f32 %v1177_v1  ;;  %v1178_v4 = vadd.f32 1e-05, %v1174_v3 }
 0x9ae   :  { %5261 = vrsqrt.f32 %v1178_v4 }
 0x9b6   :  { %v5260_v35 = vpop.eup %5259 }
 0x9b7   :  { %v1185_v6 = vmul.f32 %v5260_v35, %v6278_v8  ;;  %v1257_v8 = vsub.s32 3, %v5884_v15 }
 0x9b8   :  { %v5262_v20 = vpop.eup %5261 }
 0x9b9   :  { %v1186_v11 = vmul.f32 %v5262_v20, %v6281_v10  ;;  %v1195_v12 = vmul.f32 %v6287_v54, %v1185_v6  ;;  %v6313_v10 = vrot.slane %v1241_v5, %v5944_v52 }
 0x9bb   :  { %v1196_v13 = vmul.f32 %v6287_v54, %v1186_v11  ;;  %v1205_v14 = vadd.f32 %v6292_v63, %v1195_v12  ;;  %v6316_v54 = vrot.slane %v1241_v5, %v5887_v18 }
 0x9bd   :  { %v1206_v2 = vadd.f32 %v6292_v63, %v1196_v13  ;;  %v6320_v63 = vrot.slane %v1241_v5, %v1257_v8 }
 0x9bf   :  { %v1208_v21 = vpack.c.bf16 %v1206_v2, %v1205_v14 }
 0x9c1   :  { %1466 = vmatmul.mubr.bf16.gmra.mrb[20].mxu1 %v1208_v21  ;;  %1519 = vmatmul.mubr.bf16.gmra.mrb[24].mxu0 %v1208_v21 }
 0x9fc   :  { %v1457_v34 = vpop.f32.mrb[16].mxu1  ;;  %v1510_v25 = vpop.f32.mrb[20].mxu0 }
 0x9fd   :  { %v6323_v41 = vadd.f32 %v1457_v34, %v6310_v23  ;;  %v6326_v49 = vadd.f32 %v1510_v25, %v6313_v10  ;;  %v1459_v26 = vpop.f32.mrb[17].mxu1  ;;  %v1512_v50 = vpop.f32.mrb[21].mxu0 }
 0x9fe   :  { %v6329_v37 = vadd.f32 %v1459_v26, %v6316_v54  ;;  %v6332_v43 = vadd.f32 %v1512_v50, %v6320_v63  ;;  %v1461_v51 = vpop.f32.mrb[18].mxu1  ;;  %v1514_v39 = vpop.f32.mrb[22].mxu0 }
 0x9ff   :  { %v1529_v40 = vmul.f32 %v6323_v41, %v6323_v41  ;;  %v1531_v46 = vmul.f32 %v6326_v49, %v6326_v49  ;;  %v6339_v29 = vadd.f32 %v1461_v51, %v6310_v23  ;;  %v6342_v44 = vadd.f32 %v1514_v39, %v6313_v10  ;;  %v1463_v7 = vpop.f32.mrb[19].mxu1  ;;  %v1516_v9 = vpop.f32.mrb[23].mxu0 }
 0xa00   :  { %v1530_v22 = vmul.f32 %v6329_v37, %v6329_v37  ;;  %v1532_v36 = vmul.f32 %v6332_v43, %v6332_v43  ;;  %v6349_v53 = vadd.f32 %v1463_v7, %v6316_v54  ;;  %v6352_v61 = vadd.f32 %v1516_v9, %v6320_v63 }
 0xa01   :  { %v1545_v47 = vmul.f32 %v1529_v40, %v6323_v41  ;;  %v1547_v48 = vmul.f32 %v1531_v46, %v6326_v49  ;;  %v1533_v17 = vmul.f32 %v6339_v29, %v6339_v29  ;;  %v1535_v0 = vmul.f32 %v6342_v44, %v6342_v44 }
 0xa02   :  { %v1546_v1 = vmul.f32 %v1530_v22, %v6329_v37  ;;  %v1548_v3 = vmul.f32 %v1532_v36, %v6332_v43  ;;  %v1534_v4 = vmul.f32 %v6349_v53, %v6349_v53  ;;  %v1536_v35 = vmul.f32 %v6352_v61, %v6352_v61 }
 0xa03   :  { %v1561_v6 = vmul.f32 0.044715, %v1545_v47  ;;  %v1563_v20 = vmul.f32 0.044715, %v1547_v48  ;;  %v1549_v11 = vmul.f32 %v1533_v17, %v6339_v29  ;;  %v1551_v12 = vmul.f32 %v1535_v0, %v6342_v44 }
 0xa04   :  { %v1562_v13 = vmul.f32 0.044715, %v1546_v1  ;;  %v1564_v14 = vmul.f32 0.044715, %v1548_v3  ;;  %v1550_v2 = vmul.f32 %v1534_v4, %v6349_v53  ;;  %v1552_v21 = vmul.f32 %v1536_v35, %v6352_v61 }
 0xa05   :  { %v1577_v5 = vadd.f32 %v1561_v6, %v6323_v41  ;;  %v1579_v34 = vadd.f32 %v1563_v20, %v6326_v49  ;;  %v1565_v25 = vmul.f32 0.044715, %v1549_v11  ;;  %v1567_v26 = vmul.f32 0.044715, %v1551_v12 }
 0xa06   :  { %v1578_v50 = vadd.f32 %v1562_v13, %v6329_v37  ;;  %v1580_v51 = vadd.f32 %v1564_v14, %v6332_v43  ;;  %v1566_v39 = vmul.f32 0.044715, %v1550_v2  ;;  %v1568_v40 = vmul.f32 0.044715, %v1552_v21 }
 0xa07   :  { %v1593_v46 = vmul.f32 0.7978846, %v1577_v5  ;;  %v1595_v7 = vmul.f32 0.7978846, %v1579_v34  ;;  %v1581_v9 = vadd.f32 %v1565_v25, %v6339_v29  ;;  %v1583_v22 = vadd.f32 %v1567_v26, %v6342_v44 }
 0xa08   :  { %v1594_v36 = vmul.f32 0.7978846, %v1578_v50  ;;  %v1596_v47 = vmul.f32 0.7978846, %v1580_v51  ;;  %v1582_v48 = vadd.f32 %v1566_v39, %v6349_v53  ;;  %v1584_v17 = vadd.f32 %v1568_v40, %v6352_v61 }
 0xa09   :  { %5263 = vtanh.f32 %v1593_v46  ;;  %v1597_v0 = vmul.f32 0.7978846, %v1581_v9  ;;  %v1599_v1 = vmul.f32 0.7978846, %v1583_v22 }
 0xa0a   :  { %5265 = vtanh.f32 %v1595_v7  ;;  %v1598_v3 = vmul.f32 0.7978846, %v1582_v48  ;;  %v1600_v4 = vmul.f32 0.7978846, %v1584_v17 }
 0xa0b   :  { %5267 = vtanh.f32 %v1594_v36 }
 0xa0c   :  { %5269 = vtanh.f32 %v1596_v47 }
 0xa0d   :  { %5271 = vtanh.f32 %v1597_v0 }
 0xa0e   :  { %5273 = vtanh.f32 %v1599_v1 }
 0xa0f   :  { %5275 = vtanh.f32 %v1598_v3 }
 0xa10   :  { %5277 = vtanh.f32 %v1600_v4 }
 0xa13   :  { %v5264_v35 = vpop.eup %5263 }
 0xa14   :  { %v5266_v6 = vpop.eup %5265  ;;  %v1625_v20 = vadd.f32 1.0, %v5264_v35 }
 0xa15   :  { %v5268_v11 = vpop.eup %5267  ;;  %v1627_v12 = vadd.f32 1.0, %v5266_v6 }
 0xa16   :  { %v5270_v13 = vpop.eup %5269  ;;  %v1626_v14 = vadd.f32 1.0, %v5268_v11  ;;  %v1641_v34 = vmul.f32 0.5, %v1625_v20 }
 0xa17   :  { %v5272_v2 = vpop.eup %5271  ;;  %v1628_v21 = vadd.f32 1.0, %v5270_v13  ;;  %v1643_v50 = vmul.f32 0.5, %v1627_v12 }
 0xa18   :  { %v5274_v5 = vpop.eup %5273  ;;  %v1629_v25 = vadd.f32 1.0, %v5272_v2  ;;  %v1642_v7 = vmul.f32 0.5, %v1626_v14  ;;  %v1657_v47 = vmul.f32 %v1641_v34, %v6323_v41 }
 0xa19   :  { %v5276_v26 = vpop.eup %5275  ;;  %v1631_v51 = vadd.f32 1.0, %v5274_v5  ;;  %v1644_v36 = vmul.f32 0.5, %v1628_v21  ;;  %v1659_v0 = vmul.f32 %v1643_v50, %v6326_v49 }
 0xa1a   :  { %v5278_v39 = vpop.eup %5277  ;;  %v1645_v40 = vmul.f32 0.5, %v1629_v25  ;;  %v1630_v46 = vadd.f32 1.0, %v5276_v26  ;;  %v1658_v35 = vmul.f32 %v1642_v7, %v6329_v37 }
 0xa1b   :  { %v1647_v9 = vmul.f32 0.5, %v1631_v51  ;;  %v1632_v22 = vadd.f32 1.0, %v5278_v39  ;;  %v1660_v11 = vmul.f32 %v1644_v36, %v6332_v43 }
 0xa1c   :  { %v1661_v48 = vmul.f32 %v1645_v40, %v6339_v29  ;;  %v1646_v17 = vmul.f32 0.5, %v1630_v46 }
 0xa1d   :  { %v1663_v1 = vmul.f32 %v1647_v9, %v6342_v44  ;;  %v1648_v3 = vmul.f32 0.5, %v1632_v22 }
 0xa1e   :  { %v1673_v4 = vpack.c.bf16 %v1661_v48, %v1657_v47  ;;  %v1662_v6 = vmul.f32 %v1646_v17, %v6349_v53 }
 0xa1f   :  { %v1675_v20 = vpack.c.bf16 %v1663_v1, %v1659_v0  ;;  %v1664_v12 = vmul.f32 %v1648_v3, %v6352_v61 }
 0xa20   :  { %v1674_v13 = vpack.c.bf16 %v1662_v6, %v1658_v35 }
 0xa21   :  { %v1676_v41 = vpack.c.bf16 %v1664_v12, %v1660_v11 }
 0xa22   :  { %1969 = vmatprep.mubr.bf16.mxu1 %v1674_v13 }
 0xa23   :  { %2018 = vmatprep.mubr.bf16.mxu0 %v1676_v41  ;;  %1970 = vmatmul.mubr.bf16.vlgmr.msra.gmra.mrb[24].mxu1 %v1673_v4 }
 0xa24   :  { %2019 = vmatmul.mubr.bf16.vlgmr.msra.gmra.mrb[28].mxu0 %v1675_v20 }
 0xa94   :  { %v1467_v49 = vpop.f32.mrb[20].mxu1  ;;  %v1520_v29 = vpop.f32.mrb[24].mxu0 }
 0xa95   :  { %v6387_v44 = vadd.f32 %v1467_v49, %v6310_v23  ;;  %v6390_v37 = vadd.f32 %v1520_v29, %v6313_v10  ;;  %v1469_v53 = vpop.f32.mrb[21].mxu1  ;;  %v1522_v14 = vpop.f32.mrb[25].mxu0 }
 0xa96   :  { %v6393_v43 = vadd.f32 %v1469_v53, %v6316_v54  ;;  %v6396_v61 = vadd.f32 %v1522_v14, %v6320_v63  ;;  %v1471_v2 = vpop.f32.mrb[22].mxu1  ;;  %v1524_v21 = vpop.f32.mrb[26].mxu0 }
 0xa97   :  { %v1537_v5 = vmul.f32 %v6387_v44, %v6387_v44  ;;  %v1539_v34 = vmul.f32 %v6390_v37, %v6390_v37  ;;  %v6403_v25 = vadd.f32 %v1471_v2, %v6310_v23  ;;  %v6406_v26 = vadd.f32 %v1524_v21, %v6313_v10  ;;  %v1473_v50 = vpop.f32.mrb[23].mxu1  ;;  %v1526_v51 = vpop.f32.mrb[27].mxu0 }
 0xa98   :  { %v1538_v39 = vmul.f32 %v6393_v43, %v6393_v43  ;;  %v1540_v40 = vmul.f32 %v6396_v61, %v6396_v61  ;;  %v6413_v46 = vadd.f32 %v1473_v50, %v6316_v54  ;;  %v6416_v7 = vadd.f32 %v1526_v51, %v6320_v63 }
 0xa99   :  { %v1553_v23 = vmul.f32 %v1537_v5, %v6387_v44  ;;  %v1555_v9 = vmul.f32 %v1539_v34, %v6390_v37  ;;  %v1541_v10 = vmul.f32 %v6403_v25, %v6403_v25  ;;  %v1543_v22 = vmul.f32 %v6406_v26, %v6406_v26 }
 0xa9a   :  { %v1554_v36 = vmul.f32 %v1538_v39, %v6393_v43  ;;  %v1556_v47 = vmul.f32 %v1540_v40, %v6396_v61  ;;  %v1542_v54 = vmul.f32 %v6413_v46, %v6413_v46  ;;  %v1544_v63 = vmul.f32 %v6416_v7, %v6416_v7 }
 0xa9b   :  { %v1569_v48 = vmul.f32 0.044715, %v1553_v23  ;;  %v1571_v17 = vmul.f32 0.044715, %v1555_v9  ;;  %v1557_v0 = vmul.f32 %v1541_v10, %v6403_v25  ;;  %v1559_v1 = vmul.f32 %v1543_v22, %v6406_v26 }
 0xa9c   :  { %v1570_v3 = vmul.f32 0.044715, %v1554_v36  ;;  %v1572_v4 = vmul.f32 0.044715, %v1556_v47  ;;  %v1558_v35 = vmul.f32 %v1542_v54, %v6413_v46  ;;  %v1560_v6 = vmul.f32 %v1544_v63, %v6416_v7 }
 0xa9d   :  { %v1585_v20 = vadd.f32 %v1569_v48, %v6387_v44  ;;  %v1587_v11 = vadd.f32 %v1571_v17, %v6390_v37  ;;  %v1573_v12 = vmul.f32 0.044715, %v1557_v0  ;;  %v1575_v13 = vmul.f32 0.044715, %v1559_v1 }
 0xa9e   :  { %v1586_v41 = vadd.f32 %v1570_v3, %v6393_v43  ;;  %v1588_v49 = vadd.f32 %v1572_v4, %v6396_v61  ;;  %v1574_v29 = vmul.f32 0.044715, %v1558_v35  ;;  %v1576_v53 = vmul.f32 0.044715, %v1560_v6 }
 0xa9f   :  { %v1601_v14 = vmul.f32 0.7978846, %v1585_v20  ;;  %v1603_v2 = vmul.f32 0.7978846, %v1587_v11  ;;  %v1589_v21 = vadd.f32 %v1573_v12, %v6403_v25  ;;  %v1591_v5 = vadd.f32 %v1575_v13, %v6406_v26 }
 0xaa0   :  { %v1602_v34 = vmul.f32 0.7978846, %v1586_v41  ;;  %v1604_v50 = vmul.f32 0.7978846, %v1588_v49  ;;  %v1590_v51 = vadd.f32 %v1574_v29, %v6413_v46  ;;  %v1592_v39 = vadd.f32 %v1576_v53, %v6416_v7 }
 0xaa1   :  { %5279 = vtanh.f32 %v1601_v14  ;;  %v1605_v40 = vmul.f32 0.7978846, %v1589_v21  ;;  %v1607_v23 = vmul.f32 0.7978846, %v1591_v5 }
 0xaa2   :  { %5281 = vtanh.f32 %v1603_v2  ;;  %v1606_v9 = vmul.f32 0.7978846, %v1590_v51  ;;  %v1608_v10 = vmul.f32 0.7978846, %v1592_v39 }
 0xaa3   :  { %5283 = vtanh.f32 %v1602_v34 }
 0xaa4   :  { %5285 = vtanh.f32 %v1604_v50 }
 0xaa5   :  { %5287 = vtanh.f32 %v1605_v40 }
 0xaa6   :  { %5289 = vtanh.f32 %v1607_v23 }
 0xaa7   :  { %5291 = vtanh.f32 %v1606_v9 }
 0xaa8   :  { %5293 = vtanh.f32 %v1608_v10 }
 0xaab   :  { %v5280_v22 = vpop.eup %5279 }
 0xaac   :  { %v5282_v36 = vpop.eup %5281  ;;  %v1633_v47 = vadd.f32 1.0, %v5280_v22 }
 0xaad   :  { %v5284_v54 = vpop.eup %5283  ;;  %v1635_v63 = vadd.f32 1.0, %v5282_v36 }
 0xaae   :  { %v5286_v48 = vpop.eup %5285  ;;  %v1634_v17 = vadd.f32 1.0, %v5284_v54  ;;  %v1649_v35 = vmul.f32 0.5, %v1633_v47 }
 0xaaf   :  { %v5288_v0 = vpop.eup %5287  ;;  %v1636_v1 = vadd.f32 1.0, %v5286_v48  ;;  %v1651_v11 = vmul.f32 0.5, %v1635_v63 }
 0xab0   :  { %v5290_v3 = vpop.eup %5289  ;;  %v1637_v4 = vadd.f32 1.0, %v5288_v0  ;;  %v1650_v41 = vmul.f32 0.5, %v1634_v17  ;;  %v1665_v21 = vmul.f32 %v1649_v35, %v6387_v44 }
 0xab1   :  { %v5292_v6 = vpop.eup %5291  ;;  %v1639_v20 = vadd.f32 1.0, %v5290_v3  ;;  %v1652_v53 = vmul.f32 0.5, %v1636_v1  ;;  %v1667_v50 = vmul.f32 %v1651_v11, %v6390_v37  ;;  %v4218_v1 = vld [vmem:[%s7038_s15] ss:$0 sm:$0xff]  ;;  %v5087_v11 = vld [vmem:[#allocation8 + $0xc0] ss:$12 sps:$4 sm:$0xff]  }
 0xab2   :  { %v5294_v12 = vpop.eup %5293  ;;  %v1638_v13 = vadd.f32 1.0, %v5292_v6  ;;  %v1653_v49 = vmul.f32 0.5, %v1637_v4  ;;  %v1666_v39 = vmul.f32 %v1650_v41, %v6393_v43  ;;  %v5090_v41 = vld [vmem:[#allocation8 + $0xd8] ss:$12 sps:$4 sm:$0xff]  }
 0xab3   :  { %v1640_v29 = vadd.f32 1.0, %v5294_v12  ;;  %v1655_v14 = vmul.f32 0.5, %v1639_v20  ;;  %v1668_v9 = vmul.f32 %v1652_v53, %v6396_v61  ;;  %v5089_v12 = vld [vmem:[#allocation8 + $0xc4] ss:$12 sps:$4 sm:$0xff]  }
 0xab4   :  { %v1654_v2 = vmul.f32 0.5, %v1638_v13  ;;  %v1669_v5 = vmul.f32 %v1653_v49, %v6403_v25  ;;  %v5092_v13 = vld [vmem:[#allocation8 + $0xdc] ss:$12 sps:$4 sm:$0xff]   ;;  %2299 = vmatprep.subr.bf16.mxu1 %v5089_v12 }
 0xab5   :  { %v1656_v34 = vmul.f32 0.5, %v1640_v29  ;;  %v1671_v51 = vmul.f32 %v1655_v14, %v6406_v26  ;;  %2300 = vmatpush1.bf16.msra.mxu1 %v5087_v11  ;;  %v5112_v11 = vld [vmem:[#allocation8 + $0xe0] ss:$12 sps:$4 sm:$0xff]  }
 0xab6   :  { %v1670_v40 = vmul.f32 %v1654_v2, %v6413_v46  ;;  %v1677_v23 = vpack.c.bf16 %v1669_v5, %v1665_v21  ;;  %2301 = vmatprep.subr.bf16.mxu1 %v5092_v13 }
 0xab7   :  { %v1672_v10 = vmul.f32 %v1656_v34, %v6416_v7  ;;  %v1679_v22 = vpack.c.bf16 %v1671_v51, %v1667_v50 }
 0xab8   :  { %v1678_v36 = vpack.c.bf16 %v1670_v40, %v1666_v39 }
 0xab9   :  { %v1680_v47 = vpack.c.bf16 %v1672_v10, %v1668_v9  ;;  %2302 = vmatpush1.bf16.msra.mxu1 %v5090_v41 }
 0xaba   :  { %1977 = vmatprep.mubr.bf16.mxu1 %v1678_v36 }
 0xabb   :  { %2026 = vmatprep.mubr.bf16.mxu0 %v1680_v47  ;;  %1978 = vmatmul.mubr.bf16.gmra.mrb[28].mxu1 %v1677_v23 }
 0xabc   :  { %2027 = vmatmul.mubr.bf16.gmra.mrb[32].mxu0 %v1679_v22  ;;  %2331 = vmatprep.mubr.bf16.mxu1 %v5623_v30 }
 0xaf6   :  { %v4473_v44 = vpop.f32.mrb[24].mxu1 }
 0xaf7   :  { %v4501_v37 = vpop.f32.mrb[28].mxu0  ;;  %v4474_v25 = vpop.f32.mrb[25].mxu1 }
 0xaf8   :  { %v4475_v43 = vadd.f32 %v4474_v25, %v4473_v44  ;;  %v4502_v26 = vpop.f32.mrb[29].mxu0  ;;  %v4476_v46 = vpop.f32.mrb[26].mxu1 }
 0xaf9   :  { %v4503_v54 = vadd.f32 %v4502_v26, %v4501_v37  ;;  %v4504_v63 = vpop.f32.mrb[30].mxu0  ;;  %v4477_v61 = vpop.f32.mrb[27].mxu1 }
 0xafa   :  { %v4478_v48 = vadd.f32 %v4477_v61, %v4476_v46  ;;  %v4505_v7 = vpop.f32.mrb[31].mxu0  ;;  %v5096_v61 = vld [vmem:[#allocation8 + $0x108] ss:$12 sps:$4 sm:$0xff]  }
 0xafb   :  { %v2021_v17 = vadd.f32 %v4503_v54, %v4475_v43  ;;  %v4506_v0 = vadd.f32 %v4505_v7, %v4504_v63  ;;  %v5095_v54 = vld [vmem:[#allocation8 + $0xf4] ss:$12 sps:$4 sm:$0xff]   ;;  %v5093_v63 = vld [vmem:[#allocation8 + $0xf0] ss:$12 sps:$4 sm:$0xff]  }
 0xafc   :  { %2303 = vmatprep.subr.bf16.mxu1 %v5095_v54  ;;  %v5099_v7 = vld [vmem:[#allocation8 + $0x120] ss:$12 sps:$4 sm:$0xff]   ;;  %v5113_v54 = vld [vmem:[#allocation8 + $0xf8] ss:$12 sps:$4 sm:$0xff]  }
 0xafd   :  { %v2035_v3 = vadd.f32 %v2021_v17, %v6152_v42  ;;  %v2024_v4 = vadd.f32 %v4506_v0, %v4478_v48  ;;  %2304 = vmatpush1.bf16.msra.mxu1 %v5093_v63  ;;  %v5101_v48 = vld [vmem:[#allocation8 + $0x124] ss:$12 sps:$4 sm:$0xff]   ;;  %v5107_v0 = vld [vmem:[#allocation8 + $0x154] ss:$12 sps:$4 sm:$0xff]  }
 0xafe   :  { %v5102_v17 = vld [vmem:[#allocation8 + $0x138] ss:$12 sps:$4 sm:$0xff]   ;;  %v5114_v63 = vld [vmem:[#allocation8 + $0x110] ss:$12 sps:$4 sm:$0xff]  }
 0xaff   :  { %v2036_v35 = vadd.f32 %v2024_v4, %v6157_v27  ;;  %v6456_v6 = vadd.f32 %v4218_v1, %v2035_v3  ;;  %v5108_v3 = vld [vmem:[#allocation8 + $0x168] ss:$12 sps:$4 sm:$0xff]   ;;  %v5110_v4 = vld [vmem:[#allocation8 + $0x16c] ss:$12 sps:$4 sm:$0xff]  }
 0xb01   :  { %2054 = vadd.xlane.f32.xlu0 %v6456_v6  ;;  %v6459_v20 = vadd.f32 %v4218_v1, %v2036_v35  ;;  %v5111_v35 = vld [vmem:[#allocation8 + $0xc8] ss:$12 sps:$4 sm:$0xff]  }
 0xb02   :  { %4755 = vmatprep.subr.bf16.mxu0 %v5111_v35 }
 0xb03   :  { %2056 = vadd.xlane.f32.xlu1 %v6459_v20  ;;  %4756 = vmatpush3.bf16.msra.mxu0 %v5111_v35 }
 0xb04   :  { %4757 = vmatprep.subr.bf16.mxu0 %v5112_v11 }
 0xb07   :  { %4758 = vmatpush3.bf16.msra.mxu0 %v5112_v11 }
 0xb08   :  { %4759 = vmatprep.subr.bf16.mxu0 %v5113_v54 }
 0xb0b   :  { %4760 = vmatpush3.bf16.msra.mxu0 %v5113_v54 }
 0xb0c   :  { %4761 = vmatprep.subr.bf16.mxu0 %v5114_v63 }
 0xb0f   :  { %4762 = vmatpush3.bf16.msra.mxu0 %v5114_v63 }
 0xb8e   :  { %v2055_v42 = vpop.xlane.xlu0 %2054  ;;  %v4479_v49 = vpop.f32.mrb[28].mxu1 }
 0xb8f   :  { %v2062_v29 = vmul.f32 0.0078125, %v2055_v42  ;;  %v4507_v27 = vpop.f32.mrb[32].mxu0  ;;  %v4480_v53 = vpop.f32.mrb[29].mxu1 }
 0xb90   :  { %v4508_v14 = vpop.f32.mrb[33].mxu0  ;;  %v2057_v2 = vpop.xlane.xlu1 %2056  ;;  %v4481_v21 = vadd.f32 %v4480_v53, %v4479_v49 }
 0xb91   :  { %v6463_v5 = vsub.f32 %v6456_v6, %v2062_v29  ;;  %v4509_v34 = vadd.f32 %v4508_v14, %v4507_v27  ;;  %v2063_v50 = vmul.f32 0.0078125, %v2057_v2  ;;  %v4482_v51 = vpop.f32.mrb[30].mxu1  ;;  %v4510_v39 = vpop.f32.mrb[34].mxu0 }
 0xb92   :  { %v4483_v40 = vpop.f32.mrb[31].mxu1  ;;  %v4511_v23 = vpop.f32.mrb[35].mxu0 }
 0xb93   :  { %v6466_v9 = vsub.f32 %v6459_v20, %v2063_v50  ;;  %v2029_v10 = vadd.f32 %v4509_v34, %v4481_v21  ;;  %v4484_v22 = vadd.f32 %v4483_v40, %v4482_v51  ;;  %v4512_v36 = vadd.f32 %v4511_v23, %v4510_v39  ;;  %v4219_v40 = vld [vmem:[#allocation5 + $0x1] ss:$0 sm:$0xff] }
 0xb94   :  { %v2070_v47 = vmul.f32 %v6463_v5, %v6463_v5 }
 0xb95   :  { %v2037_v44 = vadd.f32 %v2029_v10, %v6198_v55  ;;  %v2032_v37 = vadd.f32 %v4512_v36, %v4484_v22  ;;  %v2071_v25 = vmul.f32 %v6466_v9, %v6466_v9  ;;  %v5098_v55 = vld [vmem:[#allocation8 + $0x10c] ss:$12 sps:$4 sm:$0xff]  }
 0xb96   :  { %2074 = vadd.xlane.f32.xlu0 %v2070_v47  ;;  %2305 = vmatprep.subr.bf16.mxu1 %v5098_v55  ;;  %v4220_v47 = vld [vmem:[#allocation7 + $0x1] ss:$0 sm:$0xff]  ;;  %v5115_v55 = vld [vmem:[#allocation8 + $0x128] ss:$12 sps:$4 sm:$0xff]  }
 0xb97   :  { %v2038_v43 = vadd.f32 %v2032_v37, %v6201_v60  ;;  %2076 = vadd.xlane.f32.xlu1 %v2071_v25  ;;  %v6474_v26 = vadd.f32 %v4218_v1, %v2037_v44  ;;  %2306 = vmatpush1.bf16.msra.mxu1 %v5096_v61  ;;  %v5104_v60 = vld [vmem:[#allocation8 + $0x13c] ss:$12 sps:$4 sm:$0xff]  }
 0xb98   :  { %2307 = vmatprep.subr.bf16.mxu1 %v5101_v48  ;;  %4763 = vmatprep.subr.bf16.mxu0 %v5115_v55  ;;  %v5118_v61 = vld [vmem:[#allocation8 + $0x170] ss:$12 sps:$4 sm:$0xff]  }
 0xb99   :  { %v6476_v46 = vadd.f32 %v4218_v1, %v2038_v43  ;;  %v5105_v1 = vld [vmem:[#allocation8 + $0x150] ss:$12 sps:$4 sm:$0xff]   ;;  %4764 = vmatpush3.bf16.msra.mxu0 %v5115_v55 }
 0xb9a   :  { %2058 = vadd.xlane.f32.xlu0 %v6474_v26 }
 0xb9b   :  { %2060 = vadd.xlane.f32.xlu1 %v6476_v46  ;;  %2308 = vmatpush1.bf16.msra.mxu1 %v5099_v7 }
 0xb9c   :  { %2309 = vmatprep.subr.bf16.mxu1 %v5104_v60 }
 0xb9f   :  { %2310 = vmatpush1.bf16.msra.mxu1 %v5102_v17 }
 0xba0   :  { %2311 = vmatprep.subr.bf16.mxu1 %v5107_v0 }
 0xba3   :  { %2312 = vmatpush1.bf16.msra.mxu1 %v5105_v1 }
 0xba4   :  { %2313 = vmatprep.subr.bf16.mxu1 %v5110_v4 }
 0xba7   :  { %2314 = vmatpush1.bf16.msra.mxu1 %v5108_v3 }
 0xba8   :  { %4775 = vmatprep.subr.bf16.mxu1 %v5624_v62 }
 0xc23   :  { %v2075_v12 = vpop.xlane.xlu0 %2074 }
 0xc24   :  { %v2082_v13 = vmul.f32 0.0078125, %v2075_v12  ;;  %v2077_v41 = vpop.xlane.xlu1 %2076 }
 0xc25   :  { %v2083_v42 = vmul.f32 0.0078125, %v2077_v41 }
 0xc26   :  { %v2086_v49 = vadd.f32 1e-05, %v2082_v13 }
 0xc27   :  { %v2087_v29 = vadd.f32 1e-05, %v2083_v42  ;;  %v2059_v27 = vpop.xlane.xlu0 %2058 }
 0xc28   :  { %5295 = vrsqrt.f32 %v2086_v49  ;;  %v2064_v53 = vmul.f32 0.0078125, %v2059_v27  ;;  %v2061_v14 = vpop.xlane.xlu1 %2060 }
 0xc29   :  { %5297 = vrsqrt.f32 %v2087_v29  ;;  %v2065_v2 = vmul.f32 0.0078125, %v2061_v14  ;;  %v4221_v29 = vld [vmem:[%s7030_s7 + $0x3] sm:$0x7] }
 0xc2a   :  { %v2068_v21 = vsub.f32 %v6474_v26, %v2064_v53  ;;  %v2163_v27 = vrot.slane %v4221_v29, %v5887_v18  ;;  %v2159_v53 = vrot.slane %v4221_v29, %v5893_v19 }
 0xc2b   :  { %v2069_v34 = vsub.f32 %v6476_v46, %v2065_v2 }
 0xc2c   :  { %v2072_v50 = vmul.f32 %v2068_v21, %v2068_v21 }
 0xc2d   :  { %v2073_v51 = vmul.f32 %v2069_v34, %v2069_v34 }
 0xc2e   :  { %2078 = vadd.xlane.f32.xlu0 %v2072_v50 }
 0xc2f   :  { %2080 = vadd.xlane.f32.xlu1 %v2073_v51 }
 0xc32   :  { %v5296_v39 = vpop.eup %5295 }
 0xc33   :  { %v5298_v23 = vpop.eup %5297  ;;  %v2094_v10 = vmul.f32 %v5296_v39, %v6463_v5  ;;  %v5116_v5 = vld [vmem:[#allocation8 + $0x140] ss:$12 sps:$4 sm:$0xff]  }
 0xc34   :  { %v2095_v22 = vmul.f32 %v5298_v23, %v6466_v9  ;;  %4765 = vmatprep.subr.bf16.mxu0 %v5116_v5  ;;  %v5117_v9 = vld [vmem:[#allocation8 + $0x158] ss:$12 sps:$4 sm:$0xff]  }
 0xc35   :  { %v2104_v36 = vmul.f32 %v4219_v40, %v2094_v10  ;;  %4766 = vmatpush3.bf16.msra.mxu0 %v5116_v5 }
 0xc36   :  { %v2105_v44 = vmul.f32 %v4219_v40, %v2095_v22  ;;  %4767 = vmatprep.subr.bf16.mxu0 %v5117_v9 }
 0xc37   :  { %v2114_v37 = vadd.f32 %v4220_v47, %v2104_v36 }
 0xc38   :  { %v2115_v25 = vadd.f32 %v4220_v47, %v2105_v44 }
 0xc39   :  { %4768 = vmatpush3.bf16.msra.mxu0 %v5117_v9  ;;  %v2167_v9 = vrot.slane %v4221_v29, %v5944_v52 }
 0xc3a   :  { %v2118_v43 = vpack.c.bf16 %v2115_v25, %v2114_v37  ;;  %4769 = vmatprep.subr.bf16.mxu0 %v5118_v61 }
 0xc3c   :  { %2332 = vmatmul.mubr.bf16.vlgmr.msra.gmra.mrb[32].mxu1 %v2118_v43  ;;  %4771 = vmatprep.mubr.bf16.mxu0 %v2118_v43 }
 0xc3d   :  { %2341 = vmatprep.mubr.bf16.mxu1 %v5623_v30  ;;  %4770 = vmatpush3.bf16.msra.mxu0 %v5118_v61 }
 0xc3e   :  { %4914 = vmatprep.subr.bf16.mxu0 %v6046_v16 }
 0xcbb   :  { %v2079_v48 = vpop.xlane.xlu0 %2078 }
 0xcbc   :  { %v2084_v7 = vmul.f32 0.0078125, %v2079_v48  ;;  %v2081_v60 = vpop.xlane.xlu1 %2080 }
 0xcbd   :  { %v2085_v17 = vmul.f32 0.0078125, %v2081_v60 }
 0xcbe   :  { %v2088_v0 = vadd.f32 1e-05, %v2084_v7 }
 0xcbf   :  { %v2089_v1 = vadd.f32 1e-05, %v2085_v17 }
 0xcc0   :  { %5299 = vrsqrt.f32 %v2088_v0 }
 0xcc1   :  { %5301 = vrsqrt.f32 %v2089_v1 }
 0xcca   :  { %v5300_v3 = vpop.eup %5299 }
 0xccb   :  { %v5302_v4 = vpop.eup %5301  ;;  %v2096_v35 = vmul.f32 %v5300_v3, %v2068_v21 }
 0xccc   :  { %v2097_v11 = vmul.f32 %v5302_v4, %v2069_v34 }
 0xccd   :  { %v2106_v12 = vmul.f32 %v4219_v40, %v2096_v35 }
 0xcce   :  { %v2107_v13 = vmul.f32 %v4219_v40, %v2097_v11 }
 0xccf   :  { %v2116_v41 = vadd.f32 %v4220_v47, %v2106_v12 }
 0xcd0   :  { %v2117_v42 = vadd.f32 %v4220_v47, %v2107_v13 }
 0xcd2   :  { %v2119_v49 = vpack.c.bf16 %v2117_v42, %v2116_v41 }
 0xcd4   :  { %2342 = vmatmul.mubr.bf16.gmra.mrb[36].mxu1 %v2119_v49  ;;  %4772 = vmatmul.mubr.bf16.vlgmr.msra.gmra.mrb[36].mxu0 %v2119_v49 }
 0xcd5   :  { %4783 = vmatprep.mubr.msk.bf16.mxu1 %vm5625_vm0, %v5624_v62  ;;  %4916 = vmatpush3.bf16.msra.mxu0 %v6046_v16 }
 0xcd6   :  { %4918 = vmatprep.subr.bf16.mxu0 %v6050_v24 }
 0xcd9   :  { %4920 = vmatpush3.bf16.msra.mxu0 %v6050_v24 }
 0xcda   :  { %4922 = vmatprep.subr.bf16.mxu0 %v6054_v38 }
 0xcdd   :  { %4924 = vmatpush3.bf16.msra.mxu0 %v6054_v38 }
 0xcde   :  { %4926 = vmatprep.subr.bf16.mxu0 %v6058_v45 }
 0xce1   :  { %4928 = vmatpush3.bf16.msra.mxu0 %v6058_v45 }
 0xce2   :  { %4818 = vmatprep.subr.bf16.mxu0 %v5624_v62 }
 0xd0f   :  { %v2333_v14 = vpop.f32.mrb[32].mxu1 }
 0xd10   :  { %v2335_v2 = vpop.f32.mrb[33].mxu1  ;;  %v2334_v50 = vadd.f32 %v2333_v14, %v2159_v53 }
 0xd11   :  { %v2336_v21 = vadd.f32 %v2335_v2, %v2163_v27  ;;  %v2337_v34 = vpop.f32.mrb[34].mxu1 }
 0xd12   :  { %v2338_v51 = vadd.f32 %v2337_v34, %v2159_v53  ;;  %v2339_v39 = vpop.f32.mrb[35].mxu1 }
 0xd13   :  { %v2340_v23 = vadd.f32 %v2339_v39, %v2163_v27  ;;  %v2401_v10 = vmul.f32 %v2336_v21, %v5914_v28  ;;  %v2405_v22 = vmul.f32 %v2336_v21, %v5918_v31  ;;  %v2409_v36 = vmul.f32 %v2336_v21, %v5921_v32 }
 0xd14   :  { %v2417_v40 = vpack.c.bf16 %v2338_v51, %v2334_v50  ;;  %v2413_v47 = vmul.f32 %v2336_v21, %v5924_v33 }
 0xd15   :  { %v2403_v44 = vmul.f32 %v2340_v23, %v5914_v28  ;;  %v2407_v37 = vmul.f32 %v2340_v23, %v5918_v31  ;;  %v2411_v25 = vmul.f32 %v2340_v23, %v5921_v32  ;;  %v2415_v43 = vmul.f32 %v2340_v23, %v5924_v33 }
 0xd17   :  { %v2418_v54 = vpack.c.bf16 %v2403_v44, %v2401_v10  ;;  %v2419_v63 = vpack.c.bf16 %v2407_v37, %v2405_v22  ;;  %v2420_v55 = vpack.c.bf16 %v2411_v25, %v2409_v36  ;;  %v2421_v5 = vpack.c.bf16 %v2415_v43, %v2413_v47 }
 0xd19   :  { %4776 = vmatpush3.bf16.xpose.msra.mxu1 %v2418_v54 }
 0xd1a   :  { %4777 = vmatprep.subr.bf16.mxu1 %v5624_v62 }
 0xd21   :  { %4778 = vmatpush3.bf16.xpose.msra.mxu1 %v2419_v63 }
 0xd22   :  { %4779 = vmatprep.subr.bf16.mxu1 %v5624_v62 }
 0xd29   :  { %4780 = vmatpush3.bf16.xpose.msra.mxu1 %v2420_v55 }
 0xd2a   :  { %4781 = vmatprep.subr.bf16.mxu1 %v5624_v62 }
 0xd31   :  { %4782 = vmatpush3.bf16.xpose.msra.mxu1 %v2421_v5 }
 0xd32   :  { %4806 = vmatprep.subr.bf16.mxu1 %v5624_v62 }
 0xd38   :  { %4784 = vmatmul.mubr.bf16.vlgmr.msra.gmra.mrb[40].mxu1 %v2417_v40 }
 0xd39   :  { %4814 = vmatprep.mubr.msk.bf16.mxu1 %vm5625_vm0, %v5624_v62 }
 0xda7   :  { %v2343_v61 = vpop.f32.mrb[36].mxu1  ;;  %v4773_v48 = vpop.f32.mrb[36].mxu0 }
 0xda8   :  { %v2395_v7 = vadd.f32 %v4773_v48, %v2167_v9  ;;  %v2345_v60 = vpop.f32.mrb[37].mxu1  ;;  %v2386_v17 = vpop.f32.mrb[37].mxu0  ;;  %v6517_v4 = vadd.f32 %v2343_v61, %v2159_v53 }
 0xda9   :  { %v2346_v0 = vadd.f32 %v2345_v60, %v2163_v27  ;;  %v2347_v1 = vpop.f32.mrb[38].mxu1  ;;  %v4774_v3 = vpop.f32.mrb[38].mxu0  ;;  %v2387_v35 = vadd.f32 %v2386_v17, %v2167_v9 }
 0xdaa   :  { %v2349_v11 = vpop.f32.mrb[39].mxu1  ;;  %v2389_v12 = vpop.f32.mrb[39].mxu0  ;;  %v6520_v13 = vmul.f32 %v2395_v7, %v5948_v56  ;;  %v6523_v41 = vmul.f32 %v2395_v7, %v5951_v57  ;;  %v6526_v42 = vmul.f32 %v2395_v7, %v5954_v58  ;;  %v6529_v49 = vmul.f32 %v2395_v7, %v5957_v59 }
 0xdab   :  { %v6532_v29 = vmul.f32 %v2346_v0, %v5914_v28  ;;  %v6535_v14 = vmul.f32 %v2346_v0, %v5918_v31  ;;  %v6538_v2 = vmul.f32 %v2346_v0, %v5921_v32  ;;  %v6541_v21 = vmul.f32 %v2346_v0, %v5924_v33  ;;  %v5370_v0 = vld [vmem:[%s7060_s16] sm:$0xff] }
 0xdac   :  { %v6543_v34 = vadd.f32 %v2347_v1, %v2159_v53  ;;  %v2398_v50 = vadd.f32 %v4774_v3, %v2167_v9  ;;  %v2350_v51 = vadd.f32 %v2349_v11, %v2163_v27  ;;  %v2390_v39 = vadd.f32 %v2389_v12, %v2167_v9  ;;  %v5371_v11 = vld [vmem:[%s7060_s16 + $0x8] sm:$0xff] }
 0xdad   :  { %v2402_v40 = vmul.f32 %v2387_v35, %v5948_v56  ;;  %v2406_v23 = vmul.f32 %v2387_v35, %v5951_v57  ;;  %v2410_v10 = vmul.f32 %v2387_v35, %v5954_v58  ;;  %v2414_v22 = vmul.f32 %v2387_v35, %v5957_v59 }
 0xdae   :  { %v2625_v36 = vpack.c.bf16 %v6543_v34, %v6517_v4  ;;  %v6552_v47 = vmul.f32 %v2398_v50, %v5948_v56  ;;  %v6555_v53 = vmul.f32 %v2398_v50, %v5951_v57  ;;  %v6558_v27 = vmul.f32 %v2398_v50, %v5954_v58  ;;  %v5372_v34 = vld [vmem:[%s7060_s16 + $0x10] sm:$0xff] }
 0xdaf   :  { %v6561_v44 = vmul.f32 %v2398_v50, %v5957_v59  ;;  %v2611_v37 = vmul.f32 %v2350_v51, %v5914_v28  ;;  %v2615_v25 = vmul.f32 %v2350_v51, %v5918_v31  ;;  %v2619_v43 = vmul.f32 %v2350_v51, %v5921_v32 }
 0xdb0   :  { %v2623_v54 = vmul.f32 %v2350_v51, %v5924_v33  ;;  %v2404_v63 = vmul.f32 %v2390_v39, %v5948_v56  ;;  %v2408_v55 = vmul.f32 %v2390_v39, %v5951_v57  ;;  %v2412_v5 = vmul.f32 %v2390_v39, %v5954_v58 }
 0xdb1   :  { %v2416_v9 = vmul.f32 %v2390_v39, %v5957_v59  ;;  %v2626_v61 = vpack.c.bf16 %v2611_v37, %v6532_v29  ;;  %v2627_v48 = vpack.c.bf16 %v2615_v25, %v6535_v14  ;;  %v2628_v28 = vpack.c.bf16 %v2619_v43, %v6538_v2 }
 0xdb2   :  { %v2561_v7 = vpack.c.bf16 %v2404_v63, %v2402_v40  ;;  %v2562_v31 = vpack.c.bf16 %v2408_v55, %v2406_v23  ;;  %v2563_v60 = vpack.c.bf16 %v2412_v5, %v2410_v10  ;;  %v2629_v32 = vpack.c.bf16 %v2623_v54, %v6541_v21 }
 0xdb3   :  { %v2564_v33 = vpack.c.bf16 %v2416_v9, %v2414_v22  ;;  %v2769_v56 = vpack.c.bf16 %v6552_v47, %v6520_v13  ;;  %v2770_v57 = vpack.c.bf16 %v6555_v53, %v6523_v41  ;;  %v2771_v58 = vpack.c.bf16 %v6558_v27, %v6526_v42  ;;  %v5119_v41 = vld [vmem:[%s7031_s8 + $0x40] sm:$0xff]   ;;  %v5120_v42 = vld [vmem:[%s7031_s8 + $0x48] sm:$0xff]  }
 0xdb4   :  { %4807 = vmatpush3.bf16.msra.mxu1 %v2561_v7  ;;  %v2772_v59 = vpack.c.bf16 %v6561_v44, %v6529_v49  ;;  %v5122_v49 = vld [vmem:[%s7031_s8 + $0x58] sm:$0xff]   ;;  %v5123_v53 = vld [vmem:[%s7031_s8 + $0x60] sm:$0xff]   ;;  %v5124_v27 = vld [vmem:[%s7031_s8 + $0x68] sm:$0xff]  }
 0xdb5   :  { %4808 = vmatprep.subr.bf16.mxu1 %v5624_v62  ;;  %v5125_v44 = vld [vmem:[%s7031_s8 + $0x70] sm:$0xff]  }
 0xdb8   :  { %4809 = vmatpush3.bf16.msra.mxu1 %v2562_v31 }
 0xdb9   :  { %4810 = vmatprep.subr.bf16.mxu1 %v5624_v62 }
 0xdbc   :  { %4811 = vmatpush3.bf16.msra.mxu1 %v2563_v60 }
 0xdbd   :  { %4812 = vmatprep.subr.bf16.mxu1 %v5624_v62 }
 0xdc0   :  { %4813 = vmatpush3.bf16.msra.mxu1 %v2564_v33 }
 0xdc1   :  { %4930 = vmatprep.subr.bf16.mxu1 %v6046_v16 }
 0xe0b   :  { %v2456_v17 = vpop.f32.mrb[40].mxu1 }
 0xe0c   :  { %v2457_v1 = vadd.f32 %v5370_v0, %v2456_v17  ;;  %v4785_v3 = vpop.f32.mrb[41].mxu1 }
 0xe0d   :  { %v2459_v35 = vpop.f32.mrb[42].mxu1 }
 0xe0e   :  { %v2460_v12 = vadd.f32 %v5371_v11, %v2459_v35  ;;  %v4786_v29 = vpop.f32.mrb[43].mxu1  ;;  %v2463_v14 = vsel %vm657_vm1, %v2457_v1, -inf }
 0xe0f   :  { %2464 = vmax.xlane.f32.xlu0 %v2463_v14  ;;  %v5126_v14 = vld [vmem:[%s7031_s8 + $0x78] sm:$0xff]  }
 0xe10   :  { %v2466_v2 = vsel %vm657_vm1, %v2460_v12, -inf }
 0xe11   :  { %2467 = vmax.xlane.f32.xlu1 %v2466_v2 }
 0xe9c   :  { %v2465_v21 = vpop.xlane.xlu0 %2464 }
 0xe9d   :  { %v2469_v50 = vsub.f32 %v2457_v1, %v2465_v21 }
 0xe9e   :  { %v2468_v51 = vpop.xlane.xlu1 %2467 }
 0xe9f   :  { %v2471_v39 = vmul.f32 1.442695, %v2469_v50  ;;  %v2470_v40 = vsub.f32 %v2460_v12, %v2468_v51 }
 0xea1   :  { %5303 = vpow2.f32 %v2471_v39  ;;  %v2473_v23 = vmul.f32 1.442695, %v2470_v40  ;;  %v4269_v40 = vld [vmem:[%s7032_s9 + $0x1] ss:$0 sm:$0xff] }
 0xea3   :  { %5305 = vpow2.f32 %v2473_v23 }
 0xeab   :  { %v5304_v10 = vpop.eup %5303 }
 0xeac   :  { %4803 = vmatprep.mubr.msk.f32.mxu0 %vm657_vm1, %v5304_v10 }
 0xead   :  { %v5306_v22 = vpop.eup %5305 }
 0xeae   :  { %4804 = vmatmul.mubr.msk.f32.vlgmr.msra.gmra.mrb[40].mxu0 %vm657_vm1, %v5306_v22 }
 0xeaf   :  { %4819 = vmatpush3.bf16.xpose.msra.mxu0 %v2626_v61  ;;  %4826 = vmatprep.mubr.msk.bf16.mxu0 %vm5625_vm0, %v5624_v62 }
 0xeb0   :  { %4820 = vmatprep.subr.bf16.mxu0 %v5624_v62 }
 0xeb7   :  { %4821 = vmatpush3.bf16.xpose.msra.mxu0 %v2627_v48 }
 0xeb8   :  { %4822 = vmatprep.subr.bf16.mxu0 %v5624_v62 }
 0xebf   :  { %4823 = vmatpush3.bf16.xpose.msra.mxu0 %v2628_v28 }
 0xec0   :  { %4824 = vmatprep.subr.bf16.mxu0 %v5624_v62 }
 0xec7   :  { %4825 = vmatpush3.bf16.xpose.msra.mxu0 %v2629_v32 }
 0xec8   :  { %4861 = vmatprep.subr.bf16.mxu0 %v5119_v41 }
 0xece   :  { %4827 = vmatmul.mubr.bf16.vlgmr.msra.gmra.mrb[44].mxu0 %v2625_v36 }
 0xecf   :  { %4862 = vmatpush3.bf16.msra.mxu0 %v5119_v41  ;;  %v5144_v41 = vld [vmem:[%s7035_s12 + $0x14c] ss:$16 sps:$4 sm:$0xff]  }
 0xed0   :  { %4863 = vmatprep.subr.bf16.mxu0 %v5120_v42 }
 0xed3   :  { %4864 = vmatpush3.bf16.msra.mxu0 %v5120_v42  ;;  %v5139_v42 = vld [vmem:[%s7035_s12 + $0x140] ss:$16 sps:$4 sm:$0xff]  }
 0xf81   :  { %v4805_v37 = vpop.f32.mrb[40].mxu0 }
 0xf82   :  { %5307 = vrcp.f32 %v4805_v37  ;;  %v2547_v25 = vpop.f32.mrb[41].mxu0 }
 0xf83   :  { %5309 = vrcp.f32 %v2547_v25 }
 0xf8c   :  { %v5308_v43 = vpop.eup %5307 }
 0xf8d   :  { %v5310_v54 = vpop.eup %5309  ;;  %v2559_v63 = vmul.f32 %v5308_v43, %v5306_v22 }
 0xf8e   :  { %v2558_v55 = vmul.f32 %v5310_v54, %v5304_v10 }
 0xf90   :  { %v2560_v5 = vpack.c.bf16 %v2559_v63, %v2558_v55 }
 0xf92   :  { %4815 = vmatmul.mubr.msk.bf16.vlgmr.msra.gmra.mrb[44].mxu1 %vm657_vm1, %v2560_v5 }
 0xf93   :  { %4932 = vmatpush3.bf16.msra.mxu1 %v6046_v16 }
 0xf94   :  { %4934 = vmatprep.subr.bf16.mxu1 %v6050_v24 }
 0xf97   :  { %4936 = vmatpush3.bf16.msra.mxu1 %v6050_v24  ;;  %v5373_v24 = vld [vmem:[%s7060_s16 + $0x18] sm:$0xff] }
 0xf98   :  { %4938 = vmatprep.subr.bf16.mxu1 %v6054_v38 }
 0xf9b   :  { %4940 = vmatpush3.bf16.msra.mxu1 %v6054_v38 }
 0xf9c   :  { %4942 = vmatprep.subr.bf16.mxu1 %v6058_v45 }
 0xf9f   :  { %4944 = vmatpush3.bf16.msra.mxu1 %v6058_v45 }
 0xfa0   :  { %4849 = vmatprep.subr.bf16.mxu1 %v5624_v62 }
 0xfa1   :  { %v2664_v4 = vpop.f32.mrb[44].mxu0 }
 0xfa2   :  { %v2665_v16 = vadd.f32 %v5372_v34, %v2664_v4  ;;  %v4828_v36 = vpop.f32.mrb[45].mxu0 }
 0xfa3   :  { %v2667_v9 = vpop.f32.mrb[46].mxu0  ;;  %v5138_v36 = vld [vmem:[%s7035_s12 + $0x12c] ss:$16 sps:$4 sm:$0xff]  }
 0xfa4   :  { %v2668_v61 = vadd.f32 %v5373_v24, %v2667_v9  ;;  %v4829_v38 = vpop.f32.mrb[47].mxu0  ;;  %v2671_v48 = vsel %vm657_vm1, %v2665_v16, -inf  ;;  %v5133_v9 = vld [vmem:[%s7035_s12 + $0x120] ss:$16 sps:$4 sm:$0xff]   ;;  %v5136_v24 = vld [vmem:[%s7035_s12 + $0x128] ss:$16 sps:$4 sm:$0xff]  }
 0xfa5   :  { %2672 = vmax.xlane.f32.xlu0 %v2671_v48 }
 0xfa6   :  { %v2674_v45 = vsel %vm657_vm1, %v2668_v61, -inf }
 0xfa7   :  { %2675 = vmax.xlane.f32.xlu1 %v2674_v45 }
0x1032   :  { %v2673_v28 = vpop.xlane.xlu0 %2672 }
0x1033   :  { %v2677_v7 = vsub.f32 %v2665_v16, %v2673_v28  ;;  %v5135_v16 = vld [vmem:[%s7035_s12 + $0x124] ss:$16 sps:$4 sm:$0xff]  }
0x1034   :  { %v2676_v31 = vpop.xlane.xlu1 %2675 }
0x1035   :  { %v2679_v60 = vmul.f32 1.442695, %v2677_v7  ;;  %v2678_v32 = vsub.f32 %v2668_v61, %v2676_v31 }
0x1037   :  { %5311 = vpow2.f32 %v2679_v60  ;;  %v2681_v33 = vmul.f32 1.442695, %v2678_v32 }
0x1039   :  { %5313 = vpow2.f32 %v2681_v33 }
0x1041   :  { %v5312_v17 = vpop.eup %5311 }
0x1042   :  { %4846 = vmatprep.mubr.msk.f32.mxu1 %vm657_vm1, %v5312_v17 }
0x1043   :  { %v5314_v0 = vpop.eup %5313 }
0x1044   :  { %4847 = vmatmul.mubr.msk.f32.vlgmr.msra.gmra.mrb[48].mxu1 %vm657_vm1, %v5314_v0 }
0x1045   :  { %4850 = vmatpush3.bf16.msra.mxu1 %v2769_v56  ;;  %4857 = vmatprep.mubr.msk.bf16.mxu1 %vm5625_vm0, %v5624_v62 }
0x1046   :  { %4851 = vmatprep.subr.bf16.mxu1 %v5624_v62 }
0x1049   :  { %4852 = vmatpush3.bf16.msra.mxu1 %v2770_v57 }
0x104a   :  { %4853 = vmatprep.subr.bf16.mxu1 %v5624_v62 }
0x104d   :  { %4854 = vmatpush3.bf16.msra.mxu1 %v2771_v58 }
0x104e   :  { %4855 = vmatprep.subr.bf16.mxu1 %v5624_v62  ;;  %v5121_v62 = vld [vmem:[%s7031_s8 + $0x50] sm:$0xff]  }
0x104f   :  { %4865 = vmatprep.subr.bf16.mxu0 %v5121_v62 }
0x1050   :  { %4866 = vmatpush3.bf16.msra.mxu0 %v5121_v62  ;;  %v5142_v62 = vld [vmem:[%s7035_s12 + $0x148] ss:$16 sps:$4 sm:$0xff]  }
0x1051   :  { %4856 = vmatpush3.bf16.msra.mxu1 %v2772_v59  ;;  %4867 = vmatprep.subr.bf16.mxu0 %v5122_v49 }
0x1054   :  { %4868 = vmatpush3.bf16.msra.mxu0 %v5122_v49  ;;  %v5147_v49 = vld [vmem:[%s7035_s12 + $0x164] ss:$16 sps:$4 sm:$0xff]  }
0x1055   :  { %4869 = vmatprep.subr.bf16.mxu0 %v5123_v53 }
0x1058   :  { %4870 = vmatpush3.bf16.msra.mxu0 %v5123_v53  ;;  %v5150_v53 = vld [vmem:[%s7035_s12 + $0x16c] ss:$16 sps:$4 sm:$0xff]  }
0x1059   :  { %4871 = vmatprep.subr.bf16.mxu0 %v5124_v27 }
0x105c   :  { %4872 = vmatpush3.bf16.msra.mxu0 %v5124_v27  ;;  %v5145_v27 = vld [vmem:[%s7035_s12 + $0x160] ss:$16 sps:$4 sm:$0xff]  }
0x105d   :  { %4873 = vmatprep.subr.bf16.mxu0 %v5125_v44 }
0x1060   :  { %4874 = vmatpush3.bf16.msra.mxu0 %v5125_v44  ;;  %v5148_v44 = vld [vmem:[%s7035_s12 + $0x168] ss:$16 sps:$4 sm:$0xff]  }
0x1061   :  { %4875 = vmatprep.subr.bf16.mxu0 %v5126_v14 }
0x1064   :  { %4876 = vmatpush3.bf16.msra.mxu0 %v5126_v14  ;;  %v5160_v14 = vld [vmem:[%s7035_s12 + $0x1a8] ss:$16 sps:$4 sm:$0xff]  }
0x1065   :  { %v2602_v13 = vpop.f32.mrb[44].mxu1 }
0x1066   :  { %v4816_v47 = vpop.f32.mrb[45].mxu1 }
0x1067   :  { %v2605_v56 = vpop.f32.mrb[46].mxu1 }
0x1068   :  { %v2817_v1 = vpack.c.bf16 %v2605_v56, %v2602_v13  ;;  %v4817_v3 = vpop.f32.mrb[47].mxu1 }
0x1069   :  { %v5141_v3 = vld [vmem:[%s7035_s12 + $0x144] ss:$16 sps:$4 sm:$0xff]  }
0x106a   :  { %4877 = vmatprep.mubr.bf16.mxu0 %v2817_v1 }
0x1117   :  { %v4848_v57 = vpop.f32.mrb[48].mxu1 }
0x1118   :  { %5315 = vrcp.f32 %v4848_v57  ;;  %v2755_v58 = vpop.f32.mrb[49].mxu1  ;;  %v5153_v57 = vld [vmem:[%s7035_s12 + $0x184] ss:$16 sps:$4 sm:$0xff]  }
0x1119   :  { %5317 = vrcp.f32 %v2755_v58  ;;  %v5156_v58 = vld [vmem:[%s7035_s12 + $0x18c] ss:$16 sps:$4 sm:$0xff]  }
0x1122   :  { %v5316_v59 = vpop.eup %5315 }
0x1123   :  { %v5318_v35 = vpop.eup %5317  ;;  %v2767_v11 = vmul.f32 %v5316_v59, %v5314_v0  ;;  %v5151_v59 = vld [vmem:[%s7035_s12 + $0x180] ss:$16 sps:$4 sm:$0xff]  }
0x1124   :  { %v2766_v12 = vmul.f32 %v5318_v35, %v5312_v17  ;;  %v5154_v35 = vld [vmem:[%s7035_s12 + $0x188] ss:$16 sps:$4 sm:$0xff]  }
0x1126   :  { %v2768_v29 = vpack.c.bf16 %v2767_v11, %v2766_v12  ;;  %v5159_v11 = vld [vmem:[%s7035_s12 + $0x1a4] ss:$16 sps:$4 sm:$0xff]   ;;  %v5162_v12 = vld [vmem:[%s7035_s12 + $0x1ac] ss:$16 sps:$4 sm:$0xff]  }
0x1128   :  { %4858 = vmatmul.mubr.msk.bf16.vlgmr.msra.gmra.mrb[52].mxu1 %vm657_vm1, %v2768_v29  ;;  %v5157_v29 = vld [vmem:[%s7035_s12 + $0x1a0] ss:$16 sps:$4 sm:$0xff]  }
0x1129   :  { %3263 = vmatprep.mubr.bf16.mxu1 %v5623_v30 }
0x11fb   :  { %v2810_v2 = vpop.f32.mrb[52].mxu1 }
0x11fc   :  { %v4859_v21 = vpop.f32.mrb[53].mxu1 }
0x11fd   :  { %v2813_v50 = vpop.f32.mrb[54].mxu1  ;;  %v5168_v21 = vld [vmem:[%s7035_s12 + $0x1cc] ss:$16 sps:$4 sm:$0xff]  }
0x11fe   :  { %v2818_v51 = vpack.c.bf16 %v2813_v50, %v2810_v2  ;;  %v4860_v39 = vpop.f32.mrb[55].mxu1  ;;  %v5165_v2 = vld [vmem:[%s7035_s12 + $0x1c4] ss:$16 sps:$4 sm:$0xff]   ;;  %v5163_v50 = vld [vmem:[%s7035_s12 + $0x1c0] ss:$16 sps:$4 sm:$0xff]  }
0x11ff   :  { %v5171_v39 = vld [vmem:[%s7035_s12 + $0x1e4] ss:$16 sps:$4 sm:$0xff]  }
0x1200   :  { %4878 = vmatmul.mubr.bf16.vlgmr.msra.gmra.mrb[48].mxu0 %v2818_v51  ;;  %v5166_v51 = vld [vmem:[%s7035_s12 + $0x1c8] ss:$16 sps:$4 sm:$0xff]  }
0x1201   :  { %3316 = vmatprep.mubr.bf16.mxu0 %v5623_v30 }
0x12d3   :  { %v4879_v23 = vpop.f32.mrb[48].mxu0 }
0x12d4   :  { %v2926_v10 = vpop.f32.mrb[49].mxu0  ;;  %v2935_v43 = vadd.f32 %v4879_v23, %v4269_v40  ;;  %v5169_v23 = vld [vmem:[%s7035_s12 + $0x1e0] ss:$16 sps:$4 sm:$0xff]  }
0x12d5   :  { %v2927_v22 = vadd.f32 %v4269_v40, %v2926_v10  ;;  %v4880_v37 = vpop.f32.mrb[50].mxu0  ;;  %v5172_v10 = vld [vmem:[%s7035_s12 + $0x1e8] ss:$16 sps:$4 sm:$0xff]  }
0x12d6   :  { %v2929_v25 = vpop.f32.mrb[51].mxu0  ;;  %v2938_v55 = vadd.f32 %v4880_v37, %v4269_v40  ;;  %v6679_v4 = vadd.f32 %v2935_v43, %v6474_v26  ;;  %v5130_v26 = vld [vmem:[%s7035_s12 + $0x108] ss:$16 sps:$4 sm:$0xff]  }
0x12d7   :  { %v6672_v54 = vadd.f32 %v2927_v22, %v6456_v6  ;;  %v2930_v63 = vadd.f32 %v4269_v40, %v2929_v25  ;;  %v5127_v6 = vld [vmem:[%s7035_s12 + $0x100] ss:$16 sps:$4 sm:$0xff]   ;;  %v5174_v40 = vld [vmem:[%s7035_s12 + $0x1ec] ss:$16 sps:$4 sm:$0xff]  }
0x12d8   :  { %v6683_v34 = vadd.f32 %v2938_v55, %v6476_v46  ;;  %v5132_v46 = vld [vmem:[%s7035_s12 + $0x10c] ss:$16 sps:$4 sm:$0xff]  }
0x12d9   :  { %v6675_v5 = vadd.f32 %v2930_v63, %v6459_v20  ;;  %2949 = vadd.xlane.f32.xlu0 %v6672_v54  ;;  %v5129_v20 = vld [vmem:[%s7035_s12 + $0x104] ss:$16 sps:$4 sm:$0xff]   ;;  %3284 = vmatprep.subr.bf16.mxu0 %v5132_v46 }
0x12da   :  { %3231 = vmatprep.subr.bf16.mxu1 %v5129_v20  ;;  %3285 = vmatpush1.bf16.msra.mxu0 %v5130_v26 }
0x12db   :  { %2951 = vadd.xlane.f32.xlu1 %v6675_v5  ;;  %3232 = vmatpush1.bf16.msra.mxu1 %v5127_v6 }
0x12dc   :  { %3233 = vmatprep.subr.bf16.mxu1 %v5135_v16  ;;  %3286 = vmatprep.subr.bf16.mxu0 %v5138_v36 }
0x12dd   :  { %2953 = vadd.xlane.f32.xlu0 %v6679_v4 }
0x12de   :  { %3287 = vmatpush1.bf16.msra.mxu0 %v5136_v24  ;;  %v4278_v24 = vld [vmem:[#allocation10 + $0x1] ss:$0 sm:$0xff] }
0x12df   :  { %2955 = vadd.xlane.f32.xlu1 %v6683_v34  ;;  %3234 = vmatpush1.bf16.msra.mxu1 %v5133_v9 }
0x12e0   :  { %3235 = vmatprep.subr.bf16.mxu1 %v5141_v3  ;;  %3288 = vmatprep.subr.bf16.mxu0 %v5144_v41 }
0x12e2   :  { %3289 = vmatpush1.bf16.msra.mxu0 %v5142_v62 }
0x12e3   :  { %3236 = vmatpush1.bf16.msra.mxu1 %v5139_v42  ;;  %3290 = vmatprep.subr.bf16.mxu0 %v5150_v53  ;;  %v5176_v53 = vld [vmem:[#allocation13 + $0x1c0] sm:$0xff]  }
0x12e4   :  { %3237 = vmatprep.subr.bf16.mxu1 %v5147_v49  ;;  %v5175_v49 = vld [vmem:[#allocation13 + $0x140] sm:$0xff]  }
0x12e6   :  { %3291 = vmatpush1.bf16.msra.mxu0 %v5148_v44  ;;  %v5180_v44 = vld [vmem:[#allocation13 + $0x1c8] sm:$0xff]  }
0x12e7   :  { %3238 = vmatpush1.bf16.msra.mxu1 %v5145_v27  ;;  %3292 = vmatprep.subr.bf16.mxu0 %v5156_v58  ;;  %v5177_v27 = vld [vmem:[#allocation13 + $0x100] sm:$0xff]   ;;  %v5182_v58 = vld [vmem:[#allocation13 + $0x188] sm:$0xff]  }
0x12e8   :  { %3239 = vmatprep.subr.bf16.mxu1 %v5153_v57  ;;  %v5181_v57 = vld [vmem:[#allocation13 + $0x108] sm:$0xff]  }
0x12ea   :  { %3293 = vmatpush1.bf16.msra.mxu0 %v5154_v35  ;;  %v5184_v35 = vld [vmem:[#allocation13 + $0x1d0] sm:$0xff]  }
0x12eb   :  { %3240 = vmatpush1.bf16.msra.mxu1 %v5151_v59  ;;  %3294 = vmatprep.subr.bf16.mxu0 %v5162_v12  ;;  %v5183_v59 = vld [vmem:[#allocation13 + $0x150] sm:$0xff]  }
0x12ec   :  { %3241 = vmatprep.subr.bf16.mxu1 %v5159_v11  ;;  %v5185_v11 = vld [vmem:[#allocation13 + $0x110] sm:$0xff]  }
0x12ed   :  { %v5186_v12 = vld [vmem:[#allocation13 + $0x190] sm:$0xff]  }
0x12ee   :  { %3295 = vmatpush1.bf16.msra.mxu0 %v5160_v14  ;;  %v5188_v14 = vld [vmem:[#allocation13 + $0x1d8] sm:$0xff]  }
0x12ef   :  { %3242 = vmatpush1.bf16.msra.mxu1 %v5157_v29  ;;  %3296 = vmatprep.subr.bf16.mxu0 %v5168_v21  ;;  %v5187_v29 = vld [vmem:[#allocation13 + $0x158] sm:$0xff]  }
0x12f0   :  { %3243 = vmatprep.subr.bf16.mxu1 %v5165_v2  ;;  %v5189_v2 = vld [vmem:[#allocation13 + $0x118] sm:$0xff]  }
0x12f1   :  { %v5190_v21 = vld [vmem:[#allocation13 + $0x198] sm:$0xff]  }
0x12f2   :  { %3297 = vmatpush1.bf16.msra.mxu0 %v5166_v51  ;;  %v5192_v51 = vld [vmem:[#allocation13 + $0x1e0] sm:$0xff]  }
0x12f3   :  { %3244 = vmatpush1.bf16.msra.mxu1 %v5163_v50  ;;  %3298 = vmatprep.subr.bf16.mxu0 %v5174_v40  ;;  %v5191_v50 = vld [vmem:[#allocation13 + $0x160] sm:$0xff]  }
0x12f4   :  { %3245 = vmatprep.subr.bf16.mxu1 %v5171_v39  ;;  %v5193_v39 = vld [vmem:[#allocation13 + $0x120] sm:$0xff]  }
0x12f5   :  { %v5194_v40 = vld [vmem:[#allocation13 + $0x1a0] sm:$0xff]  }
0x12f6   :  { %3299 = vmatpush1.bf16.msra.mxu0 %v5172_v10  ;;  %v5196_v10 = vld [vmem:[#allocation13 + $0x1e8] sm:$0xff]  }
0x12f7   :  { %3246 = vmatpush1.bf16.msra.mxu1 %v5169_v23  ;;  %4601 = vmatprep.subr.bf16.mxu0 %v5176_v53  ;;  %v5195_v23 = vld [vmem:[#allocation13 + $0x168] sm:$0xff]  }
0x12f8   :  { %4573 = vmatprep.subr.bf16.mxu1 %v5175_v49 }
0x1366   :  { %v2950_v61 = vpop.xlane.xlu0 %2949 }
0x1367   :  { %v2957_v38 = vmul.f32 0.0078125, %v2950_v61 }
0x1368   :  { %v2952_v48 = vpop.xlane.xlu1 %2951 }
0x1369   :  { %v6712_v45 = vsub.f32 %v6672_v54, %v2957_v38  ;;  %v2958_v28 = vmul.f32 0.0078125, %v2952_v48 }
0x136a   :  { %v2954_v7 = vpop.xlane.xlu0 %2953 }
0x136b   :  { %v6715_v31 = vsub.f32 %v6675_v5, %v2958_v28  ;;  %v2959_v60 = vmul.f32 0.0078125, %v2954_v7  ;;  %v2965_v32 = vmul.f32 %v6712_v45, %v6712_v45 }
0x136c   :  { %v2956_v33 = vpop.xlane.xlu1 %2955 }
0x136d   :  { %v6720_v17 = vsub.f32 %v6679_v4, %v2959_v60  ;;  %v2960_v0 = vmul.f32 0.0078125, %v2956_v33  ;;  %2969 = vadd.xlane.f32.xlu0 %v2965_v32  ;;  %v2966_v13 = vmul.f32 %v6715_v31, %v6715_v31  ;;  %v4279_v60 = vld [vmem:[#allocation11 + $0x1] ss:$0 sm:$0xff] }
0x136f   :  { %v6725_v47 = vsub.f32 %v6683_v34, %v2960_v0  ;;  %2971 = vadd.xlane.f32.xlu1 %v2966_v13  ;;  %v2967_v56 = vmul.f32 %v6720_v17, %v6720_v17 }
0x1371   :  { %2973 = vadd.xlane.f32.xlu0 %v2967_v56  ;;  %v2968_v1 = vmul.f32 %v6725_v47, %v6725_v47 }
0x1373   :  { %2975 = vadd.xlane.f32.xlu1 %v2968_v1 }
0x13fa   :  { %v2970_v22 = vpop.xlane.xlu0 %2969 }
0x13fb   :  { %v2977_v37 = vmul.f32 0.0078125, %v2970_v22  ;;  %v5197_v22 = vld [vmem:[#allocation13 + $0x128] sm:$0xff]  }
0x13fc   :  { %v2972_v25 = vpop.xlane.xlu1 %2971 }
0x13fd   :  { %v2981_v43 = vadd.f32 1e-05, %v2977_v37  ;;  %v2978_v63 = vmul.f32 0.0078125, %v2972_v25  ;;  %v5198_v37 = vld [vmem:[#allocation13 + $0x1a8] sm:$0xff]   ;;  %v5199_v25 = vld [vmem:[#allocation13 + $0x170] sm:$0xff]  }
0x13fe   :  { %v2974_v55 = vpop.xlane.xlu0 %2973 }
0x13ff   :  { %5319 = vrsqrt.f32 %v2981_v43  ;;  %v2982_v6 = vadd.f32 1e-05, %v2978_v63  ;;  %v2979_v20 = vmul.f32 0.0078125, %v2974_v55  ;;  %v5200_v43 = vld [vmem:[#allocation13 + $0x1f0] sm:$0xff]  }
0x1400   :  { %v2976_v26 = vpop.xlane.xlu1 %2975  ;;  %v5201_v63 = vld [vmem:[#allocation13 + $0x130] sm:$0xff]  }
0x1401   :  { %5321 = vrsqrt.f32 %v2982_v6  ;;  %v2983_v46 = vadd.f32 1e-05, %v2979_v20  ;;  %v2980_v16 = vmul.f32 0.0078125, %v2976_v26  ;;  %v5202_v55 = vld [vmem:[#allocation13 + $0x1b0] sm:$0xff]   ;;  %v5203_v6 = vld [vmem:[#allocation13 + $0x178] sm:$0xff]  }
0x1402   :  { %v5204_v20 = vld [vmem:[#allocation13 + $0x1f8] sm:$0xff]  }
0x1403   :  { %5323 = vrsqrt.f32 %v2983_v46  ;;  %v2984_v36 = vadd.f32 1e-05, %v2980_v16  ;;  %v5205_v26 = vld [vmem:[#allocation13 + $0x138] sm:$0xff]  }
0x1404   :  { %v5206_v46 = vld [vmem:[#allocation13 + $0x1b8] sm:$0xff]  }
0x1405   :  { %5325 = vrsqrt.f32 %v2984_v36  ;;  %v4312_v16 = vld [vmem:[%s7036_s13 + $0x4] sm:$0xf] }
0x1406   :  { %v6813_v36 = vrot.slane %v4312_v16, %v5893_v19 }
0x1409   :  { %v5320_v9 = vpop.eup %5319 }
0x140a   :  { %v2989_v61 = vmul.f32 %v5320_v9, %v6712_v45  ;;  %v6816_v9 = vrot.slane %v4312_v16, %v5944_v52 }
0x140b   :  { %v5322_v38 = vpop.eup %5321 }
0x140c   :  { %v2990_v48 = vmul.f32 %v5322_v38, %v6715_v31  ;;  %v2999_v28 = vmul.f32 %v4278_v24, %v2989_v61  ;;  %v6823_v61 = vrot.slane %v4312_v16, %v1257_v8 }
0x140d   :  { %v5324_v7 = vpop.eup %5323 }
0x140e   :  { %v3000_v32 = vmul.f32 %v4278_v24, %v2990_v48  ;;  %v3009_v0 = vadd.f32 %v4279_v60, %v2999_v28  ;;  %v2991_v56 = vmul.f32 %v5324_v7, %v6720_v17  ;;  %v5178_v17 = vld [vmem:[#allocation13 + $0x180] sm:$0xff]  }
0x140f   :  { %v5326_v33 = vpop.eup %5325 }
0x1410   :  { %v3010_v13 = vadd.f32 %v4279_v60, %v3000_v32  ;;  %v2992_v1 = vmul.f32 %v5326_v33, %v6725_v47  ;;  %v3001_v42 = vmul.f32 %v4278_v24, %v2991_v56  ;;  %v5179_v47 = vld [vmem:[#allocation13 + $0x148] sm:$0xff]  }
0x1412   :  { %v3013_v3 = vpack.c.bf16 %v3010_v13, %v3009_v0  ;;  %v3002_v41 = vmul.f32 %v4278_v24, %v2992_v1  ;;  %v3011_v31 = vadd.f32 %v4279_v60, %v3001_v42  ;;  %v6819_v24 = vrot.slane %v4312_v16, %v5887_v18 }
0x1414   :  { %3264 = vmatmul.mubr.bf16.vlgmr.msra.gmra.mrb[56].mxu1 %v3013_v3  ;;  %3317 = vmatmul.mubr.bf16.vlgmr.msra.gmra.mrb[52].mxu0 %v3013_v3  ;;  %v3012_v45 = vadd.f32 %v4279_v60, %v3002_v41 }
0x1415   :  { %3273 = vmatprep.mubr.bf16.mxu1 %v5623_v30  ;;  %3326 = vmatprep.mubr.bf16.mxu0 %v5623_v30 }
0x1416   :  { %v3014_v62 = vpack.c.bf16 %v3012_v45, %v3011_v31  ;;  %4574 = vmatpush3.bf16.msra.mxu1 %v5177_v27  ;;  %4602 = vmatpush3.bf16.msra.mxu0 %v5178_v17 }
0x1417   :  { %4575 = vmatprep.subr.bf16.mxu1 %v5179_v47  ;;  %4603 = vmatprep.subr.bf16.mxu0 %v5180_v44 }
0x141a   :  { %4576 = vmatpush3.bf16.msra.mxu1 %v5181_v57  ;;  %4604 = vmatpush3.bf16.msra.mxu0 %v5182_v58 }
0x141b   :  { %4577 = vmatprep.subr.bf16.mxu1 %v5183_v59  ;;  %4605 = vmatprep.subr.bf16.mxu0 %v5184_v35 }
0x141c   :  { %3274 = vmatmul.mubr.bf16.gmra.mrb[60].mxu1 %v3014_v62  ;;  %3327 = vmatmul.mubr.bf16.gmra.mrb[56].mxu0 %v3014_v62 }
0x141e   :  { %4578 = vmatpush3.bf16.msra.mxu1 %v5185_v11  ;;  %4606 = vmatpush3.bf16.msra.mxu0 %v5186_v12 }
0x141f   :  { %4579 = vmatprep.subr.bf16.mxu1 %v5187_v29  ;;  %4607 = vmatprep.subr.bf16.mxu0 %v5188_v14 }
0x1422   :  { %4580 = vmatpush3.bf16.msra.mxu1 %v5189_v2  ;;  %4608 = vmatpush3.bf16.msra.mxu0 %v5190_v21 }
0x1423   :  { %4581 = vmatprep.subr.bf16.mxu1 %v5191_v50  ;;  %4609 = vmatprep.subr.bf16.mxu0 %v5192_v51 }
0x1426   :  { %4582 = vmatpush3.bf16.msra.mxu1 %v5193_v39  ;;  %4610 = vmatpush3.bf16.msra.mxu0 %v5194_v40 }
0x1427   :  { %4583 = vmatprep.subr.bf16.mxu1 %v5195_v23  ;;  %4611 = vmatprep.subr.bf16.mxu0 %v5196_v10 }
0x142a   :  { %4584 = vmatpush3.bf16.msra.mxu1 %v5197_v22  ;;  %4612 = vmatpush3.bf16.msra.mxu0 %v5198_v37 }
0x142b   :  { %4585 = vmatprep.subr.bf16.mxu1 %v5199_v25  ;;  %4613 = vmatprep.subr.bf16.mxu0 %v5200_v43 }
0x142e   :  { %4586 = vmatpush3.bf16.msra.mxu1 %v5201_v63  ;;  %4614 = vmatpush3.bf16.msra.mxu0 %v5202_v55 }
0x142f   :  { %4587 = vmatprep.subr.bf16.mxu1 %v5203_v6  ;;  %4615 = vmatprep.subr.bf16.mxu0 %v5204_v20 }
0x1432   :  { %4588 = vmatpush3.bf16.msra.mxu1 %v5205_v26  ;;  %4616 = vmatpush3.bf16.msra.mxu0 %v5206_v46 }
0x14e7   :  { %v3265_v38 = vpop.f32.mrb[56].mxu1  ;;  %v3318_v48 = vpop.f32.mrb[52].mxu0 }
0x14e8   :  { %v6826_v28 = vadd.f32 %v3265_v38, %v6813_v36  ;;  %v6829_v7 = vadd.f32 %v3318_v48, %v6816_v9  ;;  %v3267_v19 = vpop.f32.mrb[57].mxu1  ;;  %v3320_v60 = vpop.f32.mrb[53].mxu0 }
0x14e9   :  { %v6832_v52 = vadd.f32 %v3267_v19, %v6819_v24  ;;  %v6835_v18 = vadd.f32 %v3320_v60, %v6823_v61  ;;  %v3269_v32 = vpop.f32.mrb[58].mxu1  ;;  %v3322_v15 = vpop.f32.mrb[54].mxu0 }
0x14ea   :  { %v3337_v8 = vmul.f32 %v6826_v28, %v6826_v28  ;;  %v3339_v33 = vmul.f32 %v6829_v7, %v6829_v7  ;;  %v6842_v0 = vadd.f32 %v3269_v32, %v6813_v36  ;;  %v6845_v13 = vadd.f32 %v3322_v15, %v6816_v9  ;;  %v3271_v56 = vpop.f32.mrb[59].mxu1  ;;  %v3324_v1 = vpop.f32.mrb[55].mxu0 }
0x14eb   :  { %v3338_v3 = vmul.f32 %v6832_v52, %v6832_v52  ;;  %v3340_v41 = vmul.f32 %v6835_v18, %v6835_v18  ;;  %v6852_v42 = vadd.f32 %v3271_v56, %v6819_v24  ;;  %v6855_v45 = vadd.f32 %v3324_v1, %v6823_v61 }
0x14ec   :  { %v3353_v31 = vmul.f32 %v3337_v8, %v6826_v28  ;;  %v3355_v62 = vmul.f32 %v3339_v33, %v6829_v7  ;;  %v3341_v49 = vmul.f32 %v6842_v0, %v6842_v0  ;;  %v3343_v53 = vmul.f32 %v6845_v13, %v6845_v13 }
0x14ed   :  { %v3354_v27 = vmul.f32 %v3338_v3, %v6832_v52  ;;  %v3356_v17 = vmul.f32 %v3340_v41, %v6835_v18  ;;  %v3342_v47 = vmul.f32 %v6852_v42, %v6852_v42  ;;  %v3344_v44 = vmul.f32 %v6855_v45, %v6855_v45 }
0x14ee   :  { %v3369_v57 = vmul.f32 0.044715, %v3353_v31  ;;  %v3371_v58 = vmul.f32 0.044715, %v3355_v62  ;;  %v3357_v59 = vmul.f32 %v3341_v49, %v6842_v0  ;;  %v3359_v35 = vmul.f32 %v3343_v53, %v6845_v13 }
0x14ef   :  { %v3370_v11 = vmul.f32 0.044715, %v3354_v27  ;;  %v3372_v12 = vmul.f32 0.044715, %v3356_v17  ;;  %v3358_v29 = vmul.f32 %v3342_v47, %v6852_v42  ;;  %v3360_v14 = vmul.f32 %v3344_v44, %v6855_v45  ;;  %v3275_v2 = vpop.f32.mrb[60].mxu1  ;;  %v3328_v21 = vpop.f32.mrb[56].mxu0 }
0x14f0   :  { %v3385_v50 = vadd.f32 %v3369_v57, %v6826_v28  ;;  %v3387_v51 = vadd.f32 %v3371_v58, %v6829_v7  ;;  %v3373_v39 = vmul.f32 0.044715, %v3357_v59  ;;  %v3375_v40 = vmul.f32 0.044715, %v3359_v35  ;;  %v3277_v23 = vpop.f32.mrb[61].mxu1  ;;  %v3330_v10 = vpop.f32.mrb[57].mxu0 }
0x14f1   :  { %v3386_v22 = vadd.f32 %v3370_v11, %v6832_v52  ;;  %v3388_v37 = vadd.f32 %v3372_v12, %v6835_v18  ;;  %v3374_v25 = vmul.f32 0.044715, %v3358_v29  ;;  %v3376_v43 = vmul.f32 0.044715, %v3360_v14  ;;  %v3279_v63 = vpop.f32.mrb[62].mxu1  ;;  %v3332_v55 = vpop.f32.mrb[58].mxu0 }
0x14f2   :  { %v3401_v6 = vmul.f32 0.7978846, %v3385_v50  ;;  %v3403_v20 = vmul.f32 0.7978846, %v3387_v51  ;;  %v3389_v26 = vadd.f32 %v3373_v39, %v6842_v0  ;;  %v3391_v46 = vadd.f32 %v3375_v40, %v6845_v13  ;;  %v3281_v16 = vpop.f32.mrb[63].mxu1  ;;  %v3334_v38 = vpop.f32.mrb[59].mxu0 }
0x14f3   :  { %v3402_v48 = vmul.f32 0.7978846, %v3386_v22  ;;  %v3404_v19 = vmul.f32 0.7978846, %v3388_v37  ;;  %v3390_v60 = vadd.f32 %v3374_v25, %v6852_v42  ;;  %v3392_v32 = vadd.f32 %v3376_v43, %v6855_v45 }
0x14f4   :  { %5327 = vtanh.f32 %v3401_v6  ;;  %v3405_v15 = vmul.f32 0.7978846, %v3389_v26  ;;  %v3407_v8 = vmul.f32 0.7978846, %v3391_v46  ;;  %v6882_v33 = vadd.f32 %v3275_v2, %v6813_v36 }
0x14f5   :  { %5329 = vtanh.f32 %v3403_v20  ;;  %v3406_v56 = vmul.f32 0.7978846, %v3390_v60  ;;  %v3408_v1 = vmul.f32 0.7978846, %v3392_v32  ;;  %v6885_v3 = vadd.f32 %v3328_v21, %v6816_v9 }
0x14f6   :  { %5331 = vtanh.f32 %v3402_v48  ;;  %v3345_v41 = vmul.f32 %v6882_v33, %v6882_v33  ;;  %v6890_v31 = vadd.f32 %v3277_v23, %v6819_v24  ;;  %v6893_v62 = vadd.f32 %v3330_v10, %v6823_v61 }
0x14f7   :  { %5333 = vtanh.f32 %v3404_v19  ;;  %v3347_v49 = vmul.f32 %v6885_v3, %v6885_v3  ;;  %v6898_v53 = vadd.f32 %v3279_v63, %v6813_v36  ;;  %v6901_v27 = vadd.f32 %v3332_v55, %v6816_v9 }
0x14f8   :  { %5335 = vtanh.f32 %v3405_v15  ;;  %v3361_v17 = vmul.f32 %v3345_v41, %v6882_v33  ;;  %v3346_v47 = vmul.f32 %v6890_v31, %v6890_v31  ;;  %v3348_v44 = vmul.f32 %v6893_v62, %v6893_v62 }
0x14f9   :  { %5337 = vtanh.f32 %v3407_v8  ;;  %v3363_v57 = vmul.f32 %v3347_v49, %v6885_v3  ;;  %v3349_v58 = vmul.f32 %v6898_v53, %v6898_v53  ;;  %v3351_v36 = vmul.f32 %v6901_v27, %v6901_v27 }
0x14fa   :  { %5339 = vtanh.f32 %v3406_v56  ;;  %v3377_v9 = vmul.f32 0.044715, %v3361_v17  ;;  %v3362_v59 = vmul.f32 %v3346_v47, %v6890_v31  ;;  %v3364_v35 = vmul.f32 %v3348_v44, %v6893_v62 }
0x14fb   :  { %5341 = vtanh.f32 %v3408_v1  ;;  %v3379_v11 = vmul.f32 0.044715, %v3363_v57  ;;  %v3365_v12 = vmul.f32 %v3349_v58, %v6898_v53  ;;  %v3367_v29 = vmul.f32 %v3351_v36, %v6901_v27 }
0x14fc   :  { %v3393_v14 = vadd.f32 %v3377_v9, %v6882_v33  ;;  %v3378_v2 = vmul.f32 0.044715, %v3362_v59  ;;  %v3380_v21 = vmul.f32 0.044715, %v3364_v35  ;;  %v6919_v50 = vadd.f32 %v3281_v16, %v6819_v24 }
0x14fd   :  { %v3395_v51 = vadd.f32 %v3379_v11, %v6885_v3  ;;  %v3381_v39 = vmul.f32 0.044715, %v3365_v12  ;;  %v3383_v40 = vmul.f32 0.044715, %v3367_v29  ;;  %v6923_v23 = vadd.f32 %v3334_v38, %v6823_v61 }
0x14fe   :  { %v5328_v10 = vpop.eup %5327  ;;  %v3409_v22 = vmul.f32 0.7978846, %v3393_v14  ;;  %v3394_v37 = vadd.f32 %v3378_v2, %v6890_v31  ;;  %v3396_v25 = vadd.f32 %v3380_v21, %v6893_v62  ;;  %v3350_v43 = vmul.f32 %v6919_v50, %v6919_v50 }
0x14ff   :  { %v5330_v63 = vpop.eup %5329  ;;  %v3433_v55 = vadd.f32 1.0, %v5328_v10  ;;  %v3411_v24 = vmul.f32 0.7978846, %v3395_v51  ;;  %v3397_v6 = vadd.f32 %v3381_v39, %v6898_v53  ;;  %v3399_v20 = vadd.f32 %v3383_v40, %v6901_v27 }
0x1500   :  { %v5332_v26 = vpop.eup %5331  ;;  %v3435_v46 = vadd.f32 1.0, %v5330_v63  ;;  %5343 = vtanh.f32 %v3409_v22  ;;  %v3410_v61 = vmul.f32 0.7978846, %v3394_v37  ;;  %v3412_v16 = vmul.f32 0.7978846, %v3396_v25 }
0x1501   :  { %v5334_v38 = vpop.eup %5333  ;;  %v3449_v48 = vmul.f32 0.5, %v3433_v55  ;;  %5345 = vtanh.f32 %v3411_v24  ;;  %v3413_v19 = vmul.f32 0.7978846, %v3397_v6  ;;  %v3415_v60 = vmul.f32 0.7978846, %v3399_v20 }
0x1502   :  { %v5336_v32 = vpop.eup %5335  ;;  %v3451_v15 = vmul.f32 0.5, %v3435_v46  ;;  %5347 = vtanh.f32 %v3410_v61  ;;  %v3366_v8 = vmul.f32 %v3350_v43, %v6919_v50  ;;  %v3352_v56 = vmul.f32 %v6923_v23, %v6923_v23 }
0x1503   :  { %v5338_v1 = vpop.eup %5337  ;;  %v3465_v41 = vmul.f32 %v3449_v48, %v6826_v28  ;;  %v3437_v49 = vadd.f32 1.0, %v5336_v32  ;;  %5349 = vtanh.f32 %v3412_v16  ;;  %v3434_v17 = vadd.f32 1.0, %v5332_v26 }
0x1504   :  { %v5340_v47 = vpop.eup %5339  ;;  %v3467_v44 = vmul.f32 %v3451_v15, %v6829_v7  ;;  %v3439_v57 = vadd.f32 1.0, %v5338_v1  ;;  %5351 = vtanh.f32 %v3413_v19  ;;  %v3382_v58 = vmul.f32 0.044715, %v3366_v8 }
0x1505   :  { %v5342_v36 = vpop.eup %5341  ;;  %v3453_v9 = vmul.f32 0.5, %v3437_v49  ;;  %5353 = vtanh.f32 %v3415_v60  ;;  %v3368_v59 = vmul.f32 %v3352_v56, %v6923_v23  ;;  %v3438_v35 = vadd.f32 1.0, %v5340_v47 }
0x1506   :  { %v3455_v11 = vmul.f32 0.5, %v3439_v57  ;;  %v3398_v12 = vadd.f32 %v3382_v58, %v6919_v50  ;;  %v3450_v29 = vmul.f32 0.5, %v3434_v17  ;;  %v3436_v28 = vadd.f32 1.0, %v5334_v38 }
0x1507   :  { %v3469_v14 = vmul.f32 %v3453_v9, %v6842_v0  ;;  %v3384_v2 = vmul.f32 0.044715, %v3368_v59  ;;  %v3454_v21 = vmul.f32 0.5, %v3438_v35  ;;  %v3440_v51 = vadd.f32 1.0, %v5342_v36 }
0x1508   :  { %v3471_v7 = vmul.f32 %v3455_v11, %v6845_v13  ;;  %v3414_v39 = vmul.f32 0.7978846, %v3398_v12  ;;  %v3466_v40 = vmul.f32 %v3450_v29, %v6832_v52  ;;  %v3452_v10 = vmul.f32 0.5, %v3436_v28 }
0x1509   :  { %v3481_v22 = vpack.c.bf16 %v3469_v14, %v3465_v41  ;;  %v3400_v37 = vadd.f32 %v3384_v2, %v6923_v23  ;;  %v3470_v25 = vmul.f32 %v3454_v21, %v6852_v42  ;;  %v3456_v43 = vmul.f32 0.5, %v3440_v51 }
0x150a   :  { %v5344_v63 = vpop.eup %5343  ;;  %v3483_v55 = vpack.c.bf16 %v3471_v7, %v3467_v44  ;;  %5355 = vtanh.f32 %v3414_v39  ;;  %v3468_v0 = vmul.f32 %v3452_v10, %v6835_v18 }
0x150b   :  { %v5346_v24 = vpop.eup %5345  ;;  %v3416_v6 = vmul.f32 0.7978846, %v3400_v37  ;;  %v3482_v20 = vpack.c.bf16 %v3470_v25, %v3466_v40  ;;  %v3472_v13 = vmul.f32 %v3456_v43, %v6855_v45  ;;  %v3441_v26 = vadd.f32 1.0, %v5344_v63 }
0x150c   :  { %v5348_v46 = vpop.eup %5347  ;;  %v3443_v52 = vadd.f32 1.0, %v5346_v24 }
0x150d   :  { %v5350_v61 = vpop.eup %5349  ;;  %5357 = vtanh.f32 %v3416_v6  ;;  %3778 = vmatprep.mubr.bf16.mxu1 %v3482_v20  ;;  %v3484_v16 = vpack.c.bf16 %v3472_v13, %v3468_v0  ;;  %v3457_v19 = vmul.f32 0.5, %v3441_v26  ;;  %v3442_v32 = vadd.f32 1.0, %v5348_v46 }
0x150e   :  { %v5352_v38 = vpop.eup %5351  ;;  %3779 = vmatmul.mubr.bf16.vlgmr.msra.gmra.mrb[64].mxu1 %v3481_v22  ;;  %v3459_v60 = vmul.f32 0.5, %v3443_v52  ;;  %v3444_v41 = vadd.f32 1.0, %v5350_v61  ;;  %v4378_v22 = vld [vmem:[%s7038_s15 + $0x1] ss:$0 sm:$0xff] }
0x150f   :  { %v5354_v42 = vpop.eup %5353  ;;  %3827 = vmatprep.mubr.bf16.mxu0 %v3484_v16  ;;  %v3445_v48 = vadd.f32 1.0, %v5352_v38  ;;  %v3473_v45 = vmul.f32 %v3457_v19, %v6882_v33  ;;  %v3458_v44 = vmul.f32 0.5, %v3442_v32  ;;  %v5207_v32 = vld [vmem:[%s7041_s18] ss:$8 sps:$4 sm:$0xff]  }
0x1510   :  { %3828 = vmatmul.mubr.bf16.vlgmr.msra.gmra.mrb[60].mxu0 %v3483_v55  ;;  %v3447_v18 = vadd.f32 1.0, %v5354_v42  ;;  %v3475_v49 = vmul.f32 %v3459_v60, %v6885_v3  ;;  %v3460_v35 = vmul.f32 0.5, %v3444_v41 }
0x1511   :  { %v3461_v15 = vmul.f32 0.5, %v3445_v48  ;;  %v3474_v11 = vmul.f32 %v3458_v44, %v6890_v31 }
0x1512   :  { %v3463_v8 = vmul.f32 0.5, %v3447_v18  ;;  %v3476_v29 = vmul.f32 %v3460_v35, %v6893_v62 }
0x1513   :  { %v3477_v56 = vmul.f32 %v3461_v15, %v6898_v53  ;;  %v5209_v15 = vld [vmem:[%s7041_s18 + $0x4] ss:$8 sps:$4 sm:$0xff]  }
0x1514   :  { %v5356_v1 = vpop.eup %5355  ;;  %v3479_v17 = vmul.f32 %v3463_v8, %v6901_v27  ;;  %v5212_v8 = vld [vmem:[%s7041_s18 + $0x14] ss:$8 sps:$4 sm:$0xff]   ;;  %4024 = vmatprep.subr.bf16.mxu1 %v5209_v15 }
0x1515   :  { %v3446_v47 = vadd.f32 1.0, %v5356_v1  ;;  %v3485_v57 = vpack.c.bf16 %v3477_v56, %v3473_v45  ;;  %4025 = vmatpush1.bf16.msra.mxu1 %v5207_v32 }
0x1516   :  { %v3487_v58 = vpack.c.bf16 %v3479_v17, %v3475_v49  ;;  %4026 = vmatprep.subr.bf16.mxu1 %v5212_v8 }
0x1517   :  { %v5358_v36 = vpop.eup %5357  ;;  %v3462_v9 = vmul.f32 0.5, %v3446_v47 }
0x1518   :  { %v3448_v59 = vadd.f32 1.0, %v5358_v36 }
0x1519   :  { %v3478_v33 = vmul.f32 %v3462_v9, %v6919_v50 }
0x151a   :  { %v3464_v12 = vmul.f32 0.5, %v3448_v59 }
0x151b   :  { %v3486_v53 = vpack.c.bf16 %v3478_v33, %v3474_v11  ;;  %v5215_v33 = vld [vmem:[%s7041_s18 + $0x24] ss:$8 sps:$4 sm:$0xff]  }
0x151c   :  { %v3480_v3 = vmul.f32 %v3464_v12, %v6923_v23  ;;  %v5213_v12 = vld [vmem:[%s7041_s18 + $0x20] ss:$8 sps:$4 sm:$0xff]  }
0x151d   :  { %3786 = vmatprep.mubr.bf16.mxu1 %v3486_v53  ;;  %v5218_v53 = vld [vmem:[%s7041_s18 + $0x34] ss:$8 sps:$4 sm:$0xff]  }
0x151e   :  { %v3488_v27 = vpack.c.bf16 %v3480_v3, %v3476_v29  ;;  %3787 = vmatmul.mubr.bf16.gmra.mrb[68].mxu1 %v3485_v57  ;;  %v5216_v29 = vld [vmem:[%s7041_s18 + $0x30] ss:$8 sps:$4 sm:$0xff]   ;;  %v5221_v3 = vld [vmem:[%s7041_s18 + $0x44] ss:$8 sps:$4 sm:$0xff]  }
0x151f   :  { %4056 = vmatprep.mubr.bf16.mxu1 %v5623_v30 }
0x1520   :  { %3835 = vmatprep.mubr.bf16.mxu0 %v3488_v27  ;;  %v5219_v27 = vld [vmem:[%s7041_s18 + $0x40] ss:$8 sps:$4 sm:$0xff]  }
0x1521   :  { %3836 = vmatmul.mubr.bf16.gmra.mrb[64].mxu0 %v3487_v58 }
0x15e1   :  { %v4589_v28 = vpop.f32.mrb[64].mxu1 }
0x15e2   :  { %v4590_v14 = vpop.f32.mrb[65].mxu1 }
0x15e3   :  { %v4617_v2 = vpop.f32.mrb[60].mxu0  ;;  %v4591_v21 = vadd.f32 %v4590_v14, %v4589_v28  ;;  %v4592_v31 = vpop.f32.mrb[66].mxu1  ;;  %v5224_v28 = vld [vmem:[%s7041_s18 + $0x54] ss:$8 sps:$4 sm:$0xff]   ;;  %v5222_v14 = vld [vmem:[%s7041_s18 + $0x50] ss:$8 sps:$4 sm:$0xff]  }
0x15e4   :  { %v4618_v51 = vpop.f32.mrb[61].mxu0  ;;  %v4593_v50 = vpop.f32.mrb[67].mxu1 }
0x15e5   :  { %v4619_v7 = vadd.f32 %v4618_v51, %v4617_v2  ;;  %v4620_v39 = vpop.f32.mrb[62].mxu0  ;;  %v4594_v40 = vadd.f32 %v4593_v50, %v4592_v31  ;;  %v5225_v2 = vld [vmem:[%s7041_s18 + $0x60] ss:$8 sps:$4 sm:$0xff]   ;;  %v5230_v31 = vld [vmem:[%s7041_s18 + $0x74] ss:$8 sps:$4 sm:$0xff]  }
0x15e6   :  { %v4621_v62 = vpop.f32.mrb[63].mxu0  ;;  %v5228_v51 = vld [vmem:[%s7041_s18 + $0x70] ss:$8 sps:$4 sm:$0xff]  }
0x15e7   :  { %v3830_v10 = vadd.f32 %v4619_v7, %v4591_v21  ;;  %v4622_v23 = vadd.f32 %v4621_v62, %v4620_v39  ;;  %v5227_v21 = vld [vmem:[%s7041_s18 + $0x64] ss:$8 sps:$4 sm:$0xff]  }
0x15e9   :  { %v3833_v37 = vadd.f32 %v4622_v23, %v4594_v40  ;;  %v3844_v25 = vadd.f32 %v3830_v10, %v6672_v54 }
0x15eb   :  { %v3856_v43 = vadd.f32 %v4378_v22, %v3844_v25  ;;  %v3845_v63 = vadd.f32 %v3833_v37, %v6675_v5 }
0x15ed   :  { %3862 = vadd.xlane.f32.xlu0 %v3856_v43  ;;  %v3857_v55 = vadd.f32 %v4378_v22, %v3845_v63 }
0x15ef   :  { %3864 = vadd.xlane.f32.xlu1 %v3857_v55 }
0x15f1   :  { %v4595_v0 = vpop.f32.mrb[68].mxu1 }
0x15f2   :  { %v4596_v24 = vpop.f32.mrb[69].mxu1 }
0x15f3   :  { %v4597_v6 = vadd.f32 %v4596_v24, %v4595_v0  ;;  %v4598_v20 = vpop.f32.mrb[70].mxu1 }
0x15f4   :  { %v4623_v13 = vpop.f32.mrb[64].mxu0  ;;  %v4599_v26 = vpop.f32.mrb[71].mxu1 }
0x15f5   :  { %v4624_v46 = vpop.f32.mrb[65].mxu0  ;;  %v4600_v52 = vadd.f32 %v4599_v26, %v4598_v20 }
0x15f6   :  { %v4625_v61 = vadd.f32 %v4624_v46, %v4623_v13  ;;  %v4626_v16 = vpop.f32.mrb[66].mxu0 }
0x15f7   :  { %v4627_v38 = vpop.f32.mrb[67].mxu0 }
0x15f8   :  { %v3838_v42 = vadd.f32 %v4625_v61, %v4597_v6  ;;  %v4628_v48 = vadd.f32 %v4627_v38, %v4626_v16  ;;  %v4380_v6 = vld [vmem:[#allocation16] ss:$0 sm:$0xff] }
0x15fa   :  { %v3841_v54 = vadd.f32 %v4628_v48, %v4600_v52  ;;  %v3846_v19 = vadd.f32 %v3838_v42, %v6679_v4  ;;  %v5210_v4 = vld [vmem:[%s7041_s18 + $0x10] ss:$8 sps:$4 sm:$0xff]   ;;  %s5626_s18 = smov [#allocation17]  }
0x15fb   :  { %4027 = vmatpush1.bf16.msra.mxu1 %v5210_v4  ;;  %s4090_s1 = sshll.u32 %s5626_s18, 4  ;;  %s4091_s1 = int_to_ptr.vmem [resolvable:$true] %s4090_s1 }
0x15fc   :  { %v3858_v5 = vadd.f32 %v4378_v22, %v3846_v19  ;;  %v3847_v18 = vadd.f32 %v3841_v54, %v6683_v34  ;;  %4028 = vmatprep.subr.bf16.mxu1 %v5215_v33  ;;  %s5572_s2 = scalar_lea.vmem %s4091_s1, 1024  ;;  %p5577_p3 = scmp.lt.s32.totalorder %s4091_s1, %s4091_s1 }
0x15fd   :  { %p5573_p2 = scmp.ne.s32.totalorder %s4091_s1, %s5572_s2  ;;  %p5578_p4 = scmp.lt.s32.totalorder %s5572_s2, %s5572_s2 }
0x15fe   :  { %3866 = vadd.xlane.f32.xlu0 %v3858_v5  ;;  %v3859_v60 = vadd.f32 %v4378_v22, %v3847_v18  ;;  %v4379_v22 = vld [vmem:[#allocation14] ss:$0 sm:$0xff] }
0x15ff   :  { %4029 = vmatpush1.bf16.msra.mxu1 %v5213_v12  ;;  %p5579_p5 = por %p5578_p4, %p5577_p3 }
0x1600   :  { %3868 = vadd.xlane.f32.xlu1 %v3859_v60  ;;  %4030 = vmatprep.subr.bf16.mxu1 %v5218_v53 }
0x1601   :  { %p5580_p6 = pnand %p5579_p5, %p5573_p2 }
0x1603   :  { %4031 = vmatpush1.bf16.msra.mxu1 %v5216_v29 }
0x1604   :  { %4032 = vmatprep.subr.bf16.mxu1 %v5221_v3 }
0x1607   :  { %4033 = vmatpush1.bf16.msra.mxu1 %v5219_v27 }
0x1608   :  { %4034 = vmatprep.subr.bf16.mxu1 %v5224_v28 }
0x160b   :  { %4035 = vmatpush1.bf16.msra.mxu1 %v5222_v14 }
0x160c   :  { %4036 = vmatprep.subr.bf16.mxu1 %v5227_v21 }
0x160f   :  { %4037 = vmatpush1.bf16.msra.mxu1 %v5225_v2 }
0x1610   :  { %4038 = vmatprep.subr.bf16.mxu1 %v5230_v31 }
0x1613   :  { %4039 = vmatpush1.bf16.msra.mxu1 %v5228_v51 }
0x167a   :  { %v3863_v34 = vpop.xlane.xlu0 %3862 }
0x167b   :  { %v3870_v45 = vmul.f32 0.0078125, %v3863_v34 }
0x167c   :  { %v3865_v56 = vpop.xlane.xlu1 %3864 }
0x167d   :  { %v3874_v1 = vsub.f32 %v3856_v43, %v3870_v45  ;;  %v3871_v41 = vmul.f32 0.0078125, %v3865_v56 }
0x167f   :  { %v3875_v49 = vsub.f32 %v3857_v55, %v3871_v41  ;;  %v3878_v17 = vmul.f32 %v3874_v1, %v3874_v1 }
0x1681   :  { %3882 = vadd.xlane.f32.xlu0 %v3878_v17  ;;  %v3879_v47 = vmul.f32 %v3875_v49, %v3875_v49 }
0x1683   :  { %3884 = vadd.xlane.f32.xlu1 %v3879_v47 }
0x168b   :  { %v3867_v44 = vpop.xlane.xlu0 %3866 }
0x168c   :  { %v3872_v57 = vmul.f32 0.0078125, %v3867_v44 }
0x168d   :  { %v3869_v58 = vpop.xlane.xlu1 %3868 }
0x168e   :  { %v3876_v36 = vsub.f32 %v3858_v5, %v3872_v57  ;;  %v3873_v9 = vmul.f32 0.0078125, %v3869_v58 }
0x1690   :  { %v3877_v59 = vsub.f32 %v3859_v60, %v3873_v9  ;;  %v3880_v35 = vmul.f32 %v3876_v36, %v3876_v36 }
0x1692   :  { %3886 = vadd.xlane.f32.xlu0 %v3880_v35  ;;  %v3881_v11 = vmul.f32 %v3877_v59, %v3877_v59 }
0x1694   :  { %3888 = vadd.xlane.f32.xlu1 %v3881_v11 }
0x170e   :  { %v3883_v50 = vpop.xlane.xlu0 %3882 }
0x170f   :  { %v3890_v7 = vmul.f32 0.0078125, %v3883_v50 }
0x1710   :  { %v3885_v39 = vpop.xlane.xlu1 %3884 }
0x1711   :  { %v3894_v40 = vadd.f32 1e-05, %v3890_v7  ;;  %v3891_v62 = vmul.f32 0.0078125, %v3885_v39 }
0x1713   :  { %5359 = vrsqrt.f32 %v3894_v40  ;;  %v3895_v10 = vadd.f32 1e-05, %v3891_v62 }
0x1715   :  { %5361 = vrsqrt.f32 %v3895_v10 }
0x171d   :  { %v5360_v23 = vpop.eup %5359 }
0x171e   :  { %v3902_v37 = vmul.f32 %v5360_v23, %v3874_v1 }
0x171f   :  { %v5362_v25 = vpop.eup %5361  ;;  %v3887_v43 = vpop.xlane.xlu0 %3886 }
0x1720   :  { %v3912_v63 = vmul.f32 %v4379_v22, %v3902_v37  ;;  %v3903_v55 = vmul.f32 %v5362_v25, %v3875_v49  ;;  %v3892_v0 = vmul.f32 0.0078125, %v3887_v43 }
0x1721   :  { %v3889_v24 = vpop.xlane.xlu1 %3888 }
0x1722   :  { %v3913_v20 = vmul.f32 %v4379_v22, %v3903_v55  ;;  %v3896_v13 = vadd.f32 1e-05, %v3892_v0  ;;  %v3893_v26 = vmul.f32 0.0078125, %v3889_v24  ;;  %v3922_v52 = vadd.f32 %v4380_v6, %v3912_v63 }
0x1724   :  { %5363 = vrsqrt.f32 %v3896_v13  ;;  %v3897_v46 = vadd.f32 1e-05, %v3893_v26  ;;  %v3923_v61 = vadd.f32 %v4380_v6, %v3913_v20 }
0x1726   :  { %5365 = vrsqrt.f32 %v3897_v46  ;;  %v3926_v16 = vpack.c.bf16 %v3923_v61, %v3922_v52 }
0x1728   :  { %4057 = vmatmul.mubr.bf16.vlgmr.msra.gmra.mrb[72].mxu1 %v3926_v16 }
0x1729   :  { %4066 = vmatprep.mubr.bf16.mxu1 %v5623_v30 }
0x172e   :  { %v5364_v38 = vpop.eup %5363 }
0x172f   :  { %v3904_v42 = vmul.f32 %v5364_v38, %v3876_v36 }
0x1730   :  { %v5366_v48 = vpop.eup %5365 }
0x1731   :  { %v3905_v54 = vmul.f32 %v5366_v48, %v3877_v59  ;;  %v3914_v19 = vmul.f32 %v4379_v22, %v3904_v42 }
0x1733   :  { %v3915_v5 = vmul.f32 %v4379_v22, %v3905_v54  ;;  %v3924_v18 = vadd.f32 %v4380_v6, %v3914_v19 }
0x1735   :  { %v3925_v60 = vadd.f32 %v4380_v6, %v3915_v5 }
0x1737   :  { %v3927_v32 = vpack.c.bf16 %v3925_v60, %v3924_v18 }
0x1739   :  { %4067 = vmatmul.mubr.bf16.gmra.mrb[76].mxu1 %v3927_v32 }
0x17fb   :  { %v4058_v15 = vpop.f32.mrb[72].mxu1 }
0x17fc   :  { %4077 = vst [vmem:[#allocation17] sm:$0xff] %v4058_v15  ;;  %v4060_v8 = vpop.f32.mrb[73].mxu1 }
0x17fd   :  { %4078 = vst [vmem:[#allocation17 + $0x8] sm:$0xff] %v4060_v8  ;;  %v4062_v4 = vpop.f32.mrb[74].mxu1 }
0x17fe   :  { %4079 = vst [vmem:[#allocation17 + $0x10] sm:$0xff] %v4062_v4  ;;  %v4064_v34 = vpop.f32.mrb[75].mxu1 }
0x17ff   :  { %4080 = vst [vmem:[#allocation17 + $0x18] sm:$0xff] %v4064_v34 }
0x180c   :  { %v4068_v30 = vpop.f32.mrb[76].mxu1 }
0x180d   :  { %4081 = vst [vmem:[#allocation17 + $0x20] sm:$0xff] %v4068_v30  ;;  %v4070_v45 = vpop.f32.mrb[77].mxu1 }
0x180e   :  { %4082 = vst [vmem:[#allocation17 + $0x28] sm:$0xff] %v4070_v45  ;;  %v4072_v56 = vpop.f32.mrb[78].mxu1 }
0x180f   :  { %4083 = vst [vmem:[#allocation17 + $0x30] sm:$0xff] %v4072_v56  ;;  %v4074_v1 = vpop.f32.mrb[79].mxu1 }
0x1810   :  { %4084 = vst [vmem:[#allocation17 + $0x38] sm:$0xff] %v4074_v1 }
0x1811   :  { %5583 = shalt.err (!%p5580_p6)
}
0x1812   :  { %s5584_s14 = scalar_lea.hbm %s7042_s19, 1024 }
0x1813   :  { %p5585_p7 = scmp.ne.s32.totalorder %s7042_s19, %s5584_s14  ;;  %p5588_p8 = scmp.lt.u32.totalorder %s5584_s14, %s7042_s19 }
0x1815   :  { %p5590_p9 = pnand %p5588_p8, %p5585_p7 }
0x1817   :  { %5593 = shalt.err (!%p5590_p9)
}
0x1818   :  { %s5627_s22 = smov 256  }
0x1819   :  { %4096 = dma.vmem_to_hbm [thread:$0]  %s4091_s1, 1024, %s7042_s19, [#allocation4], %s5627_s22, %s5627_s22, %s7056_s4  }
0x181a   :  { %5604 = dma.done.wait [#allocation4], 1024  }
0x181b   :  { %5605 = vsyncadd [#allocation4], 4294966272 }
0x181c   :  { %4100 = vsyncpa [#allocation3], 1 }
0x181d   :  { %4101 = vsyncpa [#allocation6], 1 }
0x181e   :  { %4102 = vsyncpa [#allocation9], 1 }
0x181f   :  { %4103 = vsyncpa [#allocation12], 1 }
0x1820   :  { %4104 = vsyncpa [#allocation15], 1 }
0x1821   :  { %4105 = vsyncpa [#allocation4], 1 }

</bundles_post_ra>
